<compile_context>
chip_gen: v6e
topology: v6e:2x2x1
jax: 0.10.0
libtpu: 0.0.40
codegen_flags: <defaults>
</compile_context>

<pallas_src>
import functools
import math

import jax
import jax.numpy as jnp
from jax.experimental import pallas as pl
from jax.experimental.pallas import tpu as pltpu


def _round_up(x, m):
    return ((x + m - 1) // m) * m


# ----------------------------------------------------------------------------
# Kernel 1: tiled (time-parallel) matmul + bias (+ optional sigmoid).
# Used for the hoisted input projection of every GRU layer and the final
# Linear + sigmoid.  x is time-major (Tp, Bp, Din).
# ----------------------------------------------------------------------------
def _matmul_bias_kernel(x_ref, w_ref, b_ref, o_ref, *, apply_sigmoid):
    tc, bp, d_in = x_ref.shape
    d_out = o_ref.shape[-1]
    x2 = x_ref[...].reshape(tc * bp, d_in)                    # layout-preserving
    y = jnp.dot(x2, w_ref[...], preferred_element_type=jnp.float32) + b_ref[...]
    if apply_sigmoid:
        y = jax.nn.sigmoid(y)
    o_ref[...] = y.reshape(tc, bp, d_out).astype(o_ref.dtype)


def matmul_bias(x_tm, w_t, b, *, chunk_t, apply_sigmoid=False):
    """x_tm: (Tp, Bp, Din), w_t: (Din, Dout), b: (1, Dout) -> (Tp, Bp, Dout)."""
    Tp, Bp, Din = x_tm.shape
    Dout = w_t.shape[1]
    kernel = functools.partial(_matmul_bias_kernel, apply_sigmoid=apply_sigmoid)
    return pl.pallas_call(
        kernel,
        out_shape=jax.ShapeDtypeStruct((Tp, Bp, Dout), jnp.float32),
        grid_spec=pltpu.PrefetchScalarGridSpec(
            num_scalar_prefetch=0,
            grid=(Tp // chunk_t,),
            in_specs=[
                pl.BlockSpec((chunk_t, Bp, Din), lambda c: (c, 0, 0)),
                pl.BlockSpec((Din, Dout), lambda c: (0, 0)),
                pl.BlockSpec((1, Dout), lambda c: (0, 0)),
            ],
            out_specs=pl.BlockSpec((chunk_t, Bp, Dout), lambda c: (c, 0, 0)),
        ),
        compiler_params=pltpu.CompilerParams(
            dimension_semantics=("parallel",),
            vmem_limit_bytes=32 * 1024 * 1024,
        ),
    )(x_tm, w_t, b)


# ----------------------------------------------------------------------------
# Kernel 2: GRU recurrence.  GI = x@W_ih^T + b_ih is precomputed; only the
# hidden projection runs per step.  Hidden state is carried across time chunks
# in a VMEM scratch buffer.  Gate order matches PyTorch nn.GRU: [r | z | n],
# each gate occupying a lane-aligned Hp-wide slice of the 3*Hp axis.
# ----------------------------------------------------------------------------
def _gru_rec_kernel(gi_ref, whh_ref, bhh_ref, out_ref, h_ref, *, hp, chunk_t):
    c = pl.program_id(0)

    @pl.when(c == 0)
    def _():
        h_ref[...] = jnp.zeros_like(h_ref)          # h0 = 0 (PyTorch default)

    bp = h_ref.shape[0]
    whh = whh_ref[...]                                           # (Hp, 3Hp)
    # Hoist the bias broadcast out of the per-step loop.
    bhh = jnp.broadcast_to(bhh_ref[...], (bp, 3 * hp))           # (Bp, 3Hp)

    def step(tt, h_prev):
        gi = gi_ref[tt]                                          # (Bp, 3Hp)
        gh = jnp.dot(h_prev, whh, preferred_element_type=jnp.float32) + bhh
        r = jax.nn.sigmoid(gi[:, 0 * hp:1 * hp] + gh[:, 0 * hp:1 * hp])
        z = jax.nn.sigmoid(gi[:, 1 * hp:2 * hp] + gh[:, 1 * hp:2 * hp])
        n = jnp.tanh(gi[:, 2 * hp:3 * hp] + r * gh[:, 2 * hp:3 * hp])
        h_new = (1.0 - z) * n + z * h_prev
        out_ref[tt] = h_new                                      # lane-dense store
        return h_new

    h_ref[...] = jax.lax.fori_loop(0, chunk_t, step, h_ref[...], unroll=True)


def gru_recurrence(gi_tm, w_hh_t, b_hh, *, chunk_t):
    """gi_tm: (Tp, Bp, 3Hp) precomputed input gates -> hidden seq (Tp, Bp, Hp)."""
    Tp, Bp, H3 = gi_tm.shape
    Hp = H3 // 3
    kernel = functools.partial(_gru_rec_kernel, hp=Hp, chunk_t=chunk_t)
    return pl.pallas_call(
        kernel,
        out_shape=jax.ShapeDtypeStruct((Tp, Bp, Hp), jnp.float32),
        grid_spec=pltpu.PrefetchScalarGridSpec(
            num_scalar_prefetch=0,
            grid=(Tp // chunk_t,),
            in_specs=[
                pl.BlockSpec((chunk_t, Bp, H3), lambda c: (c, 0, 0)),   # GI chunk
                pl.BlockSpec((Hp, H3), lambda c: (0, 0)),               # W_hh^T
                pl.BlockSpec((1, H3), lambda c: (0, 0)),                # b_hh
            ],
            out_specs=pl.BlockSpec((chunk_t, Bp, Hp), lambda c: (c, 0, 0)),
            scratch_shapes=[pltpu.VMEM((Bp, Hp), jnp.float32)],         # h carry
        ),
        compiler_params=pltpu.CompilerParams(
            dimension_semantics=("arbitrary",),      # time recurrence is serial
            vmem_limit_bytes=32 * 1024 * 1024,
        ),
    )(gi_tm, w_hh_t, b_hh)


# ----------------------------------------------------------------------------
# Model wrapper matching CommonGRU.forward (mode='GRU', activation=sigmoid).
# ----------------------------------------------------------------------------
def common_gru_forward(x_btd, params, *, chunk_t=16):
    """x_btd: (B, T, input_size) -> (B, T, output_size)."""
    B, T, D = x_btd.shape
    Hp = params["hidden_padded"]
    Dp = params["input_padded"]
    O = params["output_size"]

    Tc = min(chunk_t, T)
    Tp = _round_up(T, Tc)
    Bp = _round_up(B, 8)

    # Single batch-first -> time-major transpose of the (small) input, fused
    # with zero padding to aligned shapes.  Everything else stays time-major.
    x = jnp.transpose(x_btd.astype(jnp.float32), (1, 0, 2))          # (T, B, D)
    x = jnp.pad(x, ((0, Tp - T), (0, Bp - B), (0, Dp - D)))

    h_seq = x
    for (w_ih_t, b_ih, w_hh_t, b_hh) in params["gru_layers"]:
        # (1) hoisted input projection: one big parallel MXU matmul (b_ih folded)
        gi = matmul_bias(h_seq, w_ih_t, b_ih, chunk_t=Tc)            # (Tp,Bp,3Hp)
        # (2) serial recurrence, chunked over time
        h_seq = gru_recurrence(gi, w_hh_t, b_hh, chunk_t=Tc)         # (Tp,Bp,Hp)

    out = matmul_bias(h_seq, params["lin_w_t"], params["lin_b"],
                      chunk_t=Tc, apply_sigmoid=True)                # (Tp,Bp,Op)
    out = out[:T, :B, :O]                                            # strip pads
    return jnp.transpose(out, (1, 0, 2))                             # (B, T, O)


# ----------------------------------------------------------------------------
# Parameters: raw PyTorch-layout init + packing into the padded kernel layout.
# ----------------------------------------------------------------------------
def init_torch_like_params(key, input_size, hidden_size, output_size, num_layers):
    """Raw params in PyTorch nn.GRU / nn.Linear layout (gate order [r|z|n])."""
    H = hidden_size
    bound = 1.0 / math.sqrt(H)
    layers = []
    for layer in range(num_layers):
        d_in = input_size if layer == 0 else H
        key, k1, k2, k3, k4 = jax.random.split(key, 5)
        layers.append(dict(
            w_ih=jax.random.uniform(k1, (3 * H, d_in), jnp.float32, -bound, bound),
            w_hh=jax.random.uniform(k2, (3 * H, H), jnp.float32, -bound, bound),
            b_ih=jax.random.uniform(k3, (3 * H,), jnp.float32, -bound, bound),
            b_hh=jax.random.uniform(k4, (3 * H,), jnp.float32, -bound, bound)))
    key, k1, k2 = jax.random.split(key, 3)
    lin_w = jax.random.uniform(k1, (output_size, H), jnp.float32, -bound, bound)
    lin_b = jax.random.uniform(k2, (output_size,), jnp.float32, -bound, bound)
    return dict(layers=layers, lin_w=lin_w, lin_b=lin_b,
                input_size=input_size, hidden_size=H, output_size=output_size)


def pack_params(raw):
    """Pad + transpose raw weights into the kernel layout.

    Gate g of each transposed weight lives at lane-aligned columns
    [g*Hp, g*Hp + H); pad rows/columns/biases are zero, so padded hidden lanes
    stay exactly 0 through the recurrence."""
    H = raw["hidden_size"]
    D0 = raw["input_size"]
    O = raw["output_size"]
    Hp = _round_up(H, 128)
    Dp0 = _round_up(D0, 128)
    Op = _round_up(O, 128)

    def pack_gated(w, b, d_in, d_in_p):
        # w: (3H, d_in), b: (3H,) -> (d_in_p, 3Hp), (1, 3Hp)
        w_t = jnp.zeros((d_in_p, 3 * Hp), jnp.float32)
        b_p = jnp.zeros((1, 3 * Hp), jnp.float32)
        for g in range(3):
            w_t = w_t.at[:d_in, g * Hp:g * Hp + H].set(w[g * H:(g + 1) * H, :].T)
            b_p = b_p.at[0, g * Hp:g * Hp + H].set(b[g * H:(g + 1) * H])
        return w_t, b_p

    layers = []
    for i, lyr in enumerate(raw["layers"]):
        d_in = D0 if i == 0 else H
        d_in_p = Dp0 if i == 0 else Hp
        w_ih_t, b_ih = pack_gated(lyr["w_ih"], lyr["b_ih"], d_in, d_in_p)
        w_hh_t, b_hh = pack_gated(lyr["w_hh"], lyr["b_hh"], H, Hp)
        layers.append((w_ih_t, b_ih, w_hh_t, b_hh))

    lin_w_t = jnp.zeros((Hp, Op), jnp.float32).at[:H, :O].set(raw["lin_w"].T)
    lin_b = jnp.zeros((1, Op), jnp.float32).at[0, :O].set(raw["lin_b"])

    return dict(gru_layers=layers, lin_w_t=lin_w_t, lin_b=lin_b,
                hidden_padded=Hp, input_padded=Dp0, output_padded=Op,
                output_size=O)


# ----------------------------------------------------------------------------
# Pure-JAX reference (PyTorch nn.GRU semantics) for a numerical self-check.
# ----------------------------------------------------------------------------
def _reference_forward(x_btd, raw):
    H = raw["hidden_size"]
    x = x_btd.astype(jnp.float32)
    B = x.shape[0]
    h_seq = x
    for lyr in raw["layers"]:
        w_ih, w_hh, b_ih, b_hh = lyr["w_ih"], lyr["w_hh"], lyr["b_ih"], lyr["b_hh"]

        def step(h, x_t, w_ih=w_ih, w_hh=w_hh, b_ih=b_ih, b_hh=b_hh):
            gi = x_t @ w_ih.T + b_ih
            gh = h @ w_hh.T + b_hh
            r = jax.nn.sigmoid(gi[:, :H] + gh[:, :H])
            z = jax.nn.sigmoid(gi[:, H:2 * H] + gh[:, H:2 * H])
            n = jnp.tanh(gi[:, 2 * H:] + r * gh[:, 2 * H:])
            h_new = (1.0 - z) * n + z * h
            return h_new, h_new

        h0 = jnp.zeros((B, H), jnp.float32)
        _, hs = jax.lax.scan(step, h0, jnp.transpose(h_seq, (1, 0, 2)))
        h_seq = jnp.transpose(hs, (1, 0, 2))
    out = h_seq @ raw["lin_w"].T + raw["lin_b"]
    return jax.nn.sigmoid(out)


if __name__ == "__main__":
    # Small shapes consistent with CommonGRU.forward: x is (B, T, input_size).
    B, T = 2, 8
    input_size, hidden_size, output_size, num_layers = 8, 32, 16, 2

    key = jax.random.PRNGKey(0)
    key, kx = jax.random.split(key)
    x = jax.random.normal(kx, (B, T, input_size), dtype=jnp.float32)

    raw = init_torch_like_params(key, input_size, hidden_size, output_size,
                                 num_layers)
    params = pack_params(raw)

    fwd = jax.jit(lambda xx: common_gru_forward(xx, params))
    out = jax.block_until_ready(fwd(x))
    assert out.shape == (B, T, output_size), out.shape

    ref = jax.block_until_ready(_reference_forward(x, raw))
    err = float(jnp.max(jnp.abs(out - ref)))
    assert err < 2e-3, f"max abs err vs reference = {err}"
    print("KERNEL_OK")
</pallas_src>

<mosaic_0001>
module attributes {stable_mosaic.version = 11 : i64} {
  func.func @_matmul_bias_kernel(%arg0: i32, %arg1: memref<8x8x128xf32, #tpu.memory_space<vmem>>, %arg2: memref<128x384xf32, #tpu.memory_space<vmem>>, %arg3: memref<1x384xf32, #tpu.memory_space<vmem>>, %arg4: memref<8x8x384xf32, #tpu.memory_space<vmem>>) attributes {dimension_semantics = [#tpu.dimension_semantics<parallel>], iteration_bounds = array<i64: 1>, scalar_prefetch = 0 : i64, scratch_operands = 0 : i64, tpu.core_type = #tpu.core_type<tc>, window_params = [{transform_indices = @transform_0, window_bounds = array<i64: 8, 8, 128>}, {pipeline_mode = #tpu.pipeline_mode<synchronous>, transform_indices = @transform_1, window_bounds = array<i64: 128, 384>}, {pipeline_mode = #tpu.pipeline_mode<synchronous>, transform_indices = @transform_2, window_bounds = array<i64: 1, 384>}, {transform_indices = @transform_3, window_bounds = array<i64: 8, 8, 384>}]} {
    %c0 = arith.constant 0 : index
    %c0_0 = arith.constant 0 : index
    %c0_1 = arith.constant 0 : index
    %0 = vector.load %arg1[%c0, %c0_0, %c0_1] : memref<8x8x128xf32, #tpu.memory_space<vmem>>, vector<8x8x128xf32>
    %1 = vector.shape_cast %0 : vector<8x8x128xf32> to vector<64x128xf32>
    %c0_2 = arith.constant 0 : index
    %c0_3 = arith.constant 0 : index
    %2 = vector.load %arg2[%c0_2, %c0_3] : memref<128x384xf32, #tpu.memory_space<vmem>>, vector<128x384xf32>
    %cst = arith.constant dense<0.000000e+00> : vector<64x384xf32>
    %3 = tpu.matmul %1, %2, %cst {dimension_numbers = #tpu.dot_dimension_numbers<[1], [0], [0], [1], [0, 0, 1, 1], [], []>} : vector<64x128xf32>, vector<128x384xf32>, vector<64x384xf32> -> vector<64x384xf32>
    %c0_4 = arith.constant 0 : index
    %c0_5 = arith.constant 0 : index
    %4 = vector.load %arg3[%c0_4, %c0_5] : memref<1x384xf32, #tpu.memory_space<vmem>>, vector<1x384xf32>
    %5 = vector.broadcast %4 : vector<1x384xf32> to vector<64x384xf32>
    %6 = arith.addf %3, %5 : vector<64x384xf32>
    %7 = vector.shape_cast %6 : vector<64x384xf32> to vector<8x8x384xf32>
    %c0_6 = arith.constant 0 : index
    %c0_7 = arith.constant 0 : index
    %c0_8 = arith.constant 0 : index
    %8 = vector.load %arg4[%c0_6, %c0_7, %c0_8] : memref<8x8x384xf32, #tpu.memory_space<vmem>>, vector<8x8x384xf32>
    tpu.vector_store %arg4[%c0_6, %c0_7, %c0_8], %7 {strides = array<i32>} : memref<8x8x384xf32, #tpu.memory_space<vmem>>, vector<8x8x384xf32>,
    return
  }
  func.func @transform_0(%arg0: i32) -> (i32, i32, i32) {
    %c0_i32 = arith.constant 0 : i32
    %c0_i32_0 = arith.constant 0 : i32
    %c0_i32_1 = arith.constant 0 : i32
    return %arg0, %c0_i32, %c0_i32_0 : i32, i32, i32
  }
  func.func @transform_1(%arg0: i32) -> (i32, i32) {
    %c0_i32 = arith.constant 0 : i32
    %c0_i32_0 = arith.constant 0 : i32
    %c0_i32_1 = arith.constant 0 : i32
    return %c0_i32, %c0_i32_0 : i32, i32
  }
  func.func @transform_2(%arg0: i32) -> (i32, i32) {
    %c0_i32 = arith.constant 0 : i32
    %c0_i32_0 = arith.constant 0 : i32
    %c0_i32_1 = arith.constant 0 : i32
    return %c0_i32, %c0_i32_0 : i32, i32
  }
  func.func @transform_3(%arg0: i32) -> (i32, i32, i32) {
    %c0_i32 = arith.constant 0 : i32
    %c0_i32_0 = arith.constant 0 : i32
    %c0_i32_1 = arith.constant 0 : i32
    return %arg0, %c0_i32, %c0_i32_0 : i32, i32, i32
  }
}

module attributes {stable_mosaic.version = 11 : i64} {
  func.func @_gru_rec_kernel(%arg0: i32, %arg1: memref<8x8x384xf32, #tpu.memory_space<vmem>>, %arg2: memref<128x384xf32, #tpu.memory_space<vmem>>, %arg3: memref<1x384xf32, #tpu.memory_space<vmem>>, %arg4: memref<8x8x128xf32, #tpu.memory_space<vmem>>, %arg5: memref<8x128xf32, #tpu.memory_space<vmem>>) attributes {dimension_semantics = [#tpu.dimension_semantics<arbitrary>], iteration_bounds = array<i64: 1>, scalar_prefetch = 0 : i64, scratch_operands = 1 : i64, tpu.core_type = #tpu.core_type<tc>, window_params = [{transform_indices = @transform_0, window_bounds = array<i64: 8, 8, 384>}, {pipeline_mode = #tpu.pipeline_mode<synchronous>, transform_indices = @transform_1, window_bounds = array<i64: 128, 384>}, {pipeline_mode = #tpu.pipeline_mode<synchronous>, transform_indices = @transform_2, window_bounds = array<i64: 1, 384>}, {transform_indices = @transform_3, window_bounds = array<i64: 8, 8, 128>}]} {
    %c0_i32 = arith.constant 0 : i32
    %0 = arith.cmpi eq, %arg0, %c0_i32 : i32
    %1 = arith.extui %0 : i1 to i32
    %c0_i32_0 = arith.constant 0 : i32
    %2 = arith.cmpi ne, %1, %c0_i32_0 : i32
    scf.if %2 {
      %cst_72 = arith.constant 0.000000e+00 : f32
      %289 = vector.broadcast %cst_72 : f32 to vector<8x128xf32>
      %c0_73 = arith.constant 0 : index
      %c0_74 = arith.constant 0 : index
      %290 = vector.load %arg5[%c0_73, %c0_74] : memref<8x128xf32, #tpu.memory_space<vmem>>, vector<8x128xf32>
      tpu.vector_store %arg5[%c0_73, %c0_74], %289 {strides = array<i32>} : memref<8x128xf32, #tpu.memory_space<vmem>>, vector<8x128xf32>,
    } else {
    }
    %c0 = arith.constant 0 : index
    %c0_1 = arith.constant 0 : index
    %3 = vector.load %arg2[%c0, %c0_1] : memref<128x384xf32, #tpu.memory_space<vmem>>, vector<128x384xf32>
    %c0_2 = arith.constant 0 : index
    %c0_3 = arith.constant 0 : index
    %4 = vector.load %arg3[%c0_2, %c0_3] : memref<1x384xf32, #tpu.memory_space<vmem>>, vector<1x384xf32>
    %5 = vector.shape_cast %4 : vector<1x384xf32> to vector<1x384xf32>
    %6 = vector.broadcast %5 : vector<1x384xf32> to vector<8x384xf32>
    %c0_4 = arith.constant 0 : index
    %c0_5 = arith.constant 0 : index
    %7 = vector.load %arg5[%c0_4, %c0_5] : memref<8x128xf32, #tpu.memory_space<vmem>>, vector<8x128xf32>
    %c0_i32_6 = arith.constant 0 : i32
    %8 = arith.index_cast %c0_i32_6 : i32 to index
    %c0_7 = arith.constant 0 : index
    %c0_8 = arith.constant 0 : index
    %9 = vector.load %arg1[%8, %c0_7, %c0_8] : memref<8x8x384xf32, #tpu.memory_space<vmem>>, vector<1x8x384xf32>
    %10 = vector.shape_cast %9 : vector<1x8x384xf32> to vector<8x384xf32>
    %cst = arith.constant dense<0.000000e+00> : vector<8x384xf32>
    %11 = tpu.matmul %7, %3, %cst {dimension_numbers = #tpu.dot_dimension_numbers<[1], [0], [0], [1], [0, 0, 1, 1], [], []>} : vector<8x128xf32>, vector<128x384xf32>, vector<8x384xf32> -> vector<8x384xf32>
    %12 = arith.addf %11, %6 : vector<8x384xf32>
    %13 = vector.extract_strided_slice %10 {offsets = [0, 0], sizes = [8, 128], strides = [1, 1]} : vector<8x384xf32> to vector<8x128xf32>
    %14 = vector.extract_strided_slice %12 {offsets = [0, 0], sizes = [8, 128], strides = [1, 1]} : vector<8x384xf32> to vector<8x128xf32>
    %15 = arith.addf %13, %14 : vector<8x128xf32>
    %16 = arith.negf %15 : vector<8x128xf32>
    %17 = math.exp %16 : vector<8x128xf32>
    %cst_9 = arith.constant 1.000000e+00 : f32
    %18 = vector.broadcast %cst_9 : f32 to vector<8x128xf32>
    %19 = arith.addf %18, %17 : vector<8x128xf32>
    %20 = arith.divf %18, %19 : vector<8x128xf32>
    %21 = vector.extract_strided_slice %10 {offsets = [0, 128], sizes = [8, 128], strides = [1, 1]} : vector<8x384xf32> to vector<8x128xf32>
    %22 = vector.extract_strided_slice %12 {offsets = [0, 128], sizes = [8, 128], strides = [1, 1]} : vector<8x384xf32> to vector<8x128xf32>
    %23 = arith.addf %21, %22 : vector<8x128xf32>
    %24 = arith.negf %23 : vector<8x128xf32>
    %25 = math.exp %24 : vector<8x128xf32>
    %cst_10 = arith.constant 1.000000e+00 : f32
    %26 = vector.broadcast %cst_10 : f32 to vector<8x128xf32>
    %27 = arith.addf %26, %25 : vector<8x128xf32>
    %28 = arith.divf %26, %27 : vector<8x128xf32>
    %29 = vector.extract_strided_slice %10 {offsets = [0, 256], sizes = [8, 128], strides = [1, 1]} : vector<8x384xf32> to vector<8x128xf32>
    %30 = vector.extract_strided_slice %12 {offsets = [0, 256], sizes = [8, 128], strides = [1, 1]} : vector<8x384xf32> to vector<8x128xf32>
    %31 = arith.mulf %20, %30 : vector<8x128xf32>
    %32 = arith.addf %29, %31 : vector<8x128xf32>
    %33 = math.tanh %32 : vector<8x128xf32>
    %cst_11 = arith.constant 1.000000e+00 : f32
    %34 = vector.broadcast %cst_11 : f32 to vector<8x128xf32>
    %35 = arith.subf %34, %28 : vector<8x128xf32>
    %36 = arith.mulf %35, %33 : vector<8x128xf32>
    %37 = arith.mulf %28, %7 : vector<8x128xf32>
    %38 = arith.addf %36, %37 : vector<8x128xf32>
    %39 = arith.index_cast %c0_i32_6 : i32 to index
    %c0_12 = arith.constant 0 : index
    %c0_13 = arith.constant 0 : index
    %40 = vector.load %arg4[%39, %c0_12, %c0_13] : memref<8x8x128xf32, #tpu.memory_space<vmem>>, vector<1x8x128xf32>
    %41 = vector.shape_cast %40 : vector<1x8x128xf32> to vector<8x128xf32>
    %42 = vector.shape_cast %38 : vector<8x128xf32> to vector<1x8x128xf32>
    tpu.vector_store %arg4[%39, %c0_12, %c0_13], %42 {strides = array<i32>} : memref<8x8x128xf32, #tpu.memory_space<vmem>>, vector<1x8x128xf32>,
    %c1_i32 = arith.constant 1 : i32
    %43 = arith.index_cast %c1_i32 : i32 to index
    %c0_14 = arith.constant 0 : index
    %c0_15 = arith.constant 0 : index
    %44 = vector.load %arg1[%43, %c0_14, %c0_15] : memref<8x8x384xf32, #tpu.memory_space<vmem>>, vector<1x8x384xf32>
    %45 = vector.shape_cast %44 : vector<1x8x384xf32> to vector<8x384xf32>
    %cst_16 = arith.constant dense<0.000000e+00> : vector<8x384xf32>
    %46 = tpu.matmul %38, %3, %cst_16 {dimension_numbers = #tpu.dot_dimension_numbers<[1], [0], [0], [1], [0, 0, 1, 1], [], []>} : vector<8x128xf32>, vector<128x384xf32>, vector<8x384xf32> -> vector<8x384xf32>
    %47 = arith.addf %46, %6 : vector<8x384xf32>
    %48 = vector.extract_strided_slice %45 {offsets = [0, 0], sizes = [8, 128], strides = [1, 1]} : vector<8x384xf32> to vector<8x128xf32>
    %49 = vector.extract_strided_slice %47 {offsets = [0, 0], sizes = [8, 128], strides = [1, 1]} : vector<8x384xf32> to vector<8x128xf32>
    %50 = arith.addf %48, %49 : vector<8x128xf32>
    %51 = arith.negf %50 : vector<8x128xf32>
    %52 = math.exp %51 : vector<8x128xf32>
    %cst_17 = arith.constant 1.000000e+00 : f32
    %53 = vector.broadcast %cst_17 : f32 to vector<8x128xf32>
    %54 = arith.addf %53, %52 : vector<8x128xf32>
    %55 = arith.divf %53, %54 : vector<8x128xf32>
    %56 = vector.extract_strided_slice %45 {offsets = [0, 128], sizes = [8, 128], strides = [1, 1]} : vector<8x384xf32> to vector<8x128xf32>
    %57 = vector.extract_strided_slice %47 {offsets = [0, 128], sizes = [8, 128], strides = [1, 1]} : vector<8x384xf32> to vector<8x128xf32>
    %58 = arith.addf %56, %57 : vector<8x128xf32>
    %59 = arith.negf %58 : vector<8x128xf32>
    %60 = math.exp %59 : vector<8x128xf32>
    %cst_18 = arith.constant 1.000000e+00 : f32
    %61 = vector.broadcast %cst_18 : f32 to vector<8x128xf32>
    %62 = arith.addf %61, %60 : vector<8x128xf32>
    %63 = arith.divf %61, %62 : vector<8x128xf32>
    %64 = vector.extract_strided_slice %45 {offsets = [0, 256], sizes = [8, 128], strides = [1, 1]} : vector<8x384xf32> to vector<8x128xf32>
    %65 = vector.extract_strided_slice %47 {offsets = [0, 256], sizes = [8, 128], strides = [1, 1]} : vector<8x384xf32> to vector<8x128xf32>
    %66 = arith.mulf %55, %65 : vector<8x128xf32>
    %67 = arith.addf %64, %66 : vector<8x128xf32>
    %68 = math.tanh %67 : vector<8x128xf32>
    %cst_19 = arith.constant 1.000000e+00 : f32
    %69 = vector.broadcast %cst_19 : f32 to vector<8x128xf32>
    %70 = arith.subf %69, %63 : vector<8x128xf32>
    %71 = arith.mulf %70, %68 : vector<8x128xf32>
    %72 = arith.mulf %63, %38 : vector<8x128xf32>
    %73 = arith.addf %71, %72 : vector<8x128xf32>
    %74 = arith.index_cast %c1_i32 : i32 to index
    %c0_20 = arith.constant 0 : index
    %c0_21 = arith.constant 0 : index
    %75 = vector.load %arg4[%74, %c0_20, %c0_21] : memref<8x8x128xf32, #tpu.memory_space<vmem>>, vector<1x8x128xf32>
    %76 = vector.shape_cast %75 : vector<1x8x128xf32> to vector<8x128xf32>
    %77 = vector.shape_cast %73 : vector<8x128xf32> to vector<1x8x128xf32>
    tpu.vector_store %arg4[%74, %c0_20, %c0_21], %77 {strides = array<i32>} : memref<8x8x128xf32, #tpu.memory_space<vmem>>, vector<1x8x128xf32>,
    %c2_i32 = arith.constant 2 : i32
    %78 = arith.index_cast %c2_i32 : i32 to index
    %c0_22 = arith.constant 0 : index
    %c0_23 = arith.constant 0 : index
    %79 = vector.load %arg1[%78, %c0_22, %c0_23] : memref<8x8x384xf32, #tpu.memory_space<vmem>>, vector<1x8x384xf32>
    %80 = vector.shape_cast %79 : vector<1x8x384xf32> to vector<8x384xf32>
    %cst_24 = arith.constant dense<0.000000e+00> : vector<8x384xf32>
    %81 = tpu.matmul %73, %3, %cst_24 {dimension_numbers = #tpu.dot_dimension_numbers<[1], [0], [0], [1], [0, 0, 1, 1], [], []>} : vector<8x128xf32>, vector<128x384xf32>, vector<8x384xf32> -> vector<8x384xf32>
    %82 = arith.addf %81, %6 : vector<8x384xf32>
    %83 = vector.extract_strided_slice %80 {offsets = [0, 0], sizes = [8, 128], strides = [1, 1]} : vector<8x384xf32> to vector<8x128xf32>
    %84 = vector.extract_strided_slice %82 {offsets = [0, 0], sizes = [8, 128], strides = [1, 1]} : vector<8x384xf32> to vector<8x128xf32>
    %85 = arith.addf %83, %84 : vector<8x128xf32>
    %86 = arith.negf %85 : vector<8x128xf32>
    %87 = math.exp %86 : vector<8x128xf32>
    %cst_25 = arith.constant 1.000000e+00 : f32
    %88 = vector.broadcast %cst_25 : f32 to vector<8x128xf32>
    %89 = arith.addf %88, %87 : vector<8x128xf32>
    %90 = arith.divf %88, %89 : vector<8x128xf32>
    %91 = vector.extract_strided_slice %80 {offsets = [0, 128], sizes = [8, 128], strides = [1, 1]} : vector<8x384xf32> to vector<8x128xf32>
    %92 = vector.extract_strided_slice %82 {offsets = [0, 128], sizes = [8, 128], strides = [1, 1]} : vector<8x384xf32> to vector<8x128xf32>
    %93 = arith.addf %91, %92 : vector<8x128xf32>
    %94 = arith.negf %93 : vector<8x128xf32>
    %95 = math.exp %94 : vector<8x128xf32>
    %cst_26 = arith.constant 1.000000e+00 : f32
    %96 = vector.broadcast %cst_26 : f32 to vector<8x128xf32>
    %97 = arith.addf %96, %95 : vector<8x128xf32>
    %98 = arith.divf %96, %97 : vector<8x128xf32>
    %99 = vector.extract_strided_slice %80 {offsets = [0, 256], sizes = [8, 128], strides = [1, 1]} : vector<8x384xf32> to vector<8x128xf32>
    %100 = vector.extract_strided_slice %82 {offsets = [0, 256], sizes = [8, 128], strides = [1, 1]} : vector<8x384xf32> to vector<8x128xf32>
    %101 = arith.mulf %90, %100 : vector<8x128xf32>
    %102 = arith.addf %99, %101 : vector<8x128xf32>
    %103 = math.tanh %102 : vector<8x128xf32>
    %cst_27 = arith.constant 1.000000e+00 : f32
    %104 = vector.broadcast %cst_27 : f32 to vector<8x128xf32>
    %105 = arith.subf %104, %98 : vector<8x128xf32>
    %106 = arith.mulf %105, %103 : vector<8x128xf32>
    %107 = arith.mulf %98, %73 : vector<8x128xf32>
    %108 = arith.addf %106, %107 : vector<8x128xf32>
    %109 = arith.index_cast %c2_i32 : i32 to index
    %c0_28 = arith.constant 0 : index
    %c0_29 = arith.constant 0 : index
    %110 = vector.load %arg4[%109, %c0_28, %c0_29] : memref<8x8x128xf32, #tpu.memory_space<vmem>>, vector<1x8x128xf32>
    %111 = vector.shape_cast %110 : vector<1x8x128xf32> to vector<8x128xf32>
    %112 = vector.shape_cast %108 : vector<8x128xf32> to vector<1x8x128xf32>
    tpu.vector_store %arg4[%109, %c0_28, %c0_29], %112 {strides = array<i32>} : memref<8x8x128xf32, #tpu.memory_space<vmem>>, vector<1x8x128xf32>,
    %c3_i32 = arith.constant 3 : i32
    %113 = arith.index_cast %c3_i32 : i32 to index
    %c0_30 = arith.constant 0 : index
    %c0_31 = arith.constant 0 : index
    %114 = vector.load %arg1[%113, %c0_30, %c0_31] : memref<8x8x384xf32, #tpu.memory_space<vmem>>, vector<1x8x384xf32>
    %115 = vector.shape_cast %114 : vector<1x8x384xf32> to vector<8x384xf32>
    %cst_32 = arith.constant dense<0.000000e+00> : vector<8x384xf32>
    %116 = tpu.matmul %108, %3, %cst_32 {dimension_numbers = #tpu.dot_dimension_numbers<[1], [0], [0], [1], [0, 0, 1, 1], [], []>} : vector<8x128xf32>, vector<128x384xf32>, vector<8x384xf32> -> vector<8x384xf32>
    %117 = arith.addf %116, %6 : vector<8x384xf32>
    %118 = vector.extract_strided_slice %115 {offsets = [0, 0], sizes = [8, 128], strides = [1, 1]} : vector<8x384xf32> to vector<8x128xf32>
    %119 = vector.extract_strided_slice %117 {offsets = [0, 0], sizes = [8, 128], strides = [1, 1]} : vector<8x384xf32> to vector<8x128xf32>
    %120 = arith.addf %118, %119 : vector<8x128xf32>
    %121 = arith.negf %120 : vector<8x128xf32>
    %122 = math.exp %121 : vector<8x128xf32>
    %cst_33 = arith.constant 1.000000e+00 : f32
    %123 = vector.broadcast %cst_33 : f32 to vector<8x128xf32>
    %124 = arith.addf %123, %122 : vector<8x128xf32>
    %125 = arith.divf %123, %124 : vector<8x128xf32>
    %126 = vector.extract_strided_slice %115 {offsets = [0, 128], sizes = [8, 128], strides = [1, 1]} : vector<8x384xf32> to vector<8x128xf32>
    %127 = vector.extract_strided_slice %117 {offsets = [0, 128], sizes = [8, 128], strides = [1, 1]} : vector<8x384xf32> to vector<8x128xf32>
    %128 = arith.addf %126, %127 : vector<8x128xf32>
    %129 = arith.negf %128 : vector<8x128xf32>
    %130 = math.exp %129 : vector<8x128xf32>
    %cst_34 = arith.constant 1.000000e+00 : f32
    %131 = vector.broadcast %cst_34 : f32 to vector<8x128xf32>
    %132 = arith.addf %131, %130 : vector<8x128xf32>
    %133 = arith.divf %131, %132 : vector<8x128xf32>
    %134 = vector.extract_strided_slice %115 {offsets = [0, 256], sizes = [8, 128], strides = [1, 1]} : vector<8x384xf32> to vector<8x128xf32>
    %135 = vector.extract_strided_slice %117 {offsets = [0, 256], sizes = [8, 128], strides = [1, 1]} : vector<8x384xf32> to vector<8x128xf32>
    %136 = arith.mulf %125, %135 : vector<8x128xf32>
    %137 = arith.addf %134, %136 : vector<8x128xf32>
    %138 = math.tanh %137 : vector<8x128xf32>
    %cst_35 = arith.constant 1.000000e+00 : f32
    %139 = vector.broadcast %cst_35 : f32 to vector<8x128xf32>
    %140 = arith.subf %139, %133 : vector<8x128xf32>
    %141 = arith.mulf %140, %138 : vector<8x128xf32>
    %142 = arith.mulf %133, %108 : vector<8x128xf32>
    %143 = arith.addf %141, %142 : vector<8x128xf32>
    %144 = arith.index_cast %c3_i32 : i32 to index
    %c0_36 = arith.constant 0 : index
    %c0_37 = arith.constant 0 : index
    %145 = vector.load %arg4[%144, %c0_36, %c0_37] : memref<8x8x128xf32, #tpu.memory_space<vmem>>, vector<1x8x128xf32>
    %146 = vector.shape_cast %145 : vector<1x8x128xf32> to vector<8x128xf32>
    %147 = vector.shape_cast %143 : vector<8x128xf32> to vector<1x8x128xf32>
    tpu.vector_store %arg4[%144, %c0_36, %c0_37], %147 {strides = array<i32>} : memref<8x8x128xf32, #tpu.memory_space<vmem>>, vector<1x8x128xf32>,
    %c4_i32 = arith.constant 4 : i32
    %148 = arith.index_cast %c4_i32 : i32 to index
    %c0_38 = arith.constant 0 : index
    %c0_39 = arith.constant 0 : index
    %149 = vector.load %arg1[%148, %c0_38, %c0_39] : memref<8x8x384xf32, #tpu.memory_space<vmem>>, vector<1x8x384xf32>
    %150 = vector.shape_cast %149 : vector<1x8x384xf32> to vector<8x384xf32>
    %cst_40 = arith.constant dense<0.000000e+00> : vector<8x384xf32>
    %151 = tpu.matmul %143, %3, %cst_40 {dimension_numbers = #tpu.dot_dimension_numbers<[1], [0], [0], [1], [0, 0, 1, 1], [], []>} : vector<8x128xf32>, vector<128x384xf32>, vector<8x384xf32> -> vector<8x384xf32>
    %152 = arith.addf %151, %6 : vector<8x384xf32>
    %153 = vector.extract_strided_slice %150 {offsets = [0, 0], sizes = [8, 128], strides = [1, 1]} : vector<8x384xf32> to vector<8x128xf32>
    %154 = vector.extract_strided_slice %152 {offsets = [0, 0], sizes = [8, 128], strides = [1, 1]} : vector<8x384xf32> to vector<8x128xf32>
    %155 = arith.addf %153, %154 : vector<8x128xf32>
    %156 = arith.negf %155 : vector<8x128xf32>
    %157 = math.exp %156 : vector<8x128xf32>
    %cst_41 = arith.constant 1.000000e+00 : f32
    %158 = vector.broadcast %cst_41 : f32 to vector<8x128xf32>
    %159 = arith.addf %158, %157 : vector<8x128xf32>
    %160 = arith.divf %158, %159 : vector<8x128xf32>
    %161 = vector.extract_strided_slice %150 {offsets = [0, 128], sizes = [8, 128], strides = [1, 1]} : vector<8x384xf32> to vector<8x128xf32>
    %162 = vector.extract_strided_slice %152 {offsets = [0, 128], sizes = [8, 128], strides = [1, 1]} : vector<8x384xf32> to vector<8x128xf32>
    %163 = arith.addf %161, %162 : vector<8x128xf32>
    %164 = arith.negf %163 : vector<8x128xf32>
    %165 = math.exp %164 : vector<8x128xf32>
    %cst_42 = arith.constant 1.000000e+00 : f32
    %166 = vector.broadcast %cst_42 : f32 to vector<8x128xf32>
    %167 = arith.addf %166, %165 : vector<8x128xf32>
    %168 = arith.divf %166, %167 : vector<8x128xf32>
    %169 = vector.extract_strided_slice %150 {offsets = [0, 256], sizes = [8, 128], strides = [1, 1]} : vector<8x384xf32> to vector<8x128xf32>
    %170 = vector.extract_strided_slice %152 {offsets = [0, 256], sizes = [8, 128], strides = [1, 1]} : vector<8x384xf32> to vector<8x128xf32>
    %171 = arith.mulf %160, %170 : vector<8x128xf32>
    %172 = arith.addf %169, %171 : vector<8x128xf32>
    %173 = math.tanh %172 : vector<8x128xf32>
    %cst_43 = arith.constant 1.000000e+00 : f32
    %174 = vector.broadcast %cst_43 : f32 to vector<8x128xf32>
    %175 = arith.subf %174, %168 : vector<8x128xf32>
    %176 = arith.mulf %175, %173 : vector<8x128xf32>
    %177 = arith.mulf %168, %143 : vector<8x128xf32>
    %178 = arith.addf %176, %177 : vector<8x128xf32>
    %179 = arith.index_cast %c4_i32 : i32 to index
    %c0_44 = arith.constant 0 : index
    %c0_45 = arith.constant 0 : index
    %180 = vector.load %arg4[%179, %c0_44, %c0_45] : memref<8x8x128xf32, #tpu.memory_space<vmem>>, vector<1x8x128xf32>
    %181 = vector.shape_cast %180 : vector<1x8x128xf32> to vector<8x128xf32>
    %182 = vector.shape_cast %178 : vector<8x128xf32> to vector<1x8x128xf32>
    tpu.vector_store %arg4[%179, %c0_44, %c0_45], %182 {strides = array<i32>} : memref<8x8x128xf32, #tpu.memory_space<vmem>>, vector<1x8x128xf32>,
    %c5_i32 = arith.constant 5 : i32
    %183 = arith.index_cast %c5_i32 : i32 to index
    %c0_46 = arith.constant 0 : index
    %c0_47 = arith.constant 0 : index
    %184 = vector.load %arg1[%183, %c0_46, %c0_47] : memref<8x8x384xf32, #tpu.memory_space<vmem>>, vector<1x8x384xf32>
    %185 = vector.shape_cast %184 : vector<1x8x384xf32> to vector<8x384xf32>
    %cst_48 = arith.constant dense<0.000000e+00> : vector<8x384xf32>
    %186 = tpu.matmul %178, %3, %cst_48 {dimension_numbers = #tpu.dot_dimension_numbers<[1], [0], [0], [1], [0, 0, 1, 1], [], []>} : vector<8x128xf32>, vector<128x384xf32>, vector<8x384xf32> -> vector<8x384xf32>
    %187 = arith.addf %186, %6 : vector<8x384xf32>
    %188 = vector.extract_strided_slice %185 {offsets = [0, 0], sizes = [8, 128], strides = [1, 1]} : vector<8x384xf32> to vector<8x128xf32>
    %189 = vector.extract_strided_slice %187 {offsets = [0, 0], sizes = [8, 128], strides = [1, 1]} : vector<8x384xf32> to vector<8x128xf32>
    %190 = arith.addf %188, %189 : vector<8x128xf32>
    %191 = arith.negf %190 : vector<8x128xf32>
    %192 = math.exp %191 : vector<8x128xf32>
    %cst_49 = arith.constant 1.000000e+00 : f32
    %193 = vector.broadcast %cst_49 : f32 to vector<8x128xf32>
    %194 = arith.addf %193, %192 : vector<8x128xf32>
    %195 = arith.divf %193, %194 : vector<8x128xf32>
    %196 = vector.extract_strided_slice %185 {offsets = [0, 128], sizes = [8, 128], strides = [1, 1]} : vector<8x384xf32> to vector<8x128xf32>
    %197 = vector.extract_strided_slice %187 {offsets = [0, 128], sizes = [8, 128], strides = [1, 1]} : vector<8x384xf32> to vector<8x128xf32>
    %198 = arith.addf %196, %197 : vector<8x128xf32>
    %199 = arith.negf %198 : vector<8x128xf32>
    %200 = math.exp %199 : vector<8x128xf32>
    %cst_50 = arith.constant 1.000000e+00 : f32
    %201 = vector.broadcast %cst_50 : f32 to vector<8x128xf32>
    %202 = arith.addf %201, %200 : vector<8x128xf32>
    %203 = arith.divf %201, %202 : vector<8x128xf32>
    %204 = vector.extract_strided_slice %185 {offsets = [0, 256], sizes = [8, 128], strides = [1, 1]} : vector<8x384xf32> to vector<8x128xf32>
    %205 = vector.extract_strided_slice %187 {offsets = [0, 256], sizes = [8, 128], strides = [1, 1]} : vector<8x384xf32> to vector<8x128xf32>
    %206 = arith.mulf %195, %205 : vector<8x128xf32>
    %207 = arith.addf %204, %206 : vector<8x128xf32>
    %208 = math.tanh %207 : vector<8x128xf32>
    %cst_51 = arith.constant 1.000000e+00 : f32
    %209 = vector.broadcast %cst_51 : f32 to vector<8x128xf32>
    %210 = arith.subf %209, %203 : vector<8x128xf32>
    %211 = arith.mulf %210, %208 : vector<8x128xf32>
    %212 = arith.mulf %203, %178 : vector<8x128xf32>
    %213 = arith.addf %211, %212 : vector<8x128xf32>
    %214 = arith.index_cast %c5_i32 : i32 to index
    %c0_52 = arith.constant 0 : index
    %c0_53 = arith.constant 0 : index
    %215 = vector.load %arg4[%214, %c0_52, %c0_53] : memref<8x8x128xf32, #tpu.memory_space<vmem>>, vector<1x8x128xf32>
    %216 = vector.shape_cast %215 : vector<1x8x128xf32> to vector<8x128xf32>
    %217 = vector.shape_cast %213 : vector<8x128xf32> to vector<1x8x128xf32>
    tpu.vector_store %arg4[%214, %c0_52, %c0_53], %217 {strides = array<i32>} : memref<8x8x128xf32, #tpu.memory_space<vmem>>, vector<1x8x128xf32>,
    %c6_i32 = arith.constant 6 : i32
    %218 = arith.index_cast %c6_i32 : i32 to index
    %c0_54 = arith.constant 0 : index
    %c0_55 = arith.constant 0 : index
    %219 = vector.load %arg1[%218, %c0_54, %c0_55] : memref<8x8x384xf32, #tpu.memory_space<vmem>>, vector<1x8x384xf32>
    %220 = vector.shape_cast %219 : vector<1x8x384xf32> to vector<8x384xf32>
    %cst_56 = arith.constant dense<0.000000e+00> : vector<8x384xf32>
    %221 = tpu.matmul %213, %3, %cst_56 {dimension_numbers = #tpu.dot_dimension_numbers<[1], [0], [0], [1], [0, 0, 1, 1], [], []>} : vector<8x128xf32>, vector<128x384xf32>, vector<8x384xf32> -> vector<8x384xf32>
    %222 = arith.addf %221, %6 : vector<8x384xf32>
    %223 = vector.extract_strided_slice %220 {offsets = [0, 0], sizes = [8, 128], strides = [1, 1]} : vector<8x384xf32> to vector<8x128xf32>
    %224 = vector.extract_strided_slice %222 {offsets = [0, 0], sizes = [8, 128], strides = [1, 1]} : vector<8x384xf32> to vector<8x128xf32>
    %225 = arith.addf %223, %224 : vector<8x128xf32>
    %226 = arith.negf %225 : vector<8x128xf32>
    %227 = math.exp %226 : vector<8x128xf32>
    %cst_57 = arith.constant 1.000000e+00 : f32
    %228 = vector.broadcast %cst_57 : f32 to vector<8x128xf32>
    %229 = arith.addf %228, %227 : vector<8x128xf32>
    %230 = arith.divf %228, %229 : vector<8x128xf32>
    %231 = vector.extract_strided_slice %220 {offsets = [0, 128], sizes = [8, 128], strides = [1, 1]} : vector<8x384xf32> to vector<8x128xf32>
    %232 = vector.extract_strided_slice %222 {offsets = [0, 128], sizes = [8, 128], strides = [1, 1]} : vector<8x384xf32> to vector<8x128xf32>
    %233 = arith.addf %231, %232 : vector<8x128xf32>
    %234 = arith.negf %233 : vector<8x128xf32>
    %235 = math.exp %234 : vector<8x128xf32>
    %cst_58 = arith.constant 1.000000e+00 : f32
    %236 = vector.broadcast %cst_58 : f32 to vector<8x128xf32>
    %237 = arith.addf %236, %235 : vector<8x128xf32>
    %238 = arith.divf %236, %237 : vector<8x128xf32>
    %239 = vector.extract_strided_slice %220 {offsets = [0, 256], sizes = [8, 128], strides = [1, 1]} : vector<8x384xf32> to vector<8x128xf32>
    %240 = vector.extract_strided_slice %222 {offsets = [0, 256], sizes = [8, 128], strides = [1, 1]} : vector<8x384xf32> to vector<8x128xf32>
    %241 = arith.mulf %230, %240 : vector<8x128xf32>
    %242 = arith.addf %239, %241 : vector<8x128xf32>
    %243 = math.tanh %242 : vector<8x128xf32>
    %cst_59 = arith.constant 1.000000e+00 : f32
    %244 = vector.broadcast %cst_59 : f32 to vector<8x128xf32>
    %245 = arith.subf %244, %238 : vector<8x128xf32>
    %246 = arith.mulf %245, %243 : vector<8x128xf32>
    %247 = arith.mulf %238, %213 : vector<8x128xf32>
    %248 = arith.addf %246, %247 : vector<8x128xf32>
    %249 = arith.index_cast %c6_i32 : i32 to index
    %c0_60 = arith.constant 0 : index
    %c0_61 = arith.constant 0 : index
    %250 = vector.load %arg4[%249, %c0_60, %c0_61] : memref<8x8x128xf32, #tpu.memory_space<vmem>>, vector<1x8x128xf32>
    %251 = vector.shape_cast %250 : vector<1x8x128xf32> to vector<8x128xf32>
    %252 = vector.shape_cast %248 : vector<8x128xf32> to vector<1x8x128xf32>
    tpu.vector_store %arg4[%249, %c0_60, %c0_61], %252 {strides = array<i32>} : memref<8x8x128xf32, #tpu.memory_space<vmem>>, vector<1x8x128xf32>,
    %c7_i32 = arith.constant 7 : i32
    %253 = arith.index_cast %c7_i32 : i32 to index
    %c0_62 = arith.constant 0 : index
    %c0_63 = arith.constant 0 : index
    %254 = vector.load %arg1[%253, %c0_62, %c0_63] : memref<8x8x384xf32, #tpu.memory_space<vmem>>, vector<1x8x384xf32>
    %255 = vector.shape_cast %254 : vector<1x8x384xf32> to vector<8x384xf32>
    %cst_64 = arith.constant dense<0.000000e+00> : vector<8x384xf32>
    %256 = tpu.matmul %248, %3, %cst_64 {dimension_numbers = #tpu.dot_dimension_numbers<[1], [0], [0], [1], [0, 0, 1, 1], [], []>} : vector<8x128xf32>, vector<128x384xf32>, vector<8x384xf32> -> vector<8x384xf32>
    %257 = arith.addf %256, %6 : vector<8x384xf32>
    %258 = vector.extract_strided_slice %255 {offsets = [0, 0], sizes = [8, 128], strides = [1, 1]} : vector<8x384xf32> to vector<8x128xf32>
    %259 = vector.extract_strided_slice %257 {offsets = [0, 0], sizes = [8, 128], strides = [1, 1]} : vector<8x384xf32> to vector<8x128xf32>
    %260 = arith.addf %258, %259 : vector<8x128xf32>
    %261 = arith.negf %260 : vector<8x128xf32>
    %262 = math.exp %261 : vector<8x128xf32>
    %cst_65 = arith.constant 1.000000e+00 : f32
    %263 = vector.broadcast %cst_65 : f32 to vector<8x128xf32>
    %264 = arith.addf %263, %262 : vector<8x128xf32>
    %265 = arith.divf %263, %264 : vector<8x128xf32>
    %266 = vector.extract_strided_slice %255 {offsets = [0, 128], sizes = [8, 128], strides = [1, 1]} : vector<8x384xf32> to vector<8x128xf32>
    %267 = vector.extract_strided_slice %257 {offsets = [0, 128], sizes = [8, 128], strides = [1, 1]} : vector<8x384xf32> to vector<8x128xf32>
    %268 = arith.addf %266, %267 : vector<8x128xf32>
    %269 = arith.negf %268 : vector<8x128xf32>
    %270 = math.exp %269 : vector<8x128xf32>
    %cst_66 = arith.constant 1.000000e+00 : f32
    %271 = vector.broadcast %cst_66 : f32 to vector<8x128xf32>
    %272 = arith.addf %271, %270 : vector<8x128xf32>
    %273 = arith.divf %271, %272 : vector<8x128xf32>
    %274 = vector.extract_strided_slice %255 {offsets = [0, 256], sizes = [8, 128], strides = [1, 1]} : vector<8x384xf32> to vector<8x128xf32>
    %275 = vector.extract_strided_slice %257 {offsets = [0, 256], sizes = [8, 128], strides = [1, 1]} : vector<8x384xf32> to vector<8x128xf32>
    %276 = arith.mulf %265, %275 : vector<8x128xf32>
    %277 = arith.addf %274, %276 : vector<8x128xf32>
    %278 = math.tanh %277 : vector<8x128xf32>
    %cst_67 = arith.constant 1.000000e+00 : f32
    %279 = vector.broadcast %cst_67 : f32 to vector<8x128xf32>
    %280 = arith.subf %279, %273 : vector<8x128xf32>
    %281 = arith.mulf %280, %278 : vector<8x128xf32>
    %282 = arith.mulf %273, %248 : vector<8x128xf32>
    %283 = arith.addf %281, %282 : vector<8x128xf32>
    %284 = arith.index_cast %c7_i32 : i32 to index
    %c0_68 = arith.constant 0 : index
    %c0_69 = arith.constant 0 : index
    %285 = vector.load %arg4[%284, %c0_68, %c0_69] : memref<8x8x128xf32, #tpu.memory_space<vmem>>, vector<1x8x128xf32>
    %286 = vector.shape_cast %285 : vector<1x8x128xf32> to vector<8x128xf32>
    %287 = vector.shape_cast %283 : vector<8x128xf32> to vector<1x8x128xf32>
    tpu.vector_store %arg4[%284, %c0_68, %c0_69], %287 {strides = array<i32>} : memref<8x8x128xf32, #tpu.memory_space<vmem>>, vector<1x8x128xf32>,
    %c8_i32 = arith.constant 8 : i32
    %c0_70 = arith.constant 0 : index
    %c0_71 = arith.constant 0 : index
    %288 = vector.load %arg5[%c0_70, %c0_71] : memref<8x128xf32, #tpu.memory_space<vmem>>, vector<8x128xf32>
    tpu.vector_store %arg5[%c0_70, %c0_71], %283 {strides = array<i32>} : memref<8x128xf32, #tpu.memory_space<vmem>>, vector<8x128xf32>,
    return
  }
  func.func @transform_0(%arg0: i32) -> (i32, i32, i32) {
    %c0_i32 = arith.constant 0 : i32
    %c0_i32_0 = arith.constant 0 : i32
    %c0_i32_1 = arith.constant 0 : i32
    return %arg0, %c0_i32, %c0_i32_0 : i32, i32, i32
  }
  func.func @transform_1(%arg0: i32) -> (i32, i32) {
    %c0_i32 = arith.constant 0 : i32
    %c0_i32_0 = arith.constant 0 : i32
    %c0_i32_1 = arith.constant 0 : i32
    return %c0_i32, %c0_i32_0 : i32, i32
  }
  func.func @transform_2(%arg0: i32) -> (i32, i32) {
    %c0_i32 = arith.constant 0 : i32
    %c0_i32_0 = arith.constant 0 : i32
    %c0_i32_1 = arith.constant 0 : i32
    return %c0_i32, %c0_i32_0 : i32, i32
  }
  func.func @transform_3(%arg0: i32) -> (i32, i32, i32) {
    %c0_i32 = arith.constant 0 : i32
    %c0_i32_0 = arith.constant 0 : i32
    %c0_i32_1 = arith.constant 0 : i32
    return %arg0, %c0_i32, %c0_i32_0 : i32, i32, i32
  }
}

module attributes {stable_mosaic.version = 11 : i64} {
  func.func @_matmul_bias_kernel(%arg0: i32, %arg1: memref<8x8x128xf32, #tpu.memory_space<vmem>>, %arg2: memref<128x384xf32, #tpu.memory_space<vmem>>, %arg3: memref<1x384xf32, #tpu.memory_space<vmem>>, %arg4: memref<8x8x384xf32, #tpu.memory_space<vmem>>) attributes {dimension_semantics = [#tpu.dimension_semantics<parallel>], iteration_bounds = array<i64: 1>, scalar_prefetch = 0 : i64, scratch_operands = 0 : i64, tpu.core_type = #tpu.core_type<tc>, window_params = [{transform_indices = @transform_0, window_bounds = array<i64: 8, 8, 128>}, {pipeline_mode = #tpu.pipeline_mode<synchronous>, transform_indices = @transform_1, window_bounds = array<i64: 128, 384>}, {pipeline_mode = #tpu.pipeline_mode<synchronous>, transform_indices = @transform_2, window_bounds = array<i64: 1, 384>}, {transform_indices = @transform_3, window_bounds = array<i64: 8, 8, 384>}]} {
    %c0 = arith.constant 0 : index
    %c0_0 = arith.constant 0 : index
    %c0_1 = arith.constant 0 : index
    %0 = vector.load %arg1[%c0, %c0_0, %c0_1] : memref<8x8x128xf32, #tpu.memory_space<vmem>>, vector<8x8x128xf32>
    %1 = vector.shape_cast %0 : vector<8x8x128xf32> to vector<64x128xf32>
    %c0_2 = arith.constant 0 : index
    %c0_3 = arith.constant 0 : index
    %2 = vector.load %arg2[%c0_2, %c0_3] : memref<128x384xf32, #tpu.memory_space<vmem>>, vector<128x384xf32>
    %cst = arith.constant dense<0.000000e+00> : vector<64x384xf32>
    %3 = tpu.matmul %1, %2, %cst {dimension_numbers = #tpu.dot_dimension_numbers<[1], [0], [0], [1], [0, 0, 1, 1], [], []>} : vector<64x128xf32>, vector<128x384xf32>, vector<64x384xf32> -> vector<64x384xf32>
    %c0_4 = arith.constant 0 : index
    %c0_5 = arith.constant 0 : index
    %4 = vector.load %arg3[%c0_4, %c0_5] : memref<1x384xf32, #tpu.memory_space<vmem>>, vector<1x384xf32>
    %5 = vector.broadcast %4 : vector<1x384xf32> to vector<64x384xf32>
    %6 = arith.addf %3, %5 : vector<64x384xf32>
    %7 = vector.shape_cast %6 : vector<64x384xf32> to vector<8x8x384xf32>
    %c0_6 = arith.constant 0 : index
    %c0_7 = arith.constant 0 : index
    %c0_8 = arith.constant 0 : index
    %8 = vector.load %arg4[%c0_6, %c0_7, %c0_8] : memref<8x8x384xf32, #tpu.memory_space<vmem>>, vector<8x8x384xf32>
    tpu.vector_store %arg4[%c0_6, %c0_7, %c0_8], %7 {strides = array<i32>} : memref<8x8x384xf32, #tpu.memory_space<vmem>>, vector<8x8x384xf32>,
    return
  }
  func.func @transform_0(%arg0: i32) -> (i32, i32, i32) {
    %c0_i32 = arith.constant 0 : i32
    %c0_i32_0 = arith.constant 0 : i32
    %c0_i32_1 = arith.constant 0 : i32
    return %arg0, %c0_i32, %c0_i32_0 : i32, i32, i32
  }
  func.func @transform_1(%arg0: i32) -> (i32, i32) {
    %c0_i32 = arith.constant 0 : i32
    %c0_i32_0 = arith.constant 0 : i32
    %c0_i32_1 = arith.constant 0 : i32
    return %c0_i32, %c0_i32_0 : i32, i32
  }
  func.func @transform_2(%arg0: i32) -> (i32, i32) {
    %c0_i32 = arith.constant 0 : i32
    %c0_i32_0 = arith.constant 0 : i32
    %c0_i32_1 = arith.constant 0 : i32
    return %c0_i32, %c0_i32_0 : i32, i32
  }
  func.func @transform_3(%arg0: i32) -> (i32, i32, i32) {
    %c0_i32 = arith.constant 0 : i32
    %c0_i32_0 = arith.constant 0 : i32
    %c0_i32_1 = arith.constant 0 : i32
    return %arg0, %c0_i32, %c0_i32_0 : i32, i32, i32
  }
}

module attributes {stable_mosaic.version = 11 : i64} {
  func.func @_matmul_bias_kernel(%arg0: i32, %arg1: memref<8x8x128xf32, #tpu.memory_space<vmem>>, %arg2: memref<128x128xf32, #tpu.memory_space<vmem>>, %arg3: memref<1x128xf32, #tpu.memory_space<vmem>>, %arg4: memref<8x8x128xf32, #tpu.memory_space<vmem>>) attributes {dimension_semantics = [#tpu.dimension_semantics<parallel>], iteration_bounds = array<i64: 1>, scalar_prefetch = 0 : i64, scratch_operands = 0 : i64, tpu.core_type = #tpu.core_type<tc>, window_params = [{transform_indices = @transform_0, window_bounds = array<i64: 8, 8, 128>}, {pipeline_mode = #tpu.pipeline_mode<synchronous>, transform_indices = @transform_1, window_bounds = array<i64: 128, 128>}, {pipeline_mode = #tpu.pipeline_mode<synchronous>, transform_indices = @transform_2, window_bounds = array<i64: 1, 128>}, {transform_indices = @transform_3, window_bounds = array<i64: 8, 8, 128>}]} {
    %c0 = arith.constant 0 : index
    %c0_0 = arith.constant 0 : index
    %c0_1 = arith.constant 0 : index
    %0 = vector.load %arg1[%c0, %c0_0, %c0_1] : memref<8x8x128xf32, #tpu.memory_space<vmem>>, vector<8x8x128xf32>
    %1 = vector.shape_cast %0 : vector<8x8x128xf32> to vector<64x128xf32>
    %c0_2 = arith.constant 0 : index
    %c0_3 = arith.constant 0 : index
    %2 = vector.load %arg2[%c0_2, %c0_3] : memref<128x128xf32, #tpu.memory_space<vmem>>, vector<128x128xf32>
    %cst = arith.constant dense<0.000000e+00> : vector<64x128xf32>
    %3 = tpu.matmul %1, %2, %cst {dimension_numbers = #tpu.dot_dimension_numbers<[1], [0], [0], [1], [0, 0, 1, 1], [], []>} : vector<64x128xf32>, vector<128x128xf32>, vector<64x128xf32> -> vector<64x128xf32>
    %c0_4 = arith.constant 0 : index
    %c0_5 = arith.constant 0 : index
    %4 = vector.load %arg3[%c0_4, %c0_5] : memref<1x128xf32, #tpu.memory_space<vmem>>, vector<1x128xf32>
    %5 = vector.broadcast %4 : vector<1x128xf32> to vector<64x128xf32>
    %6 = arith.addf %3, %5 : vector<64x128xf32>
    %7 = arith.negf %6 : vector<64x128xf32>
    %8 = math.exp %7 : vector<64x128xf32>
    %cst_6 = arith.constant 1.000000e+00 : f32
    %9 = vector.broadcast %cst_6 : f32 to vector<64x128xf32>
    %10 = arith.addf %9, %8 : vector<64x128xf32>
    %11 = arith.divf %9, %10 : vector<64x128xf32>
    %12 = vector.shape_cast %11 : vector<64x128xf32> to vector<8x8x128xf32>
    %c0_7 = arith.constant 0 : index
    %c0_8 = arith.constant 0 : index
    %c0_9 = arith.constant 0 : index
    %13 = vector.load %arg4[%c0_7, %c0_8, %c0_9] : memref<8x8x128xf32, #tpu.memory_space<vmem>>, vector<8x8x128xf32>
    tpu.vector_store %arg4[%c0_7, %c0_8, %c0_9], %12 {strides = array<i32>} : memref<8x8x128xf32, #tpu.memory_space<vmem>>, vector<8x8x128xf32>,
    return
  }
  func.func @transform_0(%arg0: i32) -> (i32, i32, i32) {
    %c0_i32 = arith.constant 0 : i32
    %c0_i32_0 = arith.constant 0 : i32
    %c0_i32_1 = arith.constant 0 : i32
    return %arg0, %c0_i32, %c0_i32_0 : i32, i32, i32
  }
  func.func @transform_1(%arg0: i32) -> (i32, i32) {
    %c0_i32 = arith.constant 0 : i32
    %c0_i32_0 = arith.constant 0 : i32
    %c0_i32_1 = arith.constant 0 : i32
    return %c0_i32, %c0_i32_0 : i32, i32
  }
  func.func @transform_2(%arg0: i32) -> (i32, i32) {
    %c0_i32 = arith.constant 0 : i32
    %c0_i32_0 = arith.constant 0 : i32
    %c0_i32_1 = arith.constant 0 : i32
    return %c0_i32, %c0_i32_0 : i32, i32
  }
  func.func @transform_3(%arg0: i32) -> (i32, i32, i32) {
    %c0_i32 = arith.constant 0 : i32
    %c0_i32_0 = arith.constant 0 : i32
    %c0_i32_1 = arith.constant 0 : i32
    return %arg0, %c0_i32, %c0_i32_0 : i32, i32, i32
  }
}

</mosaic_0001>

<bundles_post_ra>
// kernel: _lambda_.9
= control target key start
LH: loop header
LB: loop body
LE: loop exit
PB: predicated region body
PF: predicated region fallthrough
CT: control target
= control target key end

     0   :  { %s470_s1 = inlined_call_operand.vmem [shape: f32[128,128], index: 1, kind: input, shape index: {}]   ;;  %s471_s0 = inlined_call_operand.vmem [shape: f32[8,8,128], index: 0, kind: input, shape index: {}]   ;;  %s472_s2 = inlined_call_operand.vmem [shape: f32[1,128], index: 2, kind: input, shape index: {}]   ;;  %s473_s3 = inlined_call_operand.vmem [shape: f32[8,8,128], index: 3, kind: output, shape index: {}]  }
   0x1   :  { %v37_v0 = vld [vmem:[%s470_s1 + $0x78] sm:$0xff]  ;;  %v36_v1 = vld [vmem:[%s470_s1 + $0x70] sm:$0xff]  ;;  %v35_v2 = vld [vmem:[%s470_s1 + $0x68] sm:$0xff] }
   0x2   :  { %243 = vmatprep.subr.mxu0 %v37_v0  ;;  %287 = vmatprep.subr.mxu1 %v37_v0  ;;  %v34_v3 = vld [vmem:[%s470_s1 + $0x60] sm:$0xff]  ;;  %v33_v4 = vld [vmem:[%s470_s1 + $0x58] sm:$0xff]  ;;  %v32_v5 = vld [vmem:[%s470_s1 + $0x50] sm:$0xff] }
   0x3   :  { %244 = vmatpush3.msra.mxu0 %v37_v0  ;;  %303 = vmatpush3.msra.mxu1 %v37_v0  ;;  %v31_v6 = vld [vmem:[%s470_s1 + $0x48] sm:$0xff]  ;;  %v30_v7 = vld [vmem:[%s470_s1 + $0x40] sm:$0xff]  ;;  %v29_v8 = vld [vmem:[%s470_s1 + $0x38] sm:$0xff] }
   0x4   :  { %245 = vmatprep.subr.mxu0 %v36_v1  ;;  %288 = vmatprep.subr.mxu1 %v36_v1  ;;  %v28_v9 = vld [vmem:[%s470_s1 + $0x30] sm:$0xff]  ;;  %v27_v10 = vld [vmem:[%s470_s1 + $0x28] sm:$0xff]  ;;  %v26_v11 = vld [vmem:[%s470_s1 + $0x20] sm:$0xff] }
   0x5   :  { %246 = vmatpush3.msra.mxu0 %v36_v1  ;;  %304 = vmatpush3.msra.mxu1 %v36_v1  ;;  %v25_v12 = vld [vmem:[%s470_s1 + $0x18] sm:$0xff]  ;;  %v24_v13 = vld [vmem:[%s470_s1 + $0x10] sm:$0xff]  ;;  %v23_v14 = vld [vmem:[%s470_s1 + $0x8] sm:$0xff] }
   0x6   :  { %247 = vmatprep.subr.mxu0 %v35_v2  ;;  %289 = vmatprep.subr.mxu1 %v35_v2  ;;  %v22_v15 = vld [vmem:[%s470_s1] sm:$0xff]  ;;  %v15_v18 = vld [vmem:[%s471_s0 + $0x8] sm:$0xff]  ;;  %v16_v20 = vld [vmem:[%s471_s0 + $0x10] sm:$0xff] }
   0x7   :  { %248 = vmatpush3.msra.mxu0 %v35_v2  ;;  %305 = vmatpush3.msra.mxu1 %v35_v2  ;;  %v14_v16 = vld [vmem:[%s471_s0] sm:$0xff]  ;;  %v19_v19 = vld [vmem:[%s471_s0 + $0x28] sm:$0xff]  ;;  %v20_v21 = vld [vmem:[%s471_s0 + $0x30] sm:$0xff] }
   0x8   :  { %249 = vmatprep.subr.mxu0 %v34_v3  ;;  %290 = vmatprep.subr.mxu1 %v34_v3  ;;  %v18_v17 = vld [vmem:[%s471_s0 + $0x20] sm:$0xff]  ;;  %v17_v22 = vld [vmem:[%s471_s0 + $0x18] sm:$0xff] }
   0x9   :  { %250 = vmatpush3.msra.mxu0 %v34_v3  ;;  %306 = vmatpush3.msra.mxu1 %v34_v3  ;;  %v21_v23 = vld [vmem:[%s471_s0 + $0x38] sm:$0xff]  ;;  %v210_v24 = vld [vmem:[%s472_s2] ss:$0 sm:$0xff] }
   0xa   :  { %251 = vmatprep.subr.mxu0 %v33_v4  ;;  %291 = vmatprep.subr.mxu1 %v33_v4 }
   0xb   :  { %252 = vmatpush3.msra.mxu0 %v33_v4  ;;  %307 = vmatpush3.msra.mxu1 %v33_v4 }
   0xc   :  { %253 = vmatprep.subr.mxu0 %v32_v5  ;;  %292 = vmatprep.subr.mxu1 %v32_v5 }
   0xd   :  { %254 = vmatpush3.msra.mxu0 %v32_v5  ;;  %308 = vmatpush3.msra.mxu1 %v32_v5 }
   0xe   :  { %255 = vmatprep.subr.mxu0 %v31_v6  ;;  %293 = vmatprep.subr.mxu1 %v31_v6 }
   0xf   :  { %256 = vmatpush3.msra.mxu0 %v31_v6  ;;  %309 = vmatpush3.msra.mxu1 %v31_v6 }
  0x10   :  { %257 = vmatprep.subr.mxu0 %v30_v7  ;;  %294 = vmatprep.subr.mxu1 %v30_v7 }
  0x11   :  { %258 = vmatpush3.msra.mxu0 %v30_v7  ;;  %310 = vmatpush3.msra.mxu1 %v30_v7 }
  0x12   :  { %259 = vmatprep.subr.mxu0 %v29_v8  ;;  %295 = vmatprep.subr.mxu1 %v29_v8 }
  0x13   :  { %260 = vmatpush3.msra.mxu0 %v29_v8  ;;  %311 = vmatpush3.msra.mxu1 %v29_v8 }
  0x14   :  { %261 = vmatprep.subr.mxu0 %v28_v9  ;;  %296 = vmatprep.subr.mxu1 %v28_v9 }
  0x15   :  { %262 = vmatpush3.msra.mxu0 %v28_v9  ;;  %312 = vmatpush3.msra.mxu1 %v28_v9 }
  0x16   :  { %263 = vmatprep.subr.mxu0 %v27_v10  ;;  %297 = vmatprep.subr.mxu1 %v27_v10 }
  0x17   :  { %264 = vmatpush3.msra.mxu0 %v27_v10  ;;  %313 = vmatpush3.msra.mxu1 %v27_v10 }
  0x18   :  { %265 = vmatprep.subr.mxu0 %v26_v11  ;;  %298 = vmatprep.subr.mxu1 %v26_v11 }
  0x19   :  { %266 = vmatpush3.msra.mxu0 %v26_v11  ;;  %314 = vmatpush3.msra.mxu1 %v26_v11 }
  0x1a   :  { %267 = vmatprep.subr.mxu0 %v25_v12  ;;  %299 = vmatprep.subr.mxu1 %v25_v12 }
  0x1b   :  { %268 = vmatpush3.msra.mxu0 %v25_v12  ;;  %315 = vmatpush3.msra.mxu1 %v25_v12 }
  0x1c   :  { %269 = vmatprep.subr.mxu0 %v24_v13  ;;  %300 = vmatprep.subr.mxu1 %v24_v13 }
  0x1d   :  { %270 = vmatpush3.msra.mxu0 %v24_v13  ;;  %316 = vmatpush3.msra.mxu1 %v24_v13 }
  0x1e   :  { %271 = vmatprep.subr.mxu0 %v23_v14  ;;  %301 = vmatprep.subr.mxu1 %v23_v14 }
  0x1f   :  { %272 = vmatpush3.msra.mxu0 %v23_v14  ;;  %317 = vmatpush3.msra.mxu1 %v23_v14 }
  0x20   :  { %273 = vmatprep.subr.mxu0 %v22_v15  ;;  %302 = vmatprep.subr.mxu1 %v22_v15 }
  0x21   :  { %274 = vmatpush3.msra.mxu0 %v22_v15  ;;  %318 = vmatpush3.msra.mxu1 %v22_v15 }
  0x22   :  { %275 = vmatprep.mubr.f32.mxu0 %v14_v16  ;;  %281 = vmatprep.mubr.f32.mxu1 %v18_v17 }
  0x23   :  { %276 = vmatmul.mubr.f32.vlgmr.msra.gmra.mxu0 %v15_v18  ;;  %282 = vmatmul.mubr.f32.vlgmr.msra.gmra.mxu1 %v19_v19 }
  0x24   :  { %278 = vmatprep.mubr.f32.mxu0 %v16_v20  ;;  %284 = vmatprep.mubr.f32.mxu1 %v20_v21 }
  0x27   :  { %279 = vmatmul.mubr.f32.gmra.mxu0 %v17_v22  ;;  %285 = vmatmul.mubr.f32.gmra.mxu1 %v21_v23 }
  0xe3   :  { %v277_v25 = vpop.f32.mrf.mxu0  ;;  %v283_v26 = vpop.f32.mrf.mxu1 }
  0xe4   :  { %v117_v27 = vadd.f32 %v277_v25, %v210_v24  ;;  %v137_v28 = vadd.f32 %v283_v26, %v210_v24 }
  0xe5   :  { %v111_v29 = vpop.f32.mrf.mxu0  ;;  %v131_v30 = vpop.f32.mrf.mxu1 }
  0xe6   :  { %v212_v31 = vmul.f32 -1.442695, %v117_v27  ;;  %v216_v32 = vmul.f32 -1.442695, %v137_v28  ;;  %v112_v33 = vadd.f32 %v210_v24, %v111_v29  ;;  %v132_v34 = vadd.f32 %v210_v24, %v131_v30 }
  0xe7   :  { %v280_v35 = vpop.f32.mrf.mxu0  ;;  %v286_v36 = vpop.f32.mrf.mxu1 }
  0xe8   :  { %319 = vpow2.f32 %v212_v31  ;;  %v211_v37 = vmul.f32 -1.442695, %v112_v33  ;;  %v215_v38 = vmul.f32 -1.442695, %v132_v34  ;;  %v127_v39 = vadd.f32 %v280_v35, %v210_v24 }
  0xe9   :  { %321 = vpow2.f32 %v216_v32  ;;  %v147_v40 = vadd.f32 %v286_v36, %v210_v24  ;;  %v121_v41 = vpop.f32.mrf.mxu0  ;;  %v141_v42 = vpop.f32.mrf.mxu1 }
  0xea   :  { %323 = vpow2.f32 %v211_v37  ;;  %v214_v43 = vmul.f32 -1.442695, %v127_v39  ;;  %v122_v44 = vadd.f32 %v210_v24, %v121_v41  ;;  %v142_v45 = vadd.f32 %v210_v24, %v141_v42 }
  0xeb   :  { %325 = vpow2.f32 %v215_v38  ;;  %v218_v46 = vmul.f32 -1.442695, %v147_v40 }
  0xec   :  { %327 = vpow2.f32 %v214_v43  ;;  %v213_v47 = vmul.f32 -1.442695, %v122_v44  ;;  %v217_v48 = vmul.f32 -1.442695, %v142_v45 }
  0xed   :  { %329 = vpow2.f32 %v218_v46 }
  0xee   :  { %331 = vpow2.f32 %v213_v47 }
  0xef   :  { %333 = vpow2.f32 %v217_v48 }
  0xf5   :  { %v320_v49 = vpop.eup %319 }
  0xf6   :  { %v322_v50 = vpop.eup %321  ;;  %v175_v51 = vadd.f32 1.0, %v320_v49 }
  0xf7   :  { %v324_v52 = vpop.eup %323  ;;  %v179_v53 = vadd.f32 1.0, %v322_v50 }
  0xf8   :  { %v326_v54 = vpop.eup %325  ;;  %335 = vrcp.f32 %v175_v51  ;;  %v174_v55 = vadd.f32 1.0, %v324_v52 }
  0xf9   :  { %v328_v56 = vpop.eup %327  ;;  %337 = vrcp.f32 %v179_v53  ;;  %v178_v57 = vadd.f32 1.0, %v326_v54 }
  0xfa   :  { %v330_v58 = vpop.eup %329  ;;  %339 = vrcp.f32 %v174_v55  ;;  %v177_v59 = vadd.f32 1.0, %v328_v56 }
  0xfb   :  { %v332_v60 = vpop.eup %331  ;;  %341 = vrcp.f32 %v178_v57  ;;  %v181_v61 = vadd.f32 1.0, %v330_v58 }
  0xfc   :  { %v334_v62 = vpop.eup %333  ;;  %343 = vrcp.f32 %v177_v59  ;;  %v176_v63 = vadd.f32 1.0, %v332_v60 }
  0xfd   :  { %345 = vrcp.f32 %v181_v61  ;;  %v180_v0 = vadd.f32 1.0, %v334_v62 }
  0xfe   :  { %347 = vrcp.f32 %v176_v63 }
  0xff   :  { %349 = vrcp.f32 %v180_v0 }
 0x105   :  { %v336_v1 = vpop.eup %335 }
 0x106   :  { %v338_v2 = vpop.eup %337  ;;  %199 = vst [vmem:[%s473_s3 + $0x8] sm:$0xff] %v336_v1 }
 0x107   :  { %v340_v3 = vpop.eup %339  ;;  %203 = vst [vmem:[%s473_s3 + $0x28] sm:$0xff] %v338_v2 }
 0x108   :  { %v342_v4 = vpop.eup %341  ;;  %198 = vst [vmem:[%s473_s3] sm:$0xff] %v340_v3 }
 0x109   :  { %v344_v5 = vpop.eup %343  ;;  %202 = vst [vmem:[%s473_s3 + $0x20] sm:$0xff] %v342_v4 }
 0x10a   :  { %v346_v6 = vpop.eup %345  ;;  %201 = vst [vmem:[%s473_s3 + $0x18] sm:$0xff] %v344_v5 }
 0x10b   :  { %v348_v7 = vpop.eup %347  ;;  %205 = vst [vmem:[%s473_s3 + $0x38] sm:$0xff] %v346_v6 }
 0x10c   :  { %v350_v8 = vpop.eup %349  ;;  %200 = vst [vmem:[%s473_s3 + $0x10] sm:$0xff] %v348_v7 }
 0x10d   :  { %204 = vst [vmem:[%s473_s3 + $0x30] sm:$0xff] %v350_v8 }

// kernel: _lambda_.5
= control target key start
LH: loop header
LB: loop body
LE: loop exit
PB: predicated region body
PF: predicated region fallthrough
CT: control target
= control target key end

     0   :  { %8 = vsyncpa [#allocation3], 0  ;;  %s442_s12 = smov [#allocation2]   ;;  %s596_s0 = inlined_call_operand.vmem [shape: f32[8,8,128], index: 0, kind: input, shape index: {}]   ;;  %s597_s1 = inlined_call_operand.hbm [shape: f32[128,384], index: 1, kind: input, shape index: {}]   ;;  %s598_s2 = inlined_call_operand.vmem [shape: f32[1,384], index: 2, kind: input, shape index: {}]   ;;  %s599_s3 = inlined_call_operand.vmem [shape: f32[8,8,384], index: 3, kind: output, shape index: {}]  }
   0x1   :  { %s16_s13 = sshll.u32 %s442_s12, 4  ;;  %s17_s13 = int_to_ptr.vmem [resolvable:$true] %s16_s13 }
   0x2   :  { %s428_s14 = scalar_lea.vmem %s17_s13, 6144  ;;  %p433_p1 = scmp.lt.s32.totalorder %s17_s13, %s17_s13 }
   0x3   :  { %p429_p0 = scmp.ne.s32.totalorder %s17_s13, %s428_s14  ;;  %p434_p2 = scmp.lt.s32.totalorder %s428_s14, %s428_s14 }
   0x5   :  { %p435_p3 = por %p434_p2, %p433_p1 }
   0x7   :  { %p436_p4 = pnand %p435_p3, %p429_p0 }
   0x9   :  { %439 = shalt.err (!%p436_p4)
}
   0xa   :  { %s443_s15 = smov 384   ;;  %s444_s16 = smov 24  }
   0xb   :  { %22 = dma.hbm_to_vmem [thread:$0]  %s597_s1, 6144, %s17_s13, [#allocation3], %s443_s15, %s443_s15, %s444_s16  }
   0xc   :  { %440 = dma.done.wait [#allocation3], 6144  }
   0xd   :  { %441 = vsyncadd [#allocation3], 4294961152  ;;  %v445_v0 = vmov 0.0   ;;  %v82_v1 = vld [vmem:[#allocation2 + $0x170] sm:$0xff]  ;;  %v81_v2 = vld [vmem:[#allocation2 + $0x168] sm:$0xff]  ;;  %v86_v57 = vlaneseq }
   0xe   :  { %165 = vmatprep.mubr.f32.mxu0 %v445_v0  ;;  %v79_v3 = vld [vmem:[#allocation2 + $0x158] sm:$0xff]  ;;  %101 = vmatprep.subr.mxu0 %v82_v1  ;;  %v78_v4 = vld [vmem:[#allocation2 + $0x150] sm:$0xff]  ;;  %v76_v5 = vld [vmem:[#allocation2 + $0x140] sm:$0xff] }
   0xf   :  { %102 = vmatpush1.msra.mxu0 %v81_v2  ;;  %v75_v6 = vld [vmem:[#allocation2 + $0x138] sm:$0xff]  ;;  %v73_v7 = vld [vmem:[#allocation2 + $0x128] sm:$0xff]  ;;  %v72_v8 = vld [vmem:[#allocation2 + $0x120] sm:$0xff]  ;;  %v87_v58 = vshrl.u32 %v86_v57, 7 }
  0x10   :  { %103 = vmatprep.subr.mxu0 %v79_v3  ;;  %v83_v9 = vld [vmem:[#allocation2 + $0x178] sm:$0xff]  ;;  %v70_v10 = vld [vmem:[#allocation2 + $0x110] sm:$0xff]  ;;  %v80_v11 = vld [vmem:[#allocation2 + $0x160] sm:$0xff] }
  0x11   :  { %104 = vmatpush1.msra.mxu0 %v78_v4  ;;  %372 = vmatprep.subr.mxu1 %v83_v9  ;;  %v69_v12 = vld [vmem:[#allocation2 + $0x108] sm:$0xff]  ;;  %v67_v14 = vld [vmem:[#allocation2 + $0xf8] sm:$0xff]  ;;  %v66_v15 = vld [vmem:[#allocation2 + $0xf0] sm:$0xff]  ;;  %v88_v59 = vsub.s32 0, %v87_v58  ;;  %v92_v61 = vsub.s32 1, %v87_v58  ;;  %v96_v63 = vsub.s32 2, %v87_v58 }
  0x12   :  { %105 = vmatprep.subr.mxu0 %v76_v5  ;;  %373 = vmatpush3.msra.mxu1 %v83_v9  ;;  %v77_v13 = vld [vmem:[#allocation2 + $0x148] sm:$0xff]  ;;  %v74_v16 = vld [vmem:[#allocation2 + $0x130] sm:$0xff]  ;;  %v64_v17 = vld [vmem:[#allocation2 + $0xe0] sm:$0xff] }
  0x13   :  { %106 = vmatpush1.msra.mxu0 %v75_v6  ;;  %374 = vmatprep.subr.mxu1 %v80_v11  ;;  %v63_v18 = vld [vmem:[#allocation2 + $0xd8] sm:$0xff]  ;;  %v61_v20 = vld [vmem:[#allocation2 + $0xc8] sm:$0xff]  ;;  %v60_v21 = vld [vmem:[#allocation2 + $0xc0] sm:$0xff] }
  0x14   :  { %107 = vmatprep.subr.mxu0 %v73_v7  ;;  %375 = vmatpush3.msra.mxu1 %v80_v11  ;;  %v71_v19 = vld [vmem:[#allocation2 + $0x118] sm:$0xff]  ;;  %v68_v22 = vld [vmem:[#allocation2 + $0x100] sm:$0xff]  ;;  %v58_v23 = vld [vmem:[#allocation2 + $0xb0] sm:$0xff] }
  0x15   :  { %108 = vmatpush1.msra.mxu0 %v72_v8  ;;  %376 = vmatprep.subr.mxu1 %v77_v13  ;;  %v57_v24 = vld [vmem:[#allocation2 + $0xa8] sm:$0xff]  ;;  %v55_v26 = vld [vmem:[#allocation2 + $0x98] sm:$0xff]  ;;  %v54_v27 = vld [vmem:[#allocation2 + $0x90] sm:$0xff] }
  0x16   :  { %109 = vmatprep.subr.mxu0 %v70_v10  ;;  %377 = vmatpush3.msra.mxu1 %v77_v13  ;;  %v65_v25 = vld [vmem:[#allocation2 + $0xe8] sm:$0xff]  ;;  %v62_v28 = vld [vmem:[#allocation2 + $0xd0] sm:$0xff]  ;;  %v52_v29 = vld [vmem:[#allocation2 + $0x80] sm:$0xff] }
  0x17   :  { %110 = vmatpush1.msra.mxu0 %v69_v12  ;;  %378 = vmatprep.subr.mxu1 %v74_v16  ;;  %v51_v30 = vld [vmem:[#allocation2 + $0x78] sm:$0xff]  ;;  %v49_v32 = vld [vmem:[#allocation2 + $0x68] sm:$0xff]  ;;  %v48_v33 = vld [vmem:[#allocation2 + $0x60] sm:$0xff] }
  0x18   :  { %111 = vmatprep.subr.mxu0 %v67_v14  ;;  %379 = vmatpush3.msra.mxu1 %v74_v16  ;;  %v59_v31 = vld [vmem:[#allocation2 + $0xb8] sm:$0xff]  ;;  %v56_v34 = vld [vmem:[#allocation2 + $0xa0] sm:$0xff]  ;;  %v46_v35 = vld [vmem:[#allocation2 + $0x50] sm:$0xff] }
  0x19   :  { %112 = vmatpush1.msra.mxu0 %v66_v15  ;;  %380 = vmatprep.subr.mxu1 %v71_v19  ;;  %v45_v36 = vld [vmem:[#allocation2 + $0x48] sm:$0xff]  ;;  %v43_v38 = vld [vmem:[#allocation2 + $0x38] sm:$0xff]  ;;  %v42_v39 = vld [vmem:[#allocation2 + $0x30] sm:$0xff] }
  0x1a   :  { %113 = vmatprep.subr.mxu0 %v64_v17  ;;  %381 = vmatpush3.msra.mxu1 %v71_v19  ;;  %v53_v37 = vld [vmem:[#allocation2 + $0x88] sm:$0xff]  ;;  %v50_v40 = vld [vmem:[#allocation2 + $0x70] sm:$0xff]  ;;  %v40_v41 = vld [vmem:[#allocation2 + $0x20] sm:$0xff] }
  0x1b   :  { %114 = vmatpush1.msra.mxu0 %v63_v18  ;;  %382 = vmatprep.subr.mxu1 %v68_v22  ;;  %v39_v42 = vld [vmem:[#allocation2 + $0x18] sm:$0xff]  ;;  %v37_v44 = vld [vmem:[#allocation2 + $0x8] sm:$0xff]  ;;  %v36_v45 = vld [vmem:[#allocation2] sm:$0xff] }
  0x1c   :  { %115 = vmatprep.subr.mxu0 %v61_v20  ;;  %383 = vmatpush3.msra.mxu1 %v68_v22  ;;  %v47_v43 = vld [vmem:[#allocation2 + $0x58] sm:$0xff]  ;;  %v44_v46 = vld [vmem:[#allocation2 + $0x40] sm:$0xff]  ;;  %v41_v48 = vld [vmem:[#allocation2 + $0x28] sm:$0xff] }
  0x1d   :  { %116 = vmatpush1.msra.mxu0 %v60_v21  ;;  %384 = vmatprep.subr.mxu1 %v65_v25  ;;  %v28_v47 = vld [vmem:[%s596_s0] sm:$0xff]  ;;  %v38_v49 = vld [vmem:[#allocation2 + $0x10] sm:$0xff]  ;;  %v29_v50 = vld [vmem:[%s596_s0 + $0x8] sm:$0xff] }
  0x1e   :  { %117 = vmatprep.subr.mxu0 %v58_v23  ;;  %385 = vmatpush3.msra.mxu1 %v65_v25  ;;  %v30_v51 = vld [vmem:[%s596_s0 + $0x10] sm:$0xff]  ;;  %v31_v52 = vld [vmem:[%s596_s0 + $0x18] sm:$0xff]  ;;  %v32_v53 = vld [vmem:[%s596_s0 + $0x20] sm:$0xff] }
  0x1f   :  { %118 = vmatpush1.msra.mxu0 %v57_v24  ;;  %386 = vmatprep.subr.mxu1 %v62_v28  ;;  %v34_v54 = vld [vmem:[%s596_s0 + $0x30] sm:$0xff]  ;;  %v33_v55 = vld [vmem:[%s596_s0 + $0x28] sm:$0xff]  ;;  %v35_v56 = vld [vmem:[%s596_s0 + $0x38] sm:$0xff] }
  0x20   :  { %119 = vmatprep.subr.mxu0 %v55_v26  ;;  %387 = vmatpush3.msra.mxu1 %v62_v28  ;;  %v84_v60 = vld [vmem:[%s598_s2] sm:$0x7] }
  0x21   :  { %120 = vmatpush1.msra.mxu0 %v54_v27  ;;  %388 = vmatprep.subr.mxu1 %v59_v31  ;;  %v504_v62 = vrot.slane %v84_v60, %v88_v59  ;;  %v506_v1 = vrot.slane %v84_v60, %v92_v61  ;;  %v97_v5 = vrot.slane %v84_v60, %v96_v63 }
  0x22   :  { %121 = vmatprep.subr.mxu0 %v52_v29  ;;  %389 = vmatpush3.msra.mxu1 %v59_v31 }
  0x23   :  { %122 = vmatpush1.msra.mxu0 %v51_v30  ;;  %390 = vmatprep.subr.mxu1 %v56_v34 }
  0x24   :  { %123 = vmatprep.subr.mxu0 %v49_v32  ;;  %391 = vmatpush3.msra.mxu1 %v56_v34 }
  0x25   :  { %124 = vmatpush1.msra.mxu0 %v48_v33  ;;  %392 = vmatprep.subr.mxu1 %v53_v37 }
  0x26   :  { %125 = vmatprep.subr.mxu0 %v46_v35  ;;  %393 = vmatpush3.msra.mxu1 %v53_v37 }
  0x27   :  { %126 = vmatpush1.msra.mxu0 %v45_v36  ;;  %394 = vmatprep.subr.mxu1 %v50_v40 }
  0x28   :  { %127 = vmatprep.subr.mxu0 %v43_v38  ;;  %395 = vmatpush3.msra.mxu1 %v50_v40 }
  0x29   :  { %128 = vmatpush1.msra.mxu0 %v42_v39  ;;  %396 = vmatprep.subr.mxu1 %v47_v43 }
  0x2a   :  { %129 = vmatprep.subr.mxu0 %v40_v41  ;;  %397 = vmatpush3.msra.mxu1 %v47_v43 }
  0x2b   :  { %130 = vmatpush1.msra.mxu0 %v39_v42  ;;  %398 = vmatprep.subr.mxu1 %v44_v46 }
  0x2c   :  { %131 = vmatprep.subr.mxu0 %v37_v44  ;;  %399 = vmatpush3.msra.mxu1 %v44_v46 }
  0x2d   :  { %132 = vmatpush1.msra.mxu0 %v36_v45  ;;  %400 = vmatprep.subr.mxu1 %v41_v48 }
  0x2e   :  { %166 = vmatmul.mubr.f32.vlgmr.msra.gmra.mxu0 %v28_v47  ;;  %401 = vmatpush3.msra.mxu1 %v41_v48 }
  0x2f   :  { %171 = vmatprep.mubr.f32.mxu0 %v445_v0  ;;  %404 = vmatprep.mubr.f32.mxu1 %v28_v47 }
  0x30   :  { %402 = vmatprep.subr.mxu1 %v38_v49 }
  0x31   :  { %403 = vmatpush3.msra.mxu1 %v38_v49 }
  0x32   :  { %172 = vmatmul.mubr.f32.gmra.mxu0 %v29_v50  ;;  %405 = vmatmul.mubr.f32.vlgmr.msra.gmra.mxu1 %v29_v50 }
  0x33   :  { %177 = vmatprep.mubr.f32.mxu0 %v445_v0  ;;  %407 = vmatprep.mubr.f32.mxu1 %v30_v51 }
  0x36   :  { %178 = vmatmul.mubr.f32.gmra.mxu0 %v30_v51  ;;  %408 = vmatmul.mubr.f32.gmra.mxu1 %v31_v52 }
  0x37   :  { %183 = vmatprep.mubr.f32.mxu0 %v445_v0  ;;  %410 = vmatprep.mubr.f32.mxu1 %v32_v53 }
  0x3a   :  { %184 = vmatmul.mubr.f32.gmra.mxu0 %v31_v52  ;;  %411 = vmatmul.mubr.f32.gmra.mxu1 %v33_v55 }
  0x3b   :  { %189 = vmatprep.mubr.f32.mxu0 %v445_v0  ;;  %413 = vmatprep.mubr.f32.mxu1 %v34_v54 }
  0x3e   :  { %190 = vmatmul.mubr.f32.gmra.mxu0 %v32_v53  ;;  %414 = vmatmul.mubr.f32.gmra.mxu1 %v35_v56 }
  0x3f   :  { %195 = vmatprep.mubr.f32.mxu0 %v445_v0 }
  0x42   :  { %196 = vmatmul.mubr.f32.gmra.mxu0 %v33_v55 }
  0x43   :  { %201 = vmatprep.mubr.f32.mxu0 %v445_v0 }
  0x46   :  { %202 = vmatmul.mubr.f32.gmra.mxu0 %v34_v54 }
  0x47   :  { %207 = vmatprep.mubr.f32.mxu0 %v445_v0 }
  0x4a   :  { %208 = vmatmul.mubr.f32.gmra.mxu0 %v35_v56 }
  0xee   :  { %v167_v2 = vpop.f32.mrf.mxu0 }
  0xef   :  { %v168_v3 = vadd.f32 %v167_v2, %v504_v62 }
  0xf0   :  { %v169_v4 = vpop.f32.mrf.mxu0 }
  0xf1   :  { %319 = vst [vmem:[%s599_s3] sm:$0xff] %v168_v3  ;;  %v170_v0 = vadd.f32 %v169_v4, %v506_v1 }
  0xf2   :  { %v173_v6 = vpop.f32.mrf.mxu0  ;;  %v406_v8 = vpop.f32.mrf.mxu1 }
  0xf3   :  { %320 = vst [vmem:[%s599_s3 + $0x8] sm:$0xff] %v170_v0  ;;  %v174_v7 = vadd.f32 %v173_v6, %v504_v62  ;;  %v286_v10 = vadd.f32 %v406_v8, %v97_v5 }
  0xf4   :  { %v175_v9 = vpop.f32.mrf.mxu0  ;;  %v280_v12 = vpop.f32.mrf.mxu1 }
  0xf5   :  { %322 = vst [vmem:[%s599_s3 + $0x18] sm:$0xff] %v174_v7  ;;  %v176_v11 = vadd.f32 %v175_v9, %v506_v1  ;;  %324 = vst [vmem:[%s599_s3 + $0x28] sm:$0xff] %v286_v10  ;;  %v281_v14 = vadd.f32 %v280_v12, %v97_v5 }
  0xf6   :  { %v179_v13 = vpop.f32.mrf.mxu0  ;;  %v409_v16 = vpop.f32.mrf.mxu1 }
  0xf7   :  { %323 = vst [vmem:[%s599_s3 + $0x20] sm:$0xff] %v176_v11  ;;  %v180_v15 = vadd.f32 %v179_v13, %v504_v62  ;;  %321 = vst [vmem:[%s599_s3 + $0x10] sm:$0xff] %v281_v14  ;;  %v296_v18 = vadd.f32 %v409_v16, %v97_v5 }
  0xf8   :  { %v181_v17 = vpop.f32.mrf.mxu0  ;;  %v290_v20 = vpop.f32.mrf.mxu1 }
  0xf9   :  { %325 = vst [vmem:[%s599_s3 + $0x30] sm:$0xff] %v180_v15  ;;  %v182_v19 = vadd.f32 %v181_v17, %v506_v1  ;;  %330 = vst [vmem:[%s599_s3 + $0x58] sm:$0xff] %v296_v18  ;;  %v291_v22 = vadd.f32 %v290_v20, %v97_v5 }
  0xfa   :  { %v185_v21 = vpop.f32.mrf.mxu0  ;;  %v412_v24 = vpop.f32.mrf.mxu1 }
  0xfb   :  { %326 = vst [vmem:[%s599_s3 + $0x38] sm:$0xff] %v182_v19  ;;  %v186_v23 = vadd.f32 %v185_v21, %v504_v62  ;;  %327 = vst [vmem:[%s599_s3 + $0x40] sm:$0xff] %v291_v22  ;;  %v306_v26 = vadd.f32 %v412_v24, %v97_v5 }
  0xfc   :  { %v187_v25 = vpop.f32.mrf.mxu0  ;;  %v300_v28 = vpop.f32.mrf.mxu1 }
  0xfd   :  { %328 = vst [vmem:[%s599_s3 + $0x48] sm:$0xff] %v186_v23  ;;  %v188_v27 = vadd.f32 %v187_v25, %v506_v1  ;;  %336 = vst [vmem:[%s599_s3 + $0x88] sm:$0xff] %v306_v26  ;;  %v301_v30 = vadd.f32 %v300_v28, %v97_v5 }
  0xfe   :  { %v191_v29 = vpop.f32.mrf.mxu0  ;;  %v415_v32 = vpop.f32.mrf.mxu1 }
  0xff   :  { %329 = vst [vmem:[%s599_s3 + $0x50] sm:$0xff] %v188_v27  ;;  %v192_v31 = vadd.f32 %v191_v29, %v504_v62  ;;  %333 = vst [vmem:[%s599_s3 + $0x70] sm:$0xff] %v301_v30  ;;  %v316_v34 = vadd.f32 %v415_v32, %v97_v5 }
 0x100   :  { %v193_v33 = vpop.f32.mrf.mxu0  ;;  %v310_v36 = vpop.f32.mrf.mxu1 }
 0x101   :  { %331 = vst [vmem:[%s599_s3 + $0x60] sm:$0xff] %v192_v31  ;;  %v194_v35 = vadd.f32 %v193_v33, %v506_v1  ;;  %342 = vst [vmem:[%s599_s3 + $0xb8] sm:$0xff] %v316_v34  ;;  %v311_v38 = vadd.f32 %v310_v36, %v97_v5 }
 0x102   :  { %v197_v37 = vpop.f32.mrf.mxu0 }
 0x103   :  { %332 = vst [vmem:[%s599_s3 + $0x68] sm:$0xff] %v194_v35  ;;  %v198_v39 = vadd.f32 %v197_v37, %v504_v62  ;;  %339 = vst [vmem:[%s599_s3 + $0xa0] sm:$0xff] %v311_v38 }
 0x104   :  { %v199_v40 = vpop.f32.mrf.mxu0 }
 0x105   :  { %334 = vst [vmem:[%s599_s3 + $0x78] sm:$0xff] %v198_v39  ;;  %v200_v41 = vadd.f32 %v199_v40, %v506_v1 }
 0x106   :  { %v203_v42 = vpop.f32.mrf.mxu0 }
 0x107   :  { %335 = vst [vmem:[%s599_s3 + $0x80] sm:$0xff] %v200_v41  ;;  %v204_v43 = vadd.f32 %v203_v42, %v504_v62 }
 0x108   :  { %v205_v44 = vpop.f32.mrf.mxu0 }
 0x109   :  { %337 = vst [vmem:[%s599_s3 + $0x90] sm:$0xff] %v204_v43  ;;  %v206_v45 = vadd.f32 %v205_v44, %v506_v1 }
 0x10a   :  { %v209_v46 = vpop.f32.mrf.mxu0 }
 0x10b   :  { %338 = vst [vmem:[%s599_s3 + $0x98] sm:$0xff] %v206_v45  ;;  %v210_v47 = vadd.f32 %v209_v46, %v504_v62 }
 0x10c   :  { %v211_v48 = vpop.f32.mrf.mxu0 }
 0x10d   :  { %340 = vst [vmem:[%s599_s3 + $0xa8] sm:$0xff] %v210_v47  ;;  %v212_v49 = vadd.f32 %v211_v48, %v506_v1 }
 0x10f   :  { %341 = vst [vmem:[%s599_s3 + $0xb0] sm:$0xff] %v212_v49 }
 0x110   :  { %347 = vsyncpa [#allocation3], 1 }

// kernel: _lambda_.7
= control target key start
LH: loop header
LB: loop body
LE: loop exit
PB: predicated region body
PF: predicated region fallthrough
CT: control target
= control target key end

     0   :  { %v402_v3 = vmov 0.0   ;;  %v72_v57 = vlaneseq  ;;  %s694_s1 = inlined_call_operand.vmem [shape: f32[128,384], index: 1, kind: input, shape index: {}]   ;;  %s695_s0 = inlined_call_operand.vmem [shape: f32[8,8,128], index: 0, kind: input, shape index: {}]   ;;  %s696_s2 = inlined_call_operand.vmem [shape: f32[1,384], index: 2, kind: input, shape index: {}]   ;;  %s697_s3 = inlined_call_operand.vmem [shape: f32[8,8,384], index: 3, kind: output, shape index: {}]  }
   0x1   :  { %v68_v0 = vld [vmem:[%s694_s1 + $0x170] sm:$0xff]  ;;  %v67_v1 = vld [vmem:[%s694_s1 + $0x168] sm:$0xff]  ;;  %v65_v2 = vld [vmem:[%s694_s1 + $0x158] sm:$0xff]  ;;  %151 = vmatprep.mubr.f32.mxu0 %v402_v3 }
   0x2   :  { %87 = vmatprep.subr.mxu0 %v68_v0  ;;  %v64_v4 = vld [vmem:[%s694_s1 + $0x150] sm:$0xff]  ;;  %v62_v5 = vld [vmem:[%s694_s1 + $0x140] sm:$0xff]  ;;  %v61_v6 = vld [vmem:[%s694_s1 + $0x138] sm:$0xff]  ;;  %v73_v58 = vshrl.u32 %v72_v57, 7 }
   0x3   :  { %88 = vmatpush1.msra.mxu0 %v67_v1  ;;  %v59_v7 = vld [vmem:[%s694_s1 + $0x128] sm:$0xff]  ;;  %v58_v8 = vld [vmem:[%s694_s1 + $0x120] sm:$0xff]  ;;  %v69_v9 = vld [vmem:[%s694_s1 + $0x178] sm:$0xff] }
   0x4   :  { %89 = vmatprep.subr.mxu0 %v65_v2  ;;  %v56_v10 = vld [vmem:[%s694_s1 + $0x110] sm:$0xff]  ;;  %357 = vmatprep.subr.mxu1 %v69_v9  ;;  %v66_v11 = vld [vmem:[%s694_s1 + $0x160] sm:$0xff]  ;;  %v55_v12 = vld [vmem:[%s694_s1 + $0x108] sm:$0xff]  ;;  %v74_v59 = vsub.s32 0, %v73_v58  ;;  %v78_v61 = vsub.s32 1, %v73_v58  ;;  %v82_v63 = vsub.s32 2, %v73_v58 }
   0x5   :  { %90 = vmatpush1.msra.mxu0 %v64_v4  ;;  %358 = vmatpush3.msra.mxu1 %v69_v9  ;;  %v63_v13 = vld [vmem:[%s694_s1 + $0x148] sm:$0xff]  ;;  %v53_v14 = vld [vmem:[%s694_s1 + $0xf8] sm:$0xff]  ;;  %v52_v15 = vld [vmem:[%s694_s1 + $0xf0] sm:$0xff] }
   0x6   :  { %91 = vmatprep.subr.mxu0 %v62_v5  ;;  %359 = vmatprep.subr.mxu1 %v66_v11  ;;  %v60_v16 = vld [vmem:[%s694_s1 + $0x130] sm:$0xff]  ;;  %v50_v17 = vld [vmem:[%s694_s1 + $0xe0] sm:$0xff]  ;;  %v49_v18 = vld [vmem:[%s694_s1 + $0xd8] sm:$0xff] }
   0x7   :  { %92 = vmatpush1.msra.mxu0 %v61_v6  ;;  %360 = vmatpush3.msra.mxu1 %v66_v11  ;;  %v57_v19 = vld [vmem:[%s694_s1 + $0x118] sm:$0xff]  ;;  %v47_v20 = vld [vmem:[%s694_s1 + $0xc8] sm:$0xff]  ;;  %v46_v21 = vld [vmem:[%s694_s1 + $0xc0] sm:$0xff] }
   0x8   :  { %93 = vmatprep.subr.mxu0 %v59_v7  ;;  %361 = vmatprep.subr.mxu1 %v63_v13  ;;  %v54_v22 = vld [vmem:[%s694_s1 + $0x100] sm:$0xff]  ;;  %v44_v23 = vld [vmem:[%s694_s1 + $0xb0] sm:$0xff]  ;;  %v43_v24 = vld [vmem:[%s694_s1 + $0xa8] sm:$0xff] }
   0x9   :  { %94 = vmatpush1.msra.mxu0 %v58_v8  ;;  %362 = vmatpush3.msra.mxu1 %v63_v13  ;;  %v51_v25 = vld [vmem:[%s694_s1 + $0xe8] sm:$0xff]  ;;  %v41_v26 = vld [vmem:[%s694_s1 + $0x98] sm:$0xff]  ;;  %v40_v27 = vld [vmem:[%s694_s1 + $0x90] sm:$0xff] }
   0xa   :  { %95 = vmatprep.subr.mxu0 %v56_v10  ;;  %363 = vmatprep.subr.mxu1 %v60_v16  ;;  %v48_v28 = vld [vmem:[%s694_s1 + $0xd0] sm:$0xff]  ;;  %v38_v29 = vld [vmem:[%s694_s1 + $0x80] sm:$0xff]  ;;  %v37_v30 = vld [vmem:[%s694_s1 + $0x78] sm:$0xff] }
   0xb   :  { %96 = vmatpush1.msra.mxu0 %v55_v12  ;;  %364 = vmatpush3.msra.mxu1 %v60_v16  ;;  %v45_v31 = vld [vmem:[%s694_s1 + $0xb8] sm:$0xff]  ;;  %v35_v32 = vld [vmem:[%s694_s1 + $0x68] sm:$0xff]  ;;  %v34_v33 = vld [vmem:[%s694_s1 + $0x60] sm:$0xff] }
   0xc   :  { %97 = vmatprep.subr.mxu0 %v53_v14  ;;  %365 = vmatprep.subr.mxu1 %v57_v19  ;;  %v42_v34 = vld [vmem:[%s694_s1 + $0xa0] sm:$0xff]  ;;  %v32_v35 = vld [vmem:[%s694_s1 + $0x50] sm:$0xff]  ;;  %v31_v36 = vld [vmem:[%s694_s1 + $0x48] sm:$0xff] }
   0xd   :  { %98 = vmatpush1.msra.mxu0 %v52_v15  ;;  %366 = vmatpush3.msra.mxu1 %v57_v19  ;;  %v39_v37 = vld [vmem:[%s694_s1 + $0x88] sm:$0xff]  ;;  %v29_v38 = vld [vmem:[%s694_s1 + $0x38] sm:$0xff]  ;;  %v28_v39 = vld [vmem:[%s694_s1 + $0x30] sm:$0xff] }
   0xe   :  { %99 = vmatprep.subr.mxu0 %v50_v17  ;;  %367 = vmatprep.subr.mxu1 %v54_v22  ;;  %v36_v40 = vld [vmem:[%s694_s1 + $0x70] sm:$0xff]  ;;  %v26_v41 = vld [vmem:[%s694_s1 + $0x20] sm:$0xff]  ;;  %v25_v42 = vld [vmem:[%s694_s1 + $0x18] sm:$0xff] }
   0xf   :  { %100 = vmatpush1.msra.mxu0 %v49_v18  ;;  %368 = vmatpush3.msra.mxu1 %v54_v22  ;;  %v33_v43 = vld [vmem:[%s694_s1 + $0x58] sm:$0xff]  ;;  %v23_v44 = vld [vmem:[%s694_s1 + $0x8] sm:$0xff]  ;;  %v22_v45 = vld [vmem:[%s694_s1] sm:$0xff] }
  0x10   :  { %101 = vmatprep.subr.mxu0 %v47_v20  ;;  %369 = vmatprep.subr.mxu1 %v51_v25  ;;  %v30_v46 = vld [vmem:[%s694_s1 + $0x40] sm:$0xff]  ;;  %v27_v48 = vld [vmem:[%s694_s1 + $0x28] sm:$0xff]  ;;  %v24_v49 = vld [vmem:[%s694_s1 + $0x10] sm:$0xff] }
  0x11   :  { %102 = vmatpush1.msra.mxu0 %v46_v21  ;;  %370 = vmatpush3.msra.mxu1 %v51_v25  ;;  %v14_v47 = vld [vmem:[%s695_s0] sm:$0xff]  ;;  %v15_v50 = vld [vmem:[%s695_s0 + $0x8] sm:$0xff]  ;;  %v16_v51 = vld [vmem:[%s695_s0 + $0x10] sm:$0xff] }
  0x12   :  { %103 = vmatprep.subr.mxu0 %v44_v23  ;;  %371 = vmatprep.subr.mxu1 %v48_v28  ;;  %v17_v52 = vld [vmem:[%s695_s0 + $0x18] sm:$0xff]  ;;  %v18_v53 = vld [vmem:[%s695_s0 + $0x20] sm:$0xff]  ;;  %v20_v54 = vld [vmem:[%s695_s0 + $0x30] sm:$0xff] }
  0x13   :  { %104 = vmatpush1.msra.mxu0 %v43_v24  ;;  %372 = vmatpush3.msra.mxu1 %v48_v28  ;;  %v19_v55 = vld [vmem:[%s695_s0 + $0x28] sm:$0xff]  ;;  %v21_v56 = vld [vmem:[%s695_s0 + $0x38] sm:$0xff]  ;;  %v70_v60 = vld [vmem:[%s696_s2] sm:$0x7] }
  0x14   :  { %105 = vmatprep.subr.mxu0 %v41_v26  ;;  %373 = vmatprep.subr.mxu1 %v45_v31  ;;  %v602_v62 = vrot.slane %v70_v60, %v74_v59  ;;  %v604_v0 = vrot.slane %v70_v60, %v78_v61  ;;  %v83_v5 = vrot.slane %v70_v60, %v82_v63 }
  0x15   :  { %106 = vmatpush1.msra.mxu0 %v40_v27  ;;  %374 = vmatpush3.msra.mxu1 %v45_v31 }
  0x16   :  { %107 = vmatprep.subr.mxu0 %v38_v29  ;;  %375 = vmatprep.subr.mxu1 %v42_v34 }
  0x17   :  { %108 = vmatpush1.msra.mxu0 %v37_v30  ;;  %376 = vmatpush3.msra.mxu1 %v42_v34 }
  0x18   :  { %109 = vmatprep.subr.mxu0 %v35_v32  ;;  %377 = vmatprep.subr.mxu1 %v39_v37 }
  0x19   :  { %110 = vmatpush1.msra.mxu0 %v34_v33  ;;  %378 = vmatpush3.msra.mxu1 %v39_v37 }
  0x1a   :  { %111 = vmatprep.subr.mxu0 %v32_v35  ;;  %379 = vmatprep.subr.mxu1 %v36_v40 }
  0x1b   :  { %112 = vmatpush1.msra.mxu0 %v31_v36  ;;  %380 = vmatpush3.msra.mxu1 %v36_v40 }
  0x1c   :  { %113 = vmatprep.subr.mxu0 %v29_v38  ;;  %381 = vmatprep.subr.mxu1 %v33_v43 }
  0x1d   :  { %114 = vmatpush1.msra.mxu0 %v28_v39  ;;  %382 = vmatpush3.msra.mxu1 %v33_v43 }
  0x1e   :  { %115 = vmatprep.subr.mxu0 %v26_v41  ;;  %383 = vmatprep.subr.mxu1 %v30_v46 }
  0x1f   :  { %116 = vmatpush1.msra.mxu0 %v25_v42  ;;  %384 = vmatpush3.msra.mxu1 %v30_v46 }
  0x20   :  { %117 = vmatprep.subr.mxu0 %v23_v44  ;;  %385 = vmatprep.subr.mxu1 %v27_v48 }
  0x21   :  { %118 = vmatpush1.msra.mxu0 %v22_v45  ;;  %386 = vmatpush3.msra.mxu1 %v27_v48 }
  0x22   :  { %152 = vmatmul.mubr.f32.vlgmr.msra.gmra.mxu0 %v14_v47  ;;  %389 = vmatprep.mubr.f32.mxu1 %v14_v47 }
  0x23   :  { %157 = vmatprep.mubr.f32.mxu0 %v402_v3  ;;  %387 = vmatprep.subr.mxu1 %v24_v49 }
  0x24   :  { %388 = vmatpush3.msra.mxu1 %v24_v49 }
  0x25   :  { %390 = vmatmul.mubr.f32.vlgmr.msra.gmra.mxu1 %v15_v50 }
  0x26   :  { %158 = vmatmul.mubr.f32.gmra.mxu0 %v15_v50  ;;  %392 = vmatprep.mubr.f32.mxu1 %v16_v51 }
  0x27   :  { %163 = vmatprep.mubr.f32.mxu0 %v402_v3 }
  0x29   :  { %393 = vmatmul.mubr.f32.gmra.mxu1 %v17_v52 }
  0x2a   :  { %164 = vmatmul.mubr.f32.gmra.mxu0 %v16_v51  ;;  %395 = vmatprep.mubr.f32.mxu1 %v18_v53 }
  0x2b   :  { %169 = vmatprep.mubr.f32.mxu0 %v402_v3 }
  0x2d   :  { %396 = vmatmul.mubr.f32.gmra.mxu1 %v19_v55 }
  0x2e   :  { %170 = vmatmul.mubr.f32.gmra.mxu0 %v17_v52  ;;  %398 = vmatprep.mubr.f32.mxu1 %v20_v54 }
  0x2f   :  { %175 = vmatprep.mubr.f32.mxu0 %v402_v3 }
  0x31   :  { %399 = vmatmul.mubr.f32.gmra.mxu1 %v21_v56 }
  0x32   :  { %176 = vmatmul.mubr.f32.gmra.mxu0 %v18_v53 }
  0x33   :  { %181 = vmatprep.mubr.f32.mxu0 %v402_v3 }
  0x36   :  { %182 = vmatmul.mubr.f32.gmra.mxu0 %v19_v55 }
  0x37   :  { %187 = vmatprep.mubr.f32.mxu0 %v402_v3 }
  0x3a   :  { %188 = vmatmul.mubr.f32.gmra.mxu0 %v20_v54 }
  0x3b   :  { %193 = vmatprep.mubr.f32.mxu0 %v402_v3 }
  0x3e   :  { %194 = vmatmul.mubr.f32.gmra.mxu0 %v21_v56 }
  0xe2   :  { %v153_v1 = vpop.f32.mrf.mxu0 }
  0xe3   :  { %v154_v2 = vadd.f32 %v153_v1, %v602_v62 }
  0xe4   :  { %v155_v4 = vpop.f32.mrf.mxu0 }
  0xe5   :  { %305 = vst [vmem:[%s697_s3] sm:$0xff] %v154_v2  ;;  %v156_v3 = vadd.f32 %v155_v4, %v604_v0  ;;  %v391_v8 = vpop.f32.mrf.mxu1 }
  0xe6   :  { %v159_v6 = vpop.f32.mrf.mxu0  ;;  %v272_v10 = vadd.f32 %v391_v8, %v83_v5 }
  0xe7   :  { %306 = vst [vmem:[%s697_s3 + $0x8] sm:$0xff] %v156_v3  ;;  %v160_v7 = vadd.f32 %v159_v6, %v602_v62  ;;  %v266_v12 = vpop.f32.mrf.mxu1 }
  0xe8   :  { %v161_v9 = vpop.f32.mrf.mxu0  ;;  %310 = vst [vmem:[%s697_s3 + $0x28] sm:$0xff] %v272_v10  ;;  %v267_v14 = vadd.f32 %v266_v12, %v83_v5 }
  0xe9   :  { %308 = vst [vmem:[%s697_s3 + $0x18] sm:$0xff] %v160_v7  ;;  %v162_v11 = vadd.f32 %v161_v9, %v604_v0  ;;  %v394_v16 = vpop.f32.mrf.mxu1 }
  0xea   :  { %v165_v13 = vpop.f32.mrf.mxu0  ;;  %307 = vst [vmem:[%s697_s3 + $0x10] sm:$0xff] %v267_v14  ;;  %v282_v18 = vadd.f32 %v394_v16, %v83_v5 }
  0xeb   :  { %309 = vst [vmem:[%s697_s3 + $0x20] sm:$0xff] %v162_v11  ;;  %v166_v15 = vadd.f32 %v165_v13, %v602_v62  ;;  %v276_v20 = vpop.f32.mrf.mxu1 }
  0xec   :  { %v167_v17 = vpop.f32.mrf.mxu0  ;;  %316 = vst [vmem:[%s697_s3 + $0x58] sm:$0xff] %v282_v18  ;;  %v277_v22 = vadd.f32 %v276_v20, %v83_v5 }
  0xed   :  { %311 = vst [vmem:[%s697_s3 + $0x30] sm:$0xff] %v166_v15  ;;  %v168_v19 = vadd.f32 %v167_v17, %v604_v0  ;;  %v397_v24 = vpop.f32.mrf.mxu1 }
  0xee   :  { %v171_v21 = vpop.f32.mrf.mxu0  ;;  %313 = vst [vmem:[%s697_s3 + $0x40] sm:$0xff] %v277_v22  ;;  %v292_v26 = vadd.f32 %v397_v24, %v83_v5 }
  0xef   :  { %312 = vst [vmem:[%s697_s3 + $0x38] sm:$0xff] %v168_v19  ;;  %v172_v23 = vadd.f32 %v171_v21, %v602_v62  ;;  %v286_v28 = vpop.f32.mrf.mxu1 }
  0xf0   :  { %v173_v25 = vpop.f32.mrf.mxu0  ;;  %322 = vst [vmem:[%s697_s3 + $0x88] sm:$0xff] %v292_v26  ;;  %v287_v30 = vadd.f32 %v286_v28, %v83_v5 }
  0xf1   :  { %314 = vst [vmem:[%s697_s3 + $0x48] sm:$0xff] %v172_v23  ;;  %v174_v27 = vadd.f32 %v173_v25, %v604_v0  ;;  %v400_v32 = vpop.f32.mrf.mxu1 }
  0xf2   :  { %v177_v29 = vpop.f32.mrf.mxu0  ;;  %319 = vst [vmem:[%s697_s3 + $0x70] sm:$0xff] %v287_v30  ;;  %v302_v34 = vadd.f32 %v400_v32, %v83_v5 }
  0xf3   :  { %315 = vst [vmem:[%s697_s3 + $0x50] sm:$0xff] %v174_v27  ;;  %v178_v31 = vadd.f32 %v177_v29, %v602_v62  ;;  %v296_v36 = vpop.f32.mrf.mxu1 }
  0xf4   :  { %v179_v33 = vpop.f32.mrf.mxu0  ;;  %328 = vst [vmem:[%s697_s3 + $0xb8] sm:$0xff] %v302_v34  ;;  %v297_v38 = vadd.f32 %v296_v36, %v83_v5 }
  0xf5   :  { %317 = vst [vmem:[%s697_s3 + $0x60] sm:$0xff] %v178_v31  ;;  %v180_v35 = vadd.f32 %v179_v33, %v604_v0 }
  0xf6   :  { %v183_v37 = vpop.f32.mrf.mxu0  ;;  %325 = vst [vmem:[%s697_s3 + $0xa0] sm:$0xff] %v297_v38 }
  0xf7   :  { %318 = vst [vmem:[%s697_s3 + $0x68] sm:$0xff] %v180_v35  ;;  %v184_v39 = vadd.f32 %v183_v37, %v602_v62 }
  0xf8   :  { %v185_v40 = vpop.f32.mrf.mxu0 }
  0xf9   :  { %320 = vst [vmem:[%s697_s3 + $0x78] sm:$0xff] %v184_v39  ;;  %v186_v41 = vadd.f32 %v185_v40, %v604_v0 }
  0xfa   :  { %v189_v42 = vpop.f32.mrf.mxu0 }
  0xfb   :  { %321 = vst [vmem:[%s697_s3 + $0x80] sm:$0xff] %v186_v41  ;;  %v190_v43 = vadd.f32 %v189_v42, %v602_v62 }
  0xfc   :  { %v191_v44 = vpop.f32.mrf.mxu0 }
  0xfd   :  { %323 = vst [vmem:[%s697_s3 + $0x90] sm:$0xff] %v190_v43  ;;  %v192_v45 = vadd.f32 %v191_v44, %v604_v0 }
  0xfe   :  { %v195_v46 = vpop.f32.mrf.mxu0 }
  0xff   :  { %324 = vst [vmem:[%s697_s3 + $0x98] sm:$0xff] %v192_v45  ;;  %v196_v47 = vadd.f32 %v195_v46, %v602_v62 }
 0x100   :  { %v197_v48 = vpop.f32.mrf.mxu0 }
 0x101   :  { %326 = vst [vmem:[%s697_s3 + $0xa8] sm:$0xff] %v196_v47  ;;  %v198_v49 = vadd.f32 %v197_v48, %v604_v0 }
 0x103   :  { %327 = vst [vmem:[%s697_s3 + $0xb0] sm:$0xff] %v198_v49 }

// kernel: _lambda_.6
= control target key start
LH: loop header
LB: loop body
LE: loop exit
PB: predicated region body
PF: predicated region fallthrough
CT: control target
= control target key end

     0   :  { %v3231_v3 = vmov 0.0   ;;  %vm2023_vm0 = vmmov 0   ;;  %v69_v49 = vlaneseq  ;;  %s3227_s1 = inlined_call_operand.vmem [shape: f32[128,384], index: 1, kind: input, shape index: {}]   ;;  %s3228_s2 = inlined_call_operand.vmem [shape: f32[1,384], index: 2, kind: input, shape index: {}]   ;;  %s3229_s0 = inlined_call_operand.vmem [shape: f32[8,8,384], index: 0, kind: input, shape index: {}]   ;;  %s3230_s3 = inlined_call_operand.vmem [shape: f32[8,8,128], index: 3, kind: output, shape index: {}]  }
   0x1   :  { %v2047_v0 = vld [vmem:[%s3227_s1 + $0x170] sm:$0xff]  ;;  %v2052_v1 = vld [vmem:[%s3227_s1 + $0x168] sm:$0xff]  ;;  %v2057_v2 = vld [vmem:[%s3227_s1 + $0x158] sm:$0xff]  ;;  %152 = vmatprep.mubr.f32.mxu0 %v3231_v3  ;;  %1612 = vmatprep.subr.mxu1 %v3231_v3 }
   0x2   :  { %3247 = vst [vmem:[#allocation3_spill] sm:$0xff] %v2047_v0  ;;  %88 = vmatprep.subr.mxu0 %v2047_v0  ;;  %v2065_v4 = vld [vmem:[%s3227_s1 + $0x150] sm:$0xff]  ;;  %1644 = vmatprep.mubr.msk.f32.mxu1 %vm2023_vm0, %v3231_v3  ;;  %v2073_v5 = vld [vmem:[%s3227_s1 + $0x140] sm:$0xff]  ;;  %v2079_v6 = vld [vmem:[%s3227_s1 + $0x138] sm:$0xff]  ;;  %v70_v50 = vshrl.u32 %v69_v49, 7 }
   0x3   :  { %89 = vmatpush1.msra.mxu0 %v2052_v1  ;;  %v2085_v7 = vld [vmem:[%s3227_s1 + $0x128] sm:$0xff]  ;;  %v2091_v8 = vld [vmem:[%s3227_s1 + $0x120] sm:$0xff]  ;;  %v2097_v9 = vld [vmem:[%s3227_s1 + $0x110] sm:$0xff] }
   0x4   :  { %90 = vmatprep.subr.mxu0 %v2057_v2  ;;  %v2103_v10 = vld [vmem:[%s3227_s1 + $0x108] sm:$0xff]  ;;  %v2109_v11 = vld [vmem:[%s3227_s1 + $0xf8] sm:$0xff]  ;;  %v2115_v12 = vld [vmem:[%s3227_s1 + $0xf0] sm:$0xff]  ;;  %v71_v51 = vsub.s32 0, %v70_v50  ;;  %v75_v54 = vsub.s32 1, %v70_v50 }
   0x5   :  { %91 = vmatpush1.msra.mxu0 %v2065_v4  ;;  %v2121_v13 = vld [vmem:[%s3227_s1 + $0xe0] sm:$0xff]  ;;  %v2126_v14 = vld [vmem:[%s3227_s1 + $0x178] sm:$0xff]  ;;  %v2144_v17 = vld [vmem:[%s3227_s1 + $0xc8] sm:$0xff] }
   0x6   :  { %92 = vmatprep.subr.mxu0 %v2073_v5  ;;  %v2132_v15 = vld [vmem:[%s3227_s1 + $0xd8] sm:$0xff]  ;;  %1613 = vmatpush3.msra.mxu1 %v2126_v14  ;;  %v2138_v16 = vld [vmem:[%s3227_s1 + $0x160] sm:$0xff]  ;;  %v2150_v18 = vld [vmem:[%s3227_s1 + $0x148] sm:$0xff] }
   0x7   :  { %93 = vmatpush1.msra.mxu0 %v2079_v6  ;;  %1614 = vmatprep.subr.mxu1 %v3231_v3  ;;  %v2156_v19 = vld [vmem:[%s3227_s1 + $0xc0] sm:$0xff]  ;;  %v2163_v20 = vld [vmem:[%s3227_s1 + $0xb0] sm:$0xff]  ;;  %v2175_v22 = vld [vmem:[%s3227_s1 + $0xa8] sm:$0xff] }
   0x8   :  { %94 = vmatprep.subr.mxu0 %v2085_v7  ;;  %1615 = vmatpush3.msra.mxu1 %v2138_v16  ;;  %v2169_v21 = vld [vmem:[%s3227_s1 + $0x130] sm:$0xff]  ;;  %v2182_v23 = vld [vmem:[%s3227_s1 + $0x98] sm:$0xff]  ;;  %v2201_v26 = vld [vmem:[%s3227_s1 + $0x80] sm:$0xff] }
   0x9   :  { %95 = vmatpush1.msra.mxu0 %v2091_v8  ;;  %1616 = vmatprep.subr.mxu1 %v3231_v3  ;;  %v2188_v24 = vld [vmem:[%s3227_s1 + $0x118] sm:$0xff]  ;;  %v2194_v25 = vld [vmem:[%s3227_s1 + $0x90] sm:$0xff]  ;;  %v2207_v27 = vld [vmem:[%s3227_s1 + $0x100] sm:$0xff] }
   0xa   :  { %96 = vmatprep.subr.mxu0 %v2097_v9  ;;  %1617 = vmatpush3.msra.mxu1 %v2150_v18  ;;  %v2213_v28 = vld [vmem:[%s3227_s1 + $0x78] sm:$0xff]  ;;  %v2220_v29 = vld [vmem:[%s3227_s1 + $0x68] sm:$0xff]  ;;  %v2232_v31 = vld [vmem:[%s3227_s1 + $0x60] sm:$0xff] }
   0xb   :  { %97 = vmatpush1.msra.mxu0 %v2103_v10  ;;  %1618 = vmatprep.subr.mxu1 %v3231_v3  ;;  %v2226_v30 = vld [vmem:[%s3227_s1 + $0xe8] sm:$0xff]  ;;  %v2239_v32 = vld [vmem:[%s3227_s1 + $0x50] sm:$0xff]  ;;  %v2258_v35 = vld [vmem:[%s3227_s1 + $0x38] sm:$0xff] }
   0xc   :  { %98 = vmatprep.subr.mxu0 %v2109_v11  ;;  %1619 = vmatpush3.msra.mxu1 %v2169_v21  ;;  %v2245_v33 = vld [vmem:[%s3227_s1 + $0xd0] sm:$0xff]  ;;  %v2251_v34 = vld [vmem:[%s3227_s1 + $0x48] sm:$0xff]  ;;  %v2264_v36 = vld [vmem:[%s3227_s1 + $0xb8] sm:$0xff] }
   0xd   :  { %99 = vmatpush1.msra.mxu0 %v2115_v12  ;;  %1620 = vmatprep.subr.mxu1 %v3231_v3  ;;  %v2270_v37 = vld [vmem:[%s3227_s1 + $0x30] sm:$0xff]  ;;  %v2277_v38 = vld [vmem:[%s3227_s1 + $0x20] sm:$0xff]  ;;  %v2289_v40 = vld [vmem:[%s3227_s1 + $0x18] sm:$0xff] }
   0xe   :  { %100 = vmatprep.subr.mxu0 %v2121_v13  ;;  %1621 = vmatpush3.msra.mxu1 %v2188_v24  ;;  %v2283_v39 = vld [vmem:[%s3227_s1 + $0xa0] sm:$0xff]  ;;  %v2296_v41 = vld [vmem:[%s3227_s1 + $0x8] sm:$0xff]  ;;  %v2316_v44 = vld [vmem:[%s3227_s1 + $0x70] sm:$0xff] }
   0xf   :  { %101 = vmatpush1.msra.mxu0 %v2132_v15  ;;  %1622 = vmatprep.subr.mxu1 %v3231_v3  ;;  %3248 = vst [vmem:[#allocation4_spill] sm:$0xff] %v2296_v41  ;;  %v2302_v42 = vld [vmem:[%s3227_s1 + $0x88] sm:$0xff]  ;;  %v2308_v43 = vld [vmem:[%s3227_s1] sm:$0xff]  ;;  %v2325_v45 = vld [vmem:[%s3227_s1 + $0x58] sm:$0xff] }
  0x10   :  { %102 = vmatprep.subr.mxu0 %v2144_v17  ;;  %1623 = vmatpush3.msra.mxu1 %v2207_v27  ;;  %3249 = vst [vmem:[#allocation5_spill] sm:$0xff] %v2308_v43  ;;  %v2333_v46 = vld [vmem:[%s3227_s1 + $0x40] sm:$0xff]  ;;  %v2342_v47 = vld [vmem:[%s3227_s1 + $0x28] sm:$0xff]  ;;  %v2351_v48 = vld [vmem:[%s3227_s1 + $0x10] sm:$0xff] }
  0x11   :  { %103 = vmatpush1.msra.mxu0 %v2156_v19  ;;  %1624 = vmatprep.subr.mxu1 %v3231_v3  ;;  %3250 = vst [vmem:[#allocation6_spill] sm:$0xff] %v2342_v47  ;;  %3251 = vst [vmem:[#allocation7_spill] sm:$0xff] %v2351_v48  ;;  %v67_v52 = vld [vmem:[%s3228_s2] sm:$0x7]  ;;  %v86_v63 = vld [vmem:[%s3229_s0 + $0x8] sm:$0xff] }
  0x12   :  { %104 = vmatprep.subr.mxu0 %v2163_v20  ;;  %1625 = vmatpush3.msra.mxu1 %v2226_v30  ;;  %v2425_v53 = vrot.slane %v67_v52, %v71_v51  ;;  %v85_v55 = vld [vmem:[%s3229_s0] sm:$0xff]  ;;  %v2431_v58 = vrot.slane %v67_v52, %v75_v54  ;;  %v79_v54 = vsub.s32 2, %v70_v50 }
  0x13   :  { %105 = vmatpush1.msra.mxu0 %v2175_v22  ;;  %1626 = vmatprep.subr.mxu1 %v3231_v3 }
  0x14   :  { %106 = vmatprep.subr.mxu0 %v2182_v23  ;;  %1627 = vmatpush3.msra.mxu1 %v2245_v33 }
  0x15   :  { %107 = vmatpush1.msra.mxu0 %v2194_v25  ;;  %1628 = vmatprep.subr.mxu1 %v3231_v3 }
  0x16   :  { %108 = vmatprep.subr.mxu0 %v2201_v26  ;;  %1629 = vmatpush3.msra.mxu1 %v2264_v36 }
  0x17   :  { %109 = vmatpush1.msra.mxu0 %v2213_v28  ;;  %1630 = vmatprep.subr.mxu1 %v3231_v3 }
  0x18   :  { %110 = vmatprep.subr.mxu0 %v2220_v29  ;;  %1631 = vmatpush3.msra.mxu1 %v2283_v39 }
  0x19   :  { %111 = vmatpush1.msra.mxu0 %v2232_v31  ;;  %1632 = vmatprep.subr.mxu1 %v3231_v3 }
  0x1a   :  { %112 = vmatprep.subr.mxu0 %v2239_v32  ;;  %1633 = vmatpush3.msra.mxu1 %v2302_v42 }
  0x1b   :  { %113 = vmatpush1.msra.mxu0 %v2251_v34  ;;  %1634 = vmatprep.subr.mxu1 %v3231_v3 }
  0x1c   :  { %114 = vmatprep.subr.mxu0 %v2258_v35  ;;  %1635 = vmatpush3.msra.mxu1 %v2316_v44 }
  0x1d   :  { %115 = vmatpush1.msra.mxu0 %v2270_v37  ;;  %1636 = vmatprep.subr.mxu1 %v3231_v3 }
  0x1e   :  { %116 = vmatprep.subr.mxu0 %v2277_v38  ;;  %1637 = vmatpush3.msra.mxu1 %v2325_v45 }
  0x1f   :  { %117 = vmatpush1.msra.mxu0 %v2289_v40  ;;  %1638 = vmatprep.subr.mxu1 %v3231_v3 }
  0x20   :  { %118 = vmatprep.subr.mxu0 %v2296_v41  ;;  %1639 = vmatpush3.msra.mxu1 %v2333_v46 }
  0x21   :  { %119 = vmatpush1.msra.mxu0 %v2308_v43  ;;  %1640 = vmatprep.subr.mxu1 %v3231_v3 }
  0x22   :  { %153 = vmatmul.mubr.f32.vlgmr.msra.gmra.mxu0 %v3231_v3  ;;  %255 = vmatprep.subr.mxu0 %v2047_v0 }
  0x23   :  { %256 = vmatpush1.msra.mxu0 %v2052_v1  ;;  %1641 = vmatpush3.msra.mxu1 %v2342_v47 }
  0x24   :  { %257 = vmatprep.subr.mxu0 %v2057_v2  ;;  %1642 = vmatprep.subr.mxu1 %v3231_v3 }
  0x25   :  { %258 = vmatpush1.msra.mxu0 %v2065_v4  ;;  %1643 = vmatpush3.msra.mxu1 %v2351_v48 }
  0x26   :  { %259 = vmatprep.subr.mxu0 %v2073_v5  ;;  %1645 = vmatmul.mubr.f32.vlgmr.msra.gmra.mxu1 %v3231_v3 }
  0x27   :  { %260 = vmatpush1.msra.mxu0 %v2079_v6  ;;  %1647 = vmatprep.subr.mxu1 %v3231_v3 }
  0x28   :  { %261 = vmatprep.subr.mxu0 %v2085_v7  ;;  %1648 = vmatpush3.msra.mxu1 %v2126_v14 }
  0x29   :  { %262 = vmatpush1.msra.mxu0 %v2091_v8  ;;  %1649 = vmatprep.subr.mxu1 %v3231_v3 }
  0x2a   :  { %263 = vmatprep.subr.mxu0 %v2097_v9  ;;  %1650 = vmatpush3.msra.mxu1 %v2138_v16 }
  0x2b   :  { %264 = vmatpush1.msra.mxu0 %v2103_v10  ;;  %1651 = vmatprep.subr.mxu1 %v3231_v3 }
  0x2c   :  { %265 = vmatprep.subr.mxu0 %v2109_v11  ;;  %1652 = vmatpush3.msra.mxu1 %v2150_v18 }
  0x2d   :  { %266 = vmatpush1.msra.mxu0 %v2115_v12  ;;  %1653 = vmatprep.subr.mxu1 %v3231_v3 }
  0x2e   :  { %267 = vmatprep.subr.mxu0 %v2121_v13  ;;  %1654 = vmatpush3.msra.mxu1 %v2169_v21 }
  0x2f   :  { %268 = vmatpush1.msra.mxu0 %v2132_v15  ;;  %1655 = vmatprep.subr.mxu1 %v3231_v3 }
  0x30   :  { %269 = vmatprep.subr.mxu0 %v2144_v17  ;;  %1656 = vmatpush3.msra.mxu1 %v2188_v24 }
  0x31   :  { %270 = vmatpush1.msra.mxu0 %v2156_v19  ;;  %1657 = vmatprep.subr.mxu1 %v3231_v3 }
  0x32   :  { %271 = vmatprep.subr.mxu0 %v2163_v20  ;;  %1658 = vmatpush3.msra.mxu1 %v2207_v27 }
  0x33   :  { %272 = vmatpush1.msra.mxu0 %v2175_v22  ;;  %1659 = vmatprep.subr.mxu1 %v3231_v3 }
  0x34   :  { %273 = vmatprep.subr.mxu0 %v2182_v23  ;;  %1660 = vmatpush3.msra.mxu1 %v2226_v30 }
  0x35   :  { %274 = vmatpush1.msra.mxu0 %v2194_v25  ;;  %1661 = vmatprep.subr.mxu1 %v3231_v3 }
  0x36   :  { %275 = vmatprep.subr.mxu0 %v2201_v26  ;;  %1662 = vmatpush3.msra.mxu1 %v2245_v33 }
  0x37   :  { %276 = vmatpush1.msra.mxu0 %v2213_v28  ;;  %1663 = vmatprep.subr.mxu1 %v3231_v3 }
  0x38   :  { %277 = vmatprep.subr.mxu0 %v2220_v29  ;;  %1664 = vmatpush3.msra.mxu1 %v2264_v36 }
  0x39   :  { %278 = vmatpush1.msra.mxu0 %v2232_v31  ;;  %1665 = vmatprep.subr.mxu1 %v3231_v3 }
  0x3a   :  { %279 = vmatprep.subr.mxu0 %v2239_v32  ;;  %1666 = vmatpush3.msra.mxu1 %v2283_v39 }
  0x3b   :  { %280 = vmatpush1.msra.mxu0 %v2251_v34  ;;  %1667 = vmatprep.subr.mxu1 %v3231_v3 }
  0x3c   :  { %281 = vmatprep.subr.mxu0 %v2258_v35  ;;  %1668 = vmatpush3.msra.mxu1 %v2302_v42 }
  0x3d   :  { %282 = vmatpush1.msra.mxu0 %v2270_v37  ;;  %1669 = vmatprep.subr.mxu1 %v3231_v3 }
  0x3e   :  { %283 = vmatprep.subr.mxu0 %v2277_v38  ;;  %1670 = vmatpush3.msra.mxu1 %v2316_v44 }
  0x3f   :  { %284 = vmatpush1.msra.mxu0 %v2289_v40  ;;  %1671 = vmatprep.subr.mxu1 %v3231_v3 }
  0x40   :  { %285 = vmatprep.subr.mxu0 %v2296_v41  ;;  %1672 = vmatpush3.msra.mxu1 %v2325_v45 }
  0x41   :  { %286 = vmatpush1.msra.mxu0 %v2308_v43  ;;  %319 = vmatprep.mubr.f32.mxu0 %v3231_v3 }
  0x42   :  { %1673 = vmatprep.subr.mxu1 %v3231_v3  ;;  %1679 = vmatprep.mubr.msk.f32.mxu1 %vm2023_vm0, %v3231_v3 }
  0x43   :  { %1674 = vmatpush3.msra.mxu1 %v2333_v46  ;;  %423 = vmatprep.subr.mxu0 %v2047_v0 }
  0x44   :  { %1675 = vmatprep.subr.mxu1 %v3231_v3 }
  0x45   :  { %1676 = vmatpush3.msra.mxu1 %v2342_v47 }
  0x46   :  { %1677 = vmatprep.subr.mxu1 %v3231_v3 }
  0x47   :  { %1678 = vmatpush3.msra.mxu1 %v2351_v48 }
  0x48   :  { %1682 = vmatprep.subr.mxu1 %v3231_v3 }
  0xe2   :  { %v154_v56 = vpop.f32.mrf.mxu0 }
  0xe3   :  { %v155_v57 = vadd.f32 %v154_v56, %v2425_v53  ;;  %v2437_v56 = vrot.slane %v67_v52, %v79_v54  ;;  %v3254_v54 = vld [vmem:[#allocation7_spill] sm:$0xff] }
  0xe4   :  { %v156_v59 = vpop.f32.mrf.mxu0 }
  0xe5   :  { %v229_v60 = vadd.f32 %v155_v57, %v85_v55  ;;  %v157_v62 = vadd.f32 %v156_v59, %v2431_v58 }
  0xe6   :  { %v225_v51 = vpop.f32.mrf.mxu1 }
  0xe7   :  { %v1432_v61 = vmul.f32 -1.442695, %v229_v60  ;;  %v236_v49 = vadd.f32 %v157_v62, %v86_v63  ;;  %v226_v59 = vadd.f32 %v225_v51, %v2437_v56  ;;  %v3253_v51 = vld [vmem:[#allocation5_spill] sm:$0xff] }
  0xe8   :  { %v1646_v3 = vpop.f32.mrf.mxu1 }
  0xe9   :  { %1894 = vpow2.f32 %v1432_v61  ;;  %v1433_v0 = vmul.f32 -1.442695, %v236_v49  ;;  %v87_v61 = vld [vmem:[%s3229_s0 + $0x10] sm:$0xff]  ;;  %v3252_v49 = vmov 0.0  }
  0xeb   :  { %1896 = vpow2.f32 %v1433_v0 }
  0xf6   :  { %v1895_v48 = vpop.eup %1894 }
  0xf7   :  { %v233_v43 = vadd.f32 1.0, %v1895_v48 }
  0xf8   :  { %v1897_v55 = vpop.eup %1896 }
  0xf9   :  { %1898 = vrcp.f32 %v233_v43  ;;  %v240_v57 = vadd.f32 1.0, %v1897_v55  ;;  %v3255_v55 = vld [vmem:[#allocation3_spill] sm:$0xff] }
  0xfb   :  { %1900 = vrcp.f32 %v240_v57  ;;  %v1434_v57 = vld [vmem:[%s3229_s0 + $0x18] sm:$0xff] }
 0x106   :  { %v1899_v60 = vpop.eup %1898 }
 0x107   :  { %v243_v62 = vmul.f32 %v1899_v60, %v226_v59 }
 0x108   :  { %v1901_v0 = vpop.eup %1900 }
 0x109   :  { %v244_v3 = vadd.f32 %v243_v62, %v87_v61  ;;  %v246_v63 = vsub.f32 1.0, %v1901_v0  ;;  %v248_v50 = vmul.f32 0.0, %v1901_v0 }
 0x10b   :  { %1902 = vtanh.f32 %v244_v3 }
 0x118   :  { %v1903_v48 = vpop.eup %1902 }
 0x119   :  { %v247_v43 = vmul.f32 %v1903_v48, %v246_v63 }
 0x11b   :  { %v2443_v52 = vadd.f32 %v248_v50, %v247_v43  ;;  %v1435_v43 = vld [vmem:[%s3229_s0 + $0x20] sm:$0xff] }
 0x11d   :  { %250 = vst [vmem:[%s3230_s3] sm:$0xff] %v2443_v52  ;;  %320 = vmatmul.mubr.f32.vlgmr.msra.gmra.mxu0 %v2443_v52  ;;  %1680 = vmatmul.mubr.f32.vlgmr.msra.gmra.mxu1 %v2443_v52 }
 0x11e   :  { %424 = vmatpush1.msra.mxu0 %v2052_v1  ;;  %1683 = vmatpush3.msra.mxu1 %v2126_v14 }
 0x11f   :  { %425 = vmatprep.subr.mxu0 %v2057_v2  ;;  %1684 = vmatprep.subr.mxu1 %v3252_v49 }
 0x120   :  { %426 = vmatpush1.msra.mxu0 %v2065_v4  ;;  %1685 = vmatpush3.msra.mxu1 %v2138_v16 }
 0x121   :  { %427 = vmatprep.subr.mxu0 %v2073_v5  ;;  %1686 = vmatprep.subr.mxu1 %v3252_v49 }
 0x122   :  { %428 = vmatpush1.msra.mxu0 %v2079_v6  ;;  %1687 = vmatpush3.msra.mxu1 %v2150_v18 }
 0x123   :  { %429 = vmatprep.subr.mxu0 %v2085_v7  ;;  %1688 = vmatprep.subr.mxu1 %v3252_v49 }
 0x124   :  { %430 = vmatpush1.msra.mxu0 %v2091_v8  ;;  %1689 = vmatpush3.msra.mxu1 %v2169_v21 }
 0x125   :  { %431 = vmatprep.subr.mxu0 %v2097_v9  ;;  %1690 = vmatprep.subr.mxu1 %v3252_v49 }
 0x126   :  { %432 = vmatpush1.msra.mxu0 %v2103_v10  ;;  %1691 = vmatpush3.msra.mxu1 %v2188_v24 }
 0x127   :  { %433 = vmatprep.subr.mxu0 %v2109_v11  ;;  %1692 = vmatprep.subr.mxu1 %v3252_v49 }
 0x128   :  { %434 = vmatpush1.msra.mxu0 %v2115_v12  ;;  %1693 = vmatpush3.msra.mxu1 %v2207_v27 }
 0x129   :  { %435 = vmatprep.subr.mxu0 %v2121_v13  ;;  %1694 = vmatprep.subr.mxu1 %v3252_v49 }
 0x12a   :  { %436 = vmatpush1.msra.mxu0 %v2132_v15  ;;  %1695 = vmatpush3.msra.mxu1 %v2226_v30 }
 0x12b   :  { %437 = vmatprep.subr.mxu0 %v2144_v17  ;;  %1696 = vmatprep.subr.mxu1 %v3252_v49 }
 0x12c   :  { %438 = vmatpush1.msra.mxu0 %v2156_v19  ;;  %1697 = vmatpush3.msra.mxu1 %v2245_v33 }
 0x12d   :  { %439 = vmatprep.subr.mxu0 %v2163_v20  ;;  %1698 = vmatprep.subr.mxu1 %v3252_v49 }
 0x12e   :  { %440 = vmatpush1.msra.mxu0 %v2175_v22  ;;  %1699 = vmatpush3.msra.mxu1 %v2264_v36 }
 0x12f   :  { %441 = vmatprep.subr.mxu0 %v2182_v23  ;;  %1700 = vmatprep.subr.mxu1 %v3252_v49 }
 0x130   :  { %442 = vmatpush1.msra.mxu0 %v2194_v25  ;;  %1701 = vmatpush3.msra.mxu1 %v2283_v39 }
 0x131   :  { %443 = vmatprep.subr.mxu0 %v2201_v26  ;;  %1702 = vmatprep.subr.mxu1 %v3252_v49 }
 0x132   :  { %444 = vmatpush1.msra.mxu0 %v2213_v28  ;;  %1703 = vmatpush3.msra.mxu1 %v2302_v42 }
 0x133   :  { %445 = vmatprep.subr.mxu0 %v2220_v29  ;;  %1704 = vmatprep.subr.mxu1 %v3252_v49 }
 0x134   :  { %446 = vmatpush1.msra.mxu0 %v2232_v31  ;;  %1705 = vmatpush3.msra.mxu1 %v2316_v44 }
 0x135   :  { %447 = vmatprep.subr.mxu0 %v2239_v32  ;;  %1706 = vmatprep.subr.mxu1 %v3252_v49 }
 0x136   :  { %448 = vmatpush1.msra.mxu0 %v2251_v34  ;;  %1707 = vmatpush3.msra.mxu1 %v2325_v45 }
 0x137   :  { %449 = vmatprep.subr.mxu0 %v2258_v35  ;;  %1708 = vmatprep.subr.mxu1 %v3252_v49 }
 0x138   :  { %450 = vmatpush1.msra.mxu0 %v2270_v37  ;;  %1709 = vmatpush3.msra.mxu1 %v2333_v46 }
 0x139   :  { %451 = vmatprep.subr.mxu0 %v2277_v38  ;;  %1710 = vmatprep.subr.mxu1 %v3252_v49 }
 0x13a   :  { %452 = vmatpush1.msra.mxu0 %v2289_v40  ;;  %1711 = vmatpush3.msra.mxu1 %v2342_v47 }
 0x13b   :  { %453 = vmatprep.subr.mxu0 %v2296_v41  ;;  %1712 = vmatprep.subr.mxu1 %v3252_v49 }
 0x13c   :  { %454 = vmatpush1.msra.mxu0 %v3253_v51  ;;  %487 = vmatprep.mubr.f32.mxu0 %v3252_v49 }
 0x13d   :  { %1713 = vmatpush3.msra.mxu1 %v3254_v54  ;;  %1714 = vmatprep.mubr.msk.f32.mxu1 %vm2023_vm0, %v3252_v49 }
 0x13e   :  { %591 = vmatprep.subr.mxu0 %v3255_v55  ;;  %1717 = vmatprep.subr.mxu1 %v3252_v49 }
 0x1dd   :  { %v321_v59 = vpop.f32.mrf.mxu0  ;;  %v392_v60 = vpop.f32.mrf.mxu1 }
 0x1de   :  { %v322_v61 = vadd.f32 %v321_v59, %v2425_v53  ;;  %v393_v59 = vadd.f32 %v392_v60, %v2437_v56  ;;  %v3259_v60 = vld [vmem:[#allocation7_spill] sm:$0xff] }
 0x1df   :  { %v323_v62 = vpop.f32.mrf.mxu0  ;;  %v1681_v3 = vpop.f32.mrf.mxu1 }
 0x1e0   :  { %v396_v0 = vadd.f32 %v1434_v57, %v322_v61  ;;  %v324_v48 = vadd.f32 %v323_v62, %v2431_v58  ;;  %v1436_v57 = vld [vmem:[%s3229_s0 + $0x28] sm:$0xff] }
 0x1e2   :  { %v1437_v63 = vmul.f32 -1.442695, %v396_v0  ;;  %v403_v50 = vadd.f32 %v1435_v43, %v324_v48  ;;  %v3260_v43 = vld [vmem:[#allocation3_spill] sm:$0xff] }
 0x1e4   :  { %1904 = vpow2.f32 %v1437_v63  ;;  %v1438_v55 = vmul.f32 -1.442695, %v403_v50  ;;  %v1440_v50 = vld [vmem:[%s3229_s0 + $0x30] sm:$0xff] }
 0x1e6   :  { %1906 = vpow2.f32 %v1438_v55 }
 0x1f1   :  { %v1905_v54 = vpop.eup %1904 }
 0x1f2   :  { %v400_v51 = vadd.f32 1.0, %v1905_v54 }
 0x1f3   :  { %v1907_v41 = vpop.eup %1906 }
 0x1f4   :  { %1908 = vrcp.f32 %v400_v51  ;;  %v407_v47 = vadd.f32 1.0, %v1907_v41  ;;  %v3256_v41 = vld [vmem:[#allocation6_spill] sm:$0xff] }
 0x1f6   :  { %1910 = vrcp.f32 %v407_v47  ;;  %v3257_v47 = vld [vmem:[#allocation4_spill] sm:$0xff] }
 0x201   :  { %v1909_v3 = vpop.eup %1908 }
 0x202   :  { %v410_v61 = vmul.f32 %v1909_v3, %v393_v59 }
 0x203   :  { %v1911_v0 = vpop.eup %1910 }
 0x204   :  { %v411_v62 = vadd.f32 %v1436_v57, %v410_v61  ;;  %v413_v63 = vsub.f32 1.0, %v1911_v0  ;;  %v415_v54 = vmul.f32 %v1911_v0, %v2443_v52  ;;  %v3258_v52 = vld [vmem:[#allocation5_spill] sm:$0xff] }
 0x206   :  { %1912 = vtanh.f32 %v411_v62 }
 0x213   :  { %v1913_v48 = vpop.eup %1912 }
 0x214   :  { %v414_v55 = vmul.f32 %v1913_v48, %v413_v63 }
 0x216   :  { %v2531_v51 = vadd.f32 %v415_v54, %v414_v55  ;;  %v1441_v55 = vld [vmem:[%s3229_s0 + $0x38] sm:$0xff] }
 0x218   :  { %1439 = vst [vmem:[%s3230_s3 + $0x8] sm:$0xff] %v2531_v51  ;;  %488 = vmatmul.mubr.f32.vlgmr.msra.gmra.mxu0 %v2531_v51  ;;  %1715 = vmatmul.mubr.f32.vlgmr.msra.gmra.mxu1 %v2531_v51 }
 0x219   :  { %592 = vmatpush1.msra.mxu0 %v2052_v1  ;;  %1718 = vmatpush3.msra.mxu1 %v2126_v14 }
 0x21a   :  { %593 = vmatprep.subr.mxu0 %v2057_v2  ;;  %1719 = vmatprep.subr.mxu1 %v3252_v49 }
 0x21b   :  { %594 = vmatpush1.msra.mxu0 %v2065_v4  ;;  %1720 = vmatpush3.msra.mxu1 %v2138_v16 }
 0x21c   :  { %595 = vmatprep.subr.mxu0 %v2073_v5  ;;  %1721 = vmatprep.subr.mxu1 %v3252_v49 }
 0x21d   :  { %596 = vmatpush1.msra.mxu0 %v2079_v6  ;;  %1722 = vmatpush3.msra.mxu1 %v2150_v18 }
 0x21e   :  { %597 = vmatprep.subr.mxu0 %v2085_v7  ;;  %1723 = vmatprep.subr.mxu1 %v3252_v49 }
 0x21f   :  { %598 = vmatpush1.msra.mxu0 %v2091_v8  ;;  %1724 = vmatpush3.msra.mxu1 %v2169_v21 }
 0x220   :  { %599 = vmatprep.subr.mxu0 %v2097_v9  ;;  %1725 = vmatprep.subr.mxu1 %v3252_v49 }
 0x221   :  { %600 = vmatpush1.msra.mxu0 %v2103_v10  ;;  %1726 = vmatpush3.msra.mxu1 %v2188_v24 }
 0x222   :  { %601 = vmatprep.subr.mxu0 %v2109_v11  ;;  %1727 = vmatprep.subr.mxu1 %v3252_v49 }
 0x223   :  { %602 = vmatpush1.msra.mxu0 %v2115_v12  ;;  %1728 = vmatpush3.msra.mxu1 %v2207_v27 }
 0x224   :  { %603 = vmatprep.subr.mxu0 %v2121_v13  ;;  %1729 = vmatprep.subr.mxu1 %v3252_v49 }
 0x225   :  { %604 = vmatpush1.msra.mxu0 %v2132_v15  ;;  %1730 = vmatpush3.msra.mxu1 %v2226_v30 }
 0x226   :  { %605 = vmatprep.subr.mxu0 %v2144_v17  ;;  %1731 = vmatprep.subr.mxu1 %v3252_v49 }
 0x227   :  { %606 = vmatpush1.msra.mxu0 %v2156_v19  ;;  %1732 = vmatpush3.msra.mxu1 %v2245_v33 }
 0x228   :  { %607 = vmatprep.subr.mxu0 %v2163_v20  ;;  %1733 = vmatprep.subr.mxu1 %v3252_v49 }
 0x229   :  { %608 = vmatpush1.msra.mxu0 %v2175_v22  ;;  %1734 = vmatpush3.msra.mxu1 %v2264_v36 }
 0x22a   :  { %609 = vmatprep.subr.mxu0 %v2182_v23  ;;  %1735 = vmatprep.subr.mxu1 %v3252_v49 }
 0x22b   :  { %610 = vmatpush1.msra.mxu0 %v2194_v25  ;;  %1736 = vmatpush3.msra.mxu1 %v2283_v39 }
 0x22c   :  { %611 = vmatprep.subr.mxu0 %v2201_v26  ;;  %1737 = vmatprep.subr.mxu1 %v3252_v49 }
 0x22d   :  { %612 = vmatpush1.msra.mxu0 %v2213_v28  ;;  %1738 = vmatpush3.msra.mxu1 %v2302_v42 }
 0x22e   :  { %613 = vmatprep.subr.mxu0 %v2220_v29  ;;  %1739 = vmatprep.subr.mxu1 %v3252_v49 }
 0x22f   :  { %614 = vmatpush1.msra.mxu0 %v2232_v31  ;;  %1740 = vmatpush3.msra.mxu1 %v2316_v44 }
 0x230   :  { %615 = vmatprep.subr.mxu0 %v2239_v32  ;;  %1741 = vmatprep.subr.mxu1 %v3252_v49 }
 0x231   :  { %616 = vmatpush1.msra.mxu0 %v2251_v34  ;;  %1742 = vmatpush3.msra.mxu1 %v2325_v45 }
 0x232   :  { %617 = vmatprep.subr.mxu0 %v2258_v35  ;;  %1743 = vmatprep.subr.mxu1 %v3252_v49 }
 0x233   :  { %618 = vmatpush1.msra.mxu0 %v2270_v37  ;;  %1744 = vmatpush3.msra.mxu1 %v2333_v46 }
 0x234   :  { %619 = vmatprep.subr.mxu0 %v2277_v38  ;;  %1745 = vmatprep.subr.mxu1 %v3252_v49 }
 0x235   :  { %620 = vmatpush1.msra.mxu0 %v2289_v40  ;;  %1746 = vmatpush3.msra.mxu1 %v3256_v41 }
 0x236   :  { %621 = vmatprep.subr.mxu0 %v3257_v47  ;;  %1747 = vmatprep.subr.mxu1 %v3252_v49 }
 0x237   :  { %622 = vmatpush1.msra.mxu0 %v3258_v52  ;;  %655 = vmatprep.mubr.f32.mxu0 %v3252_v49 }
 0x238   :  { %1748 = vmatpush3.msra.mxu1 %v3259_v60  ;;  %1749 = vmatprep.mubr.msk.f32.mxu1 %vm2023_vm0, %v3252_v49 }
 0x239   :  { %759 = vmatprep.subr.mxu0 %v3260_v43  ;;  %1752 = vmatprep.subr.mxu1 %v3252_v49 }
 0x2d8   :  { %v489_v59 = vpop.f32.mrf.mxu0  ;;  %v560_v3 = vpop.f32.mrf.mxu1 }
 0x2d9   :  { %v490_v57 = vadd.f32 %v489_v59, %v2425_v53  ;;  %v561_v59 = vadd.f32 %v560_v3, %v2437_v56 }
 0x2da   :  { %v491_v61 = vpop.f32.mrf.mxu0  ;;  %v1716_v62 = vpop.f32.mrf.mxu1 }
 0x2db   :  { %v564_v0 = vadd.f32 %v1440_v50, %v490_v57  ;;  %v492_v48 = vadd.f32 %v491_v61, %v2431_v58  ;;  %v1442_v50 = vld [vmem:[%s3229_s0 + $0x40] sm:$0xff] }
 0x2dd   :  { %v1443_v63 = vmul.f32 -1.442695, %v564_v0  ;;  %v571_v54 = vadd.f32 %v1441_v55, %v492_v48 }
 0x2df   :  { %1914 = vpow2.f32 %v1443_v63  ;;  %v1444_v43 = vmul.f32 -1.442695, %v571_v54 }
 0x2e1   :  { %1916 = vpow2.f32 %v1444_v43 }
 0x2ec   :  { %v1915_v60 = vpop.eup %1914 }
 0x2ed   :  { %v568_v52 = vadd.f32 1.0, %v1915_v60 }
 0x2ee   :  { %v1917_v47 = vpop.eup %1916 }
 0x2ef   :  { %1918 = vrcp.f32 %v568_v52  ;;  %v575_v41 = vadd.f32 1.0, %v1917_v47 }
 0x2f1   :  { %1920 = vrcp.f32 %v575_v41 }
 0x2fc   :  { %v1919_v62 = vpop.eup %1918 }
 0x2fd   :  { %v578_v57 = vmul.f32 %v1919_v62, %v561_v59 }
 0x2fe   :  { %v1921_v0 = vpop.eup %1920 }
 0x2ff   :  { %v579_v61 = vadd.f32 %v1442_v50, %v578_v57  ;;  %v581_v63 = vsub.f32 1.0, %v1921_v0  ;;  %v583_v60 = vmul.f32 %v1921_v0, %v2531_v51  ;;  %v2718_v50 = vld [vmem:[%s3227_s1 + $0x168] sm:$0xff]  ;;  %v2725_v57 = vld [vmem:[%s3227_s1 + $0x158] sm:$0xff] }
 0x300   :  { %v2746_v0 = vld [vmem:[%s3227_s1 + $0x138] sm:$0xff] }
 0x301   :  { %1922 = vtanh.f32 %v579_v61  ;;  %v2732_v61 = vld [vmem:[%s3227_s1 + $0x150] sm:$0xff] }
 0x30e   :  { %v1923_v48 = vpop.eup %1922 }
 0x30f   :  { %v582_v43 = vmul.f32 %v1923_v48, %v581_v63  ;;  %v2760_v63 = vld [vmem:[%s3227_s1 + $0x120] sm:$0xff]  ;;  %v2774_v48 = vld [vmem:[%s3227_s1 + $0x108] sm:$0xff] }
 0x311   :  { %v2619_v52 = vadd.f32 %v583_v60, %v582_v43  ;;  %v2788_v43 = vld [vmem:[%s3227_s1 + $0xf0] sm:$0xff]  ;;  %v2802_v60 = vld [vmem:[%s3227_s1 + $0xd8] sm:$0xff] }
 0x313   :  { %1445 = vst [vmem:[%s3230_s3 + $0x10] sm:$0xff] %v2619_v52  ;;  %656 = vmatmul.mubr.f32.vlgmr.msra.gmra.mxu0 %v2619_v52  ;;  %1750 = vmatmul.mubr.f32.vlgmr.msra.gmra.mxu1 %v2619_v52 }
 0x314   :  { %760 = vmatpush1.msra.mxu0 %v2052_v1  ;;  %1753 = vmatpush3.msra.mxu1 %v2126_v14  ;;  %v3261_v1 = vld [vmem:[#allocation6_spill] sm:$0xff] }
 0x315   :  { %761 = vmatprep.subr.mxu0 %v2057_v2  ;;  %1754 = vmatprep.subr.mxu1 %v3252_v49  ;;  %v3262_v2 = vld [vmem:[#allocation4_spill] sm:$0xff] }
 0x316   :  { %762 = vmatpush1.msra.mxu0 %v2065_v4  ;;  %1755 = vmatpush3.msra.mxu1 %v2138_v16  ;;  %v3263_v4 = vld [vmem:[#allocation5_spill] sm:$0xff] }
 0x317   :  { %763 = vmatprep.subr.mxu0 %v2073_v5  ;;  %1756 = vmatprep.subr.mxu1 %v3252_v49  ;;  %v3264_v5 = vld [vmem:[#allocation7_spill] sm:$0xff] }
 0x318   :  { %764 = vmatpush1.msra.mxu0 %v2079_v6  ;;  %1757 = vmatpush3.msra.mxu1 %v2150_v18  ;;  %v3265_v6 = vld [vmem:[#allocation3_spill] sm:$0xff] }
 0x319   :  { %765 = vmatprep.subr.mxu0 %v2085_v7  ;;  %1758 = vmatprep.subr.mxu1 %v3252_v49  ;;  %v1446_v7 = vld [vmem:[%s3229_s0 + $0x48] sm:$0xff] }
 0x31a   :  { %766 = vmatpush1.msra.mxu0 %v2091_v8  ;;  %1759 = vmatpush3.msra.mxu1 %v2169_v21 }
 0x31b   :  { %767 = vmatprep.subr.mxu0 %v2097_v9  ;;  %1760 = vmatprep.subr.mxu1 %v3252_v49 }
 0x31c   :  { %768 = vmatpush1.msra.mxu0 %v2103_v10  ;;  %1761 = vmatpush3.msra.mxu1 %v2188_v24 }
 0x31d   :  { %769 = vmatprep.subr.mxu0 %v2109_v11  ;;  %1762 = vmatprep.subr.mxu1 %v3252_v49 }
 0x31e   :  { %770 = vmatpush1.msra.mxu0 %v2115_v12  ;;  %1763 = vmatpush3.msra.mxu1 %v2207_v27 }
 0x31f   :  { %771 = vmatprep.subr.mxu0 %v2121_v13  ;;  %1764 = vmatprep.subr.mxu1 %v3252_v49 }
 0x320   :  { %772 = vmatpush1.msra.mxu0 %v2132_v15  ;;  %1765 = vmatpush3.msra.mxu1 %v2226_v30 }
 0x321   :  { %773 = vmatprep.subr.mxu0 %v2144_v17  ;;  %1766 = vmatprep.subr.mxu1 %v3252_v49 }
 0x322   :  { %774 = vmatpush1.msra.mxu0 %v2156_v19  ;;  %1767 = vmatpush3.msra.mxu1 %v2245_v33  ;;  %v1447_v19 = vld [vmem:[%s3229_s0 + $0x50] sm:$0xff] }
 0x323   :  { %775 = vmatprep.subr.mxu0 %v2163_v20  ;;  %1768 = vmatprep.subr.mxu1 %v3252_v49 }
 0x324   :  { %776 = vmatpush1.msra.mxu0 %v2175_v22  ;;  %1769 = vmatpush3.msra.mxu1 %v2264_v36 }
 0x325   :  { %777 = vmatprep.subr.mxu0 %v2182_v23  ;;  %1770 = vmatprep.subr.mxu1 %v3252_v49 }
 0x326   :  { %778 = vmatpush1.msra.mxu0 %v2194_v25  ;;  %1771 = vmatpush3.msra.mxu1 %v2283_v39 }
 0x327   :  { %779 = vmatprep.subr.mxu0 %v2201_v26  ;;  %1772 = vmatprep.subr.mxu1 %v3252_v49 }
 0x328   :  { %780 = vmatpush1.msra.mxu0 %v2213_v28  ;;  %1773 = vmatpush3.msra.mxu1 %v2302_v42 }
 0x329   :  { %781 = vmatprep.subr.mxu0 %v2220_v29  ;;  %1774 = vmatprep.subr.mxu1 %v3252_v49 }
 0x32a   :  { %782 = vmatpush1.msra.mxu0 %v2232_v31  ;;  %1775 = vmatpush3.msra.mxu1 %v2316_v44 }
 0x32b   :  { %783 = vmatprep.subr.mxu0 %v2239_v32  ;;  %1776 = vmatprep.subr.mxu1 %v3252_v49  ;;  %v1448_v32 = vld [vmem:[%s3229_s0 + $0x58] sm:$0xff] }
 0x32c   :  { %784 = vmatpush1.msra.mxu0 %v2251_v34  ;;  %1777 = vmatpush3.msra.mxu1 %v2325_v45 }
 0x32d   :  { %785 = vmatprep.subr.mxu0 %v2258_v35  ;;  %1778 = vmatprep.subr.mxu1 %v3252_v49 }
 0x32e   :  { %786 = vmatpush1.msra.mxu0 %v2270_v37  ;;  %1779 = vmatpush3.msra.mxu1 %v2333_v46 }
 0x32f   :  { %787 = vmatprep.subr.mxu0 %v2277_v38  ;;  %1780 = vmatprep.subr.mxu1 %v3252_v49 }
 0x330   :  { %788 = vmatpush1.msra.mxu0 %v2289_v40  ;;  %1781 = vmatpush3.msra.mxu1 %v3261_v1 }
 0x331   :  { %789 = vmatprep.subr.mxu0 %v3262_v2  ;;  %1782 = vmatprep.subr.mxu1 %v3252_v49 }
 0x332   :  { %790 = vmatpush1.msra.mxu0 %v3263_v4  ;;  %823 = vmatprep.mubr.f32.mxu0 %v3252_v49 }
 0x333   :  { %1783 = vmatpush3.msra.mxu1 %v3264_v5  ;;  %1784 = vmatprep.mubr.msk.f32.mxu1 %vm2023_vm0, %v3252_v49 }
 0x334   :  { %927 = vmatprep.subr.mxu0 %v3265_v6  ;;  %1787 = vmatprep.subr.mxu1 %v3252_v49  ;;  %v2830_v6 = vld [vmem:[%s3227_s1 + $0xa8] sm:$0xff] }
 0x3d3   :  { %v657_v8 = vpop.f32.mrf.mxu0  ;;  %v728_v9 = vpop.f32.mrf.mxu1 }
 0x3d4   :  { %v658_v10 = vadd.f32 %v657_v8, %v2425_v53  ;;  %v729_v29 = vadd.f32 %v728_v9, %v2437_v56  ;;  %v2858_v8 = vld [vmem:[%s3227_s1 + $0x78] sm:$0xff]  ;;  %v2872_v9 = vld [vmem:[%s3227_s1 + $0x60] sm:$0xff] }
 0x3d5   :  { %v659_v11 = vpop.f32.mrf.mxu0  ;;  %v1751_v12 = vpop.f32.mrf.mxu1 }
 0x3d6   :  { %v732_v13 = vadd.f32 %v1446_v7, %v658_v10  ;;  %v660_v17 = vadd.f32 %v659_v11, %v2431_v58  ;;  %v2844_v7 = vld [vmem:[%s3227_s1 + $0x90] sm:$0xff] }
 0x3d8   :  { %v1449_v15 = vmul.f32 -1.442695, %v732_v13  ;;  %v739_v20 = vadd.f32 %v1447_v19, %v660_v17 }
 0x3da   :  { %1924 = vpow2.f32 %v1449_v15  ;;  %v1450_v22 = vmul.f32 -1.442695, %v739_v20  ;;  %v1454_v20 = vld [vmem:[%s3229_s0 + $0x70] sm:$0xff] }
 0x3dc   :  { %1926 = vpow2.f32 %v1450_v22 }
 0x3e7   :  { %v1925_v23 = vpop.eup %1924 }
 0x3e8   :  { %v736_v25 = vadd.f32 1.0, %v1925_v23 }
 0x3e9   :  { %v1927_v26 = vpop.eup %1926 }
 0x3ea   :  { %1928 = vrcp.f32 %v736_v25  ;;  %v743_v28 = vadd.f32 1.0, %v1927_v26 }
 0x3ec   :  { %1930 = vrcp.f32 %v743_v28 }
 0x3f7   :  { %v1929_v31 = vpop.eup %1928 }
 0x3f8   :  { %v746_v51 = vmul.f32 %v1929_v31, %v729_v29 }
 0x3f9   :  { %v1931_v47 = vpop.eup %1930 }
 0x3fa   :  { %v747_v41 = vadd.f32 %v1448_v32, %v746_v51  ;;  %v749_v3 = vsub.f32 1.0, %v1931_v47  ;;  %v751_v59 = vmul.f32 %v1931_v47, %v2619_v52  ;;  %v2816_v52 = vld [vmem:[%s3227_s1 + $0xc0] sm:$0xff]  ;;  %v2932_v51 = vld [vmem:[%s3227_s1 + $0x178] sm:$0xff]  ;;  %v2950_v47 = vld [vmem:[%s3227_s1 + $0x148] sm:$0xff] }
 0x3fc   :  { %1932 = vtanh.f32 %v747_v41  ;;  %v2941_v41 = vld [vmem:[%s3227_s1 + $0x160] sm:$0xff] }
 0x409   :  { %v1933_v55 = vpop.eup %1932 }
 0x40a   :  { %v750_v54 = vmul.f32 %v1933_v55, %v749_v3  ;;  %v2959_v3 = vld [vmem:[%s3227_s1 + $0x130] sm:$0xff]  ;;  %v2968_v55 = vld [vmem:[%s3227_s1 + $0x118] sm:$0xff] }
 0x40c   :  { %v2707_v62 = vadd.f32 %v751_v59, %v750_v54  ;;  %v2977_v54 = vld [vmem:[%s3227_s1 + $0x100] sm:$0xff]  ;;  %v2986_v59 = vld [vmem:[%s3227_s1 + $0xe8] sm:$0xff] }
 0x40e   :  { %1451 = vst [vmem:[%s3230_s3 + $0x18] sm:$0xff] %v2707_v62  ;;  %824 = vmatmul.mubr.f32.vlgmr.msra.gmra.mxu0 %v2707_v62  ;;  %1785 = vmatmul.mubr.f32.vlgmr.msra.gmra.mxu1 %v2707_v62 }
 0x40f   :  { %928 = vmatpush1.msra.mxu0 %v2718_v50  ;;  %1788 = vmatpush3.msra.mxu1 %v2126_v14  ;;  %v2739_v14 = vld [vmem:[%s3227_s1 + $0x140] sm:$0xff] }
 0x410   :  { %929 = vmatprep.subr.mxu0 %v2725_v57  ;;  %1789 = vmatprep.subr.mxu1 %v3252_v49 }
 0x411   :  { %930 = vmatpush1.msra.mxu0 %v2732_v61  ;;  %1790 = vmatpush3.msra.mxu1 %v2138_v16  ;;  %v2753_v16 = vld [vmem:[%s3227_s1 + $0x128] sm:$0xff] }
 0x412   :  { %931 = vmatprep.subr.mxu0 %v2739_v14  ;;  %1791 = vmatprep.subr.mxu1 %v3252_v49 }
 0x413   :  { %932 = vmatpush1.msra.mxu0 %v2746_v0  ;;  %1792 = vmatpush3.msra.mxu1 %v2150_v18  ;;  %v2767_v18 = vld [vmem:[%s3227_s1 + $0x110] sm:$0xff] }
 0x414   :  { %933 = vmatprep.subr.mxu0 %v2753_v16  ;;  %1793 = vmatprep.subr.mxu1 %v3252_v49 }
 0x415   :  { %934 = vmatpush1.msra.mxu0 %v2760_v63  ;;  %1794 = vmatpush3.msra.mxu1 %v2169_v21  ;;  %v2781_v21 = vld [vmem:[%s3227_s1 + $0xf8] sm:$0xff] }
 0x416   :  { %935 = vmatprep.subr.mxu0 %v2767_v18  ;;  %1795 = vmatprep.subr.mxu1 %v3252_v49 }
 0x417   :  { %936 = vmatpush1.msra.mxu0 %v2774_v48  ;;  %1796 = vmatpush3.msra.mxu1 %v2188_v24  ;;  %v2795_v24 = vld [vmem:[%s3227_s1 + $0xe0] sm:$0xff] }
 0x418   :  { %937 = vmatprep.subr.mxu0 %v2781_v21  ;;  %1797 = vmatprep.subr.mxu1 %v3252_v49 }
 0x419   :  { %938 = vmatpush1.msra.mxu0 %v2788_v43  ;;  %1798 = vmatpush3.msra.mxu1 %v2207_v27  ;;  %v2809_v27 = vld [vmem:[%s3227_s1 + $0xc8] sm:$0xff] }
 0x41a   :  { %939 = vmatprep.subr.mxu0 %v2795_v24  ;;  %1799 = vmatprep.subr.mxu1 %v3252_v49 }
 0x41b   :  { %940 = vmatpush1.msra.mxu0 %v2802_v60  ;;  %1800 = vmatpush3.msra.mxu1 %v2226_v30  ;;  %v2823_v30 = vld [vmem:[%s3227_s1 + $0xb0] sm:$0xff] }
 0x41c   :  { %941 = vmatprep.subr.mxu0 %v2809_v27  ;;  %1801 = vmatprep.subr.mxu1 %v3252_v49 }
 0x41d   :  { %942 = vmatpush1.msra.mxu0 %v2816_v52  ;;  %1802 = vmatpush3.msra.mxu1 %v2245_v33  ;;  %v2837_v33 = vld [vmem:[%s3227_s1 + $0x98] sm:$0xff] }
 0x41e   :  { %943 = vmatprep.subr.mxu0 %v2823_v30  ;;  %1803 = vmatprep.subr.mxu1 %v3252_v49 }
 0x41f   :  { %944 = vmatpush1.msra.mxu0 %v2830_v6  ;;  %1804 = vmatpush3.msra.mxu1 %v2264_v36  ;;  %v2851_v36 = vld [vmem:[%s3227_s1 + $0x80] sm:$0xff] }
 0x420   :  { %945 = vmatprep.subr.mxu0 %v2837_v33  ;;  %1805 = vmatprep.subr.mxu1 %v3252_v49 }
 0x421   :  { %946 = vmatpush1.msra.mxu0 %v2844_v7  ;;  %1806 = vmatpush3.msra.mxu1 %v2283_v39  ;;  %v2865_v39 = vld [vmem:[%s3227_s1 + $0x68] sm:$0xff] }
 0x422   :  { %947 = vmatprep.subr.mxu0 %v2851_v36  ;;  %1807 = vmatprep.subr.mxu1 %v3252_v49 }
 0x423   :  { %948 = vmatpush1.msra.mxu0 %v2858_v8  ;;  %1808 = vmatpush3.msra.mxu1 %v2302_v42  ;;  %v2879_v42 = vld [vmem:[%s3227_s1 + $0x50] sm:$0xff] }
 0x424   :  { %949 = vmatprep.subr.mxu0 %v2865_v39  ;;  %1809 = vmatprep.subr.mxu1 %v3252_v49 }
 0x425   :  { %950 = vmatpush1.msra.mxu0 %v2872_v9  ;;  %1810 = vmatpush3.msra.mxu1 %v2316_v44 }
 0x426   :  { %951 = vmatprep.subr.mxu0 %v2879_v42  ;;  %1811 = vmatprep.subr.mxu1 %v3252_v49 }
 0x427   :  { %952 = vmatpush1.msra.mxu0 %v2251_v34  ;;  %1812 = vmatpush3.msra.mxu1 %v2325_v45  ;;  %v2903_v34 = vld [vmem:[%s3227_s1 + $0x170] sm:$0xff] }
 0x428   :  { %953 = vmatprep.subr.mxu0 %v2258_v35  ;;  %1813 = vmatprep.subr.mxu1 %v3252_v49  ;;  %v1452_v35 = vld [vmem:[%s3229_s0 + $0x60] sm:$0xff] }
 0x429   :  { %954 = vmatpush1.msra.mxu0 %v2270_v37  ;;  %1814 = vmatpush3.msra.mxu1 %v2333_v46 }
 0x42a   :  { %955 = vmatprep.subr.mxu0 %v2277_v38  ;;  %1815 = vmatprep.subr.mxu1 %v3252_v49 }
 0x42b   :  { %956 = vmatpush1.msra.mxu0 %v2289_v40  ;;  %1816 = vmatpush3.msra.mxu1 %v3261_v1 }
 0x42c   :  { %957 = vmatprep.subr.mxu0 %v3262_v2  ;;  %1817 = vmatprep.subr.mxu1 %v3252_v49 }
 0x42d   :  { %958 = vmatpush1.msra.mxu0 %v3263_v4  ;;  %991 = vmatprep.mubr.f32.mxu0 %v3252_v49  ;;  %v1453_v4 = vld [vmem:[%s3229_s0 + $0x68] sm:$0xff] }
 0x42e   :  { %1818 = vmatpush3.msra.mxu1 %v3264_v5  ;;  %1819 = vmatprep.mubr.msk.f32.mxu1 %vm2023_vm0, %v3252_v49 }
 0x42f   :  { %1095 = vmatprep.subr.mxu0 %v2903_v34  ;;  %1822 = vmatprep.subr.mxu1 %v3252_v49 }
 0x4ce   :  { %v825_v37 = vpop.f32.mrf.mxu0  ;;  %v896_v38 = vpop.f32.mrf.mxu1 }
 0x4cf   :  { %v826_v40 = vadd.f32 %v825_v37, %v2425_v53  ;;  %v897_v17 = vadd.f32 %v896_v38, %v2437_v56  ;;  %v3013_v37 = vld [vmem:[%s3227_s1 + $0xa0] sm:$0xff]  ;;  %v3022_v38 = vld [vmem:[%s3227_s1 + $0x88] sm:$0xff] }
 0x4d0   :  { %v827_v44 = vpop.f32.mrf.mxu0  ;;  %v1786_v45 = vpop.f32.mrf.mxu1 }
 0x4d1   :  { %v900_v46 = vadd.f32 %v1452_v35, %v826_v40  ;;  %v828_v2 = vadd.f32 %v827_v44, %v2431_v58  ;;  %v3004_v35 = vld [vmem:[%s3227_s1 + $0xb8] sm:$0xff]  ;;  %v3031_v40 = vld [vmem:[%s3227_s1 + $0x70] sm:$0xff]  ;;  %v3039_v44 = vld [vmem:[%s3227_s1 + $0x48] sm:$0xff] }
 0x4d2   :  { %v3045_v45 = vld [vmem:[%s3227_s1 + $0x58] sm:$0xff] }
 0x4d3   :  { %v1455_v1 = vmul.f32 -1.442695, %v900_v46  ;;  %v907_v5 = vadd.f32 %v1453_v4, %v828_v2  ;;  %v3051_v46 = vld [vmem:[%s3227_s1 + $0x38] sm:$0xff]  ;;  %v3064_v2 = vld [vmem:[%s3227_s1 + $0x40] sm:$0xff] }
 0x4d4   :  { %v3070_v4 = vld [vmem:[%s3227_s1 + $0x20] sm:$0xff] }
 0x4d5   :  { %1934 = vpow2.f32 %v1455_v1  ;;  %v1456_v10 = vmul.f32 -1.442695, %v907_v5  ;;  %v3058_v1 = vld [vmem:[%s3227_s1 + $0x30] sm:$0xff]  ;;  %v3077_v5 = vld [vmem:[%s3227_s1 + $0x18] sm:$0xff] }
 0x4d7   :  { %1936 = vpow2.f32 %v1456_v10  ;;  %v3083_v10 = vld [vmem:[%s3227_s1 + $0x28] sm:$0xff] }
 0x4d8   :  { %3266 = vst [vmem:[#allocation6_spill] sm:$0xff] %v3083_v10 }
 0x4e2   :  { %v1935_v11 = vpop.eup %1934 }
 0x4e3   :  { %v904_v12 = vadd.f32 1.0, %v1935_v11  ;;  %v3089_v11 = vld [vmem:[%s3227_s1 + $0x8] sm:$0xff] }
 0x4e4   :  { %v1937_v13 = vpop.eup %1936  ;;  %3267 = vst [vmem:[#allocation4_spill] sm:$0xff] %v3089_v11 }
 0x4e5   :  { %1938 = vrcp.f32 %v904_v12  ;;  %v911_v15 = vadd.f32 1.0, %v1937_v13  ;;  %v3096_v12 = vld [vmem:[%s3227_s1] sm:$0xff]  ;;  %v3103_v13 = vld [vmem:[%s3227_s1 + $0x10] sm:$0xff] }
 0x4e6   :  { %3268 = vst [vmem:[#allocation5_spill] sm:$0xff] %v3096_v12  ;;  %3269 = vst [vmem:[#allocation7_spill] sm:$0xff] %v3103_v13 }
 0x4e7   :  { %1940 = vrcp.f32 %v911_v15  ;;  %v1458_v15 = vld [vmem:[%s3229_s0 + $0x78] sm:$0xff] }
 0x4f2   :  { %v1939_v19 = vpop.eup %1938 }
 0x4f3   :  { %v914_v22 = vmul.f32 %v1939_v19, %v897_v17 }
 0x4f4   :  { %v1941_v25 = vpop.eup %1940 }
 0x4f5   :  { %v915_v23 = vadd.f32 %v1454_v20, %v914_v22  ;;  %v917_v26 = vsub.f32 1.0, %v1941_v25  ;;  %v919_v31 = vmul.f32 %v1941_v25, %v2707_v62  ;;  %v2995_v62 = vld [vmem:[%s3227_s1 + $0xd0] sm:$0xff] }
 0x4f7   :  { %1942 = vtanh.f32 %v915_v23 }
 0x504   :  { %v1943_v28 = vpop.eup %1942 }
 0x505   :  { %v918_v29 = vmul.f32 %v1943_v28, %v917_v26 }
 0x507   :  { %v2920_v32 = vadd.f32 %v919_v31, %v918_v29 }
 0x509   :  { %1457 = vst [vmem:[%s3230_s3 + $0x20] sm:$0xff] %v2920_v32  ;;  %992 = vmatmul.mubr.f32.vlgmr.msra.gmra.mxu0 %v2920_v32  ;;  %1820 = vmatmul.mubr.f32.vlgmr.msra.gmra.mxu1 %v2920_v32 }
 0x50a   :  { %1096 = vmatpush1.msra.mxu0 %v2718_v50  ;;  %1823 = vmatpush3.msra.mxu1 %v2932_v51 }
 0x50b   :  { %1097 = vmatprep.subr.mxu0 %v2725_v57  ;;  %1824 = vmatprep.subr.mxu1 %v3252_v49 }
 0x50c   :  { %1098 = vmatpush1.msra.mxu0 %v2732_v61  ;;  %1825 = vmatpush3.msra.mxu1 %v2941_v41 }
 0x50d   :  { %1099 = vmatprep.subr.mxu0 %v2739_v14  ;;  %1826 = vmatprep.subr.mxu1 %v3252_v49 }
 0x50e   :  { %1100 = vmatpush1.msra.mxu0 %v2746_v0  ;;  %1827 = vmatpush3.msra.mxu1 %v2950_v47 }
 0x50f   :  { %1101 = vmatprep.subr.mxu0 %v2753_v16  ;;  %1828 = vmatprep.subr.mxu1 %v3252_v49 }
 0x510   :  { %1102 = vmatpush1.msra.mxu0 %v2760_v63  ;;  %1829 = vmatpush3.msra.mxu1 %v2959_v3 }
 0x511   :  { %1103 = vmatprep.subr.mxu0 %v2767_v18  ;;  %1830 = vmatprep.subr.mxu1 %v3252_v49 }
 0x512   :  { %1104 = vmatpush1.msra.mxu0 %v2774_v48  ;;  %1831 = vmatpush3.msra.mxu1 %v2968_v55 }
 0x513   :  { %1105 = vmatprep.subr.mxu0 %v2781_v21  ;;  %1832 = vmatprep.subr.mxu1 %v3252_v49 }
 0x514   :  { %1106 = vmatpush1.msra.mxu0 %v2788_v43  ;;  %1833 = vmatpush3.msra.mxu1 %v2977_v54 }
 0x515   :  { %1107 = vmatprep.subr.mxu0 %v2795_v24  ;;  %1834 = vmatprep.subr.mxu1 %v3252_v49 }
 0x516   :  { %1108 = vmatpush1.msra.mxu0 %v2802_v60  ;;  %1835 = vmatpush3.msra.mxu1 %v2986_v59 }
 0x517   :  { %1109 = vmatprep.subr.mxu0 %v2809_v27  ;;  %1836 = vmatprep.subr.mxu1 %v3252_v49 }
 0x518   :  { %1110 = vmatpush1.msra.mxu0 %v2816_v52  ;;  %1837 = vmatpush3.msra.mxu1 %v2995_v62 }
 0x519   :  { %1111 = vmatprep.subr.mxu0 %v2823_v30  ;;  %1838 = vmatprep.subr.mxu1 %v3252_v49 }
 0x51a   :  { %1112 = vmatpush1.msra.mxu0 %v2830_v6  ;;  %1839 = vmatpush3.msra.mxu1 %v3004_v35 }
 0x51b   :  { %1113 = vmatprep.subr.mxu0 %v2837_v33  ;;  %1840 = vmatprep.subr.mxu1 %v3252_v49 }
 0x51c   :  { %1114 = vmatpush1.msra.mxu0 %v2844_v7  ;;  %1841 = vmatpush3.msra.mxu1 %v3013_v37 }
 0x51d   :  { %1115 = vmatprep.subr.mxu0 %v2851_v36  ;;  %1842 = vmatprep.subr.mxu1 %v3252_v49 }
 0x51e   :  { %1116 = vmatpush1.msra.mxu0 %v2858_v8  ;;  %1843 = vmatpush3.msra.mxu1 %v3022_v38 }
 0x51f   :  { %1117 = vmatprep.subr.mxu0 %v2865_v39  ;;  %1844 = vmatprep.subr.mxu1 %v3252_v49 }
 0x520   :  { %1118 = vmatpush1.msra.mxu0 %v2872_v9  ;;  %1845 = vmatpush3.msra.mxu1 %v3031_v40 }
 0x521   :  { %1119 = vmatprep.subr.mxu0 %v2879_v42  ;;  %1846 = vmatprep.subr.mxu1 %v3252_v49 }
 0x522   :  { %1120 = vmatpush1.msra.mxu0 %v3039_v44  ;;  %1847 = vmatpush3.msra.mxu1 %v3045_v45 }
 0x523   :  { %1121 = vmatprep.subr.mxu0 %v3051_v46  ;;  %1848 = vmatprep.subr.mxu1 %v3252_v49 }
 0x524   :  { %1122 = vmatpush1.msra.mxu0 %v3058_v1  ;;  %1849 = vmatpush3.msra.mxu1 %v3064_v2 }
 0x525   :  { %1123 = vmatprep.subr.mxu0 %v3070_v4  ;;  %1850 = vmatprep.subr.mxu1 %v3252_v49 }
 0x526   :  { %1124 = vmatpush1.msra.mxu0 %v3077_v5  ;;  %1851 = vmatpush3.msra.mxu1 %v3083_v10 }
 0x527   :  { %1125 = vmatprep.subr.mxu0 %v3089_v11  ;;  %1852 = vmatprep.subr.mxu1 %v3252_v49 }
 0x528   :  { %1126 = vmatpush1.msra.mxu0 %v3096_v12  ;;  %1159 = vmatprep.mubr.f32.mxu0 %v3252_v49 }
 0x529   :  { %1853 = vmatpush3.msra.mxu1 %v3103_v13  ;;  %1854 = vmatprep.mubr.msk.f32.mxu1 %vm2023_vm0, %v3252_v49 }
 0x52a   :  { %1263 = vmatprep.subr.mxu0 %v2903_v34  ;;  %1857 = vmatprep.subr.mxu1 %v3252_v49  ;;  %v1459_v34 = vld [vmem:[%s3229_s0 + $0x80] sm:$0xff] }
 0x5c9   :  { %v993_v17 = vpop.f32.mrf.mxu0  ;;  %v1064_v19 = vpop.f32.mrf.mxu1 }
 0x5ca   :  { %v994_v20 = vadd.f32 %v993_v17, %v2425_v53  ;;  %v1065_v17 = vadd.f32 %v1064_v19, %v2437_v56 }
 0x5cb   :  { %v995_v22 = vpop.f32.mrf.mxu0  ;;  %v1821_v23 = vpop.f32.mrf.mxu1 }
 0x5cc   :  { %v1068_v25 = vadd.f32 %v1458_v15, %v994_v20  ;;  %v996_v28 = vadd.f32 %v995_v22, %v2431_v58  ;;  %v1460_v15 = vld [vmem:[%s3229_s0 + $0x88] sm:$0xff] }
 0x5ce   :  { %v1461_v26 = vmul.f32 -1.442695, %v1068_v25  ;;  %v1075_v29 = vadd.f32 %v1459_v34, %v996_v28 }
 0x5d0   :  { %1944 = vpow2.f32 %v1461_v26  ;;  %v1462_v31 = vmul.f32 -1.442695, %v1075_v29 }
 0x5d2   :  { %1946 = vpow2.f32 %v1462_v31 }
 0x5dd   :  { %v1945_v13 = vpop.eup %1944 }
 0x5de   :  { %v1072_v12 = vadd.f32 1.0, %v1945_v13 }
 0x5df   :  { %v1947_v11 = vpop.eup %1946 }
 0x5e0   :  { %1948 = vrcp.f32 %v1072_v12  ;;  %v1079_v10 = vadd.f32 1.0, %v1947_v11 }
 0x5e2   :  { %1950 = vrcp.f32 %v1079_v10 }
 0x5ed   :  { %v1949_v23 = vpop.eup %1948 }
 0x5ee   :  { %v1082_v20 = vmul.f32 %v1949_v23, %v1065_v17 }
 0x5ef   :  { %v1951_v25 = vpop.eup %1950 }
 0x5f0   :  { %v1083_v22 = vadd.f32 %v1460_v15, %v1082_v20  ;;  %v1085_v26 = vsub.f32 1.0, %v1951_v25  ;;  %v1087_v13 = vmul.f32 %v1951_v25, %v2920_v32 }
 0x5f2   :  { %1952 = vtanh.f32 %v1083_v22 }
 0x5ff   :  { %v1953_v28 = vpop.eup %1952 }
 0x600   :  { %v1086_v34 = vmul.f32 %v1953_v28, %v1085_v26 }
 0x602   :  { %v3123_v12 = vadd.f32 %v1087_v13, %v1086_v34 }
 0x604   :  { %1463 = vst [vmem:[%s3230_s3 + $0x28] sm:$0xff] %v3123_v12  ;;  %1160 = vmatmul.mubr.f32.vlgmr.msra.gmra.mxu0 %v3123_v12  ;;  %1855 = vmatmul.mubr.f32.vlgmr.msra.gmra.mxu1 %v3123_v12 }
 0x605   :  { %1264 = vmatpush1.msra.mxu0 %v2718_v50  ;;  %1858 = vmatpush3.msra.mxu1 %v2932_v51  ;;  %v3270_v50 = vld [vmem:[#allocation6_spill] sm:$0xff] }
 0x606   :  { %1265 = vmatprep.subr.mxu0 %v2725_v57  ;;  %1859 = vmatprep.subr.mxu1 %v3252_v49  ;;  %v3271_v57 = vld [vmem:[#allocation4_spill] sm:$0xff] }
 0x607   :  { %1266 = vmatpush1.msra.mxu0 %v2732_v61  ;;  %1860 = vmatpush3.msra.mxu1 %v2941_v41  ;;  %v3272_v61 = vld [vmem:[#allocation5_spill] sm:$0xff] }
 0x608   :  { %1267 = vmatprep.subr.mxu0 %v2739_v14  ;;  %1861 = vmatprep.subr.mxu1 %v3252_v49  ;;  %v3273_v14 = vld [vmem:[#allocation7_spill] sm:$0xff] }
 0x609   :  { %1268 = vmatpush1.msra.mxu0 %v2746_v0  ;;  %1862 = vmatpush3.msra.mxu1 %v2950_v47  ;;  %v1464_v0 = vld [vmem:[%s3229_s0 + $0x90] sm:$0xff] }
 0x60a   :  { %1269 = vmatprep.subr.mxu0 %v2753_v16  ;;  %1863 = vmatprep.subr.mxu1 %v3252_v49 }
 0x60b   :  { %1270 = vmatpush1.msra.mxu0 %v2760_v63  ;;  %1864 = vmatpush3.msra.mxu1 %v2959_v3 }
 0x60c   :  { %1271 = vmatprep.subr.mxu0 %v2767_v18  ;;  %1865 = vmatprep.subr.mxu1 %v3252_v49 }
 0x60d   :  { %1272 = vmatpush1.msra.mxu0 %v2774_v48  ;;  %1866 = vmatpush3.msra.mxu1 %v2968_v55 }
 0x60e   :  { %1273 = vmatprep.subr.mxu0 %v2781_v21  ;;  %1867 = vmatprep.subr.mxu1 %v3252_v49 }
 0x60f   :  { %1274 = vmatpush1.msra.mxu0 %v2788_v43  ;;  %1868 = vmatpush3.msra.mxu1 %v2977_v54  ;;  %v1470_v54 = vld [vmem:[%s3229_s0 + $0xa8] sm:$0xff] }
 0x610   :  { %1275 = vmatprep.subr.mxu0 %v2795_v24  ;;  %1869 = vmatprep.subr.mxu1 %v3252_v49 }
 0x611   :  { %1276 = vmatpush1.msra.mxu0 %v2802_v60  ;;  %1870 = vmatpush3.msra.mxu1 %v2986_v59 }
 0x612   :  { %1277 = vmatprep.subr.mxu0 %v2809_v27  ;;  %1871 = vmatprep.subr.mxu1 %v3252_v49  ;;  %v1465_v27 = vld [vmem:[%s3229_s0 + $0x98] sm:$0xff] }
 0x613   :  { %1278 = vmatpush1.msra.mxu0 %v2816_v52  ;;  %1872 = vmatpush3.msra.mxu1 %v2995_v62 }
 0x614   :  { %1279 = vmatprep.subr.mxu0 %v2823_v30  ;;  %1873 = vmatprep.subr.mxu1 %v3252_v49 }
 0x615   :  { %1280 = vmatpush1.msra.mxu0 %v2830_v6  ;;  %1874 = vmatpush3.msra.mxu1 %v3004_v35 }
 0x616   :  { %1281 = vmatprep.subr.mxu0 %v2837_v33  ;;  %1875 = vmatprep.subr.mxu1 %v3252_v49 }
 0x617   :  { %1282 = vmatpush1.msra.mxu0 %v2844_v7  ;;  %1876 = vmatpush3.msra.mxu1 %v3013_v37 }
 0x618   :  { %1283 = vmatprep.subr.mxu0 %v2851_v36  ;;  %1877 = vmatprep.subr.mxu1 %v3252_v49 }
 0x619   :  { %1284 = vmatpush1.msra.mxu0 %v2858_v8  ;;  %1878 = vmatpush3.msra.mxu1 %v3022_v38 }
 0x61a   :  { %1285 = vmatprep.subr.mxu0 %v2865_v39  ;;  %1879 = vmatprep.subr.mxu1 %v3252_v49  ;;  %v1466_v39 = vld [vmem:[%s3229_s0 + $0xa0] sm:$0xff] }
 0x61b   :  { %1286 = vmatpush1.msra.mxu0 %v2872_v9  ;;  %1880 = vmatpush3.msra.mxu1 %v3031_v40 }
 0x61c   :  { %1287 = vmatprep.subr.mxu0 %v2879_v42  ;;  %1881 = vmatprep.subr.mxu1 %v3252_v49 }
 0x61d   :  { %1288 = vmatpush1.msra.mxu0 %v3039_v44  ;;  %1882 = vmatpush3.msra.mxu1 %v3045_v45 }
 0x61e   :  { %1289 = vmatprep.subr.mxu0 %v3051_v46  ;;  %1883 = vmatprep.subr.mxu1 %v3252_v49  ;;  %v1471_v46 = vld [vmem:[%s3229_s0 + $0xb0] sm:$0xff] }
 0x61f   :  { %1290 = vmatpush1.msra.mxu0 %v3058_v1  ;;  %1884 = vmatpush3.msra.mxu1 %v3064_v2 }
 0x620   :  { %1291 = vmatprep.subr.mxu0 %v3070_v4  ;;  %1885 = vmatprep.subr.mxu1 %v3252_v49 }
 0x621   :  { %1292 = vmatpush1.msra.mxu0 %v3077_v5  ;;  %1886 = vmatpush3.msra.mxu1 %v3270_v50 }
 0x622   :  { %1293 = vmatprep.subr.mxu0 %v3271_v57  ;;  %1887 = vmatprep.subr.mxu1 %v3252_v49 }
 0x623   :  { %1294 = vmatpush1.msra.mxu0 %v3272_v61  ;;  %1327 = vmatprep.mubr.f32.mxu0 %v3252_v49 }
 0x624   :  { %1888 = vmatpush3.msra.mxu1 %v3273_v14  ;;  %1889 = vmatprep.mubr.msk.f32.mxu1 %vm2023_vm0, %v3252_v49 }
 0x6c4   :  { %v1161_v16 = vpop.f32.mrf.mxu0  ;;  %v1232_v63 = vpop.f32.mrf.mxu1 }
 0x6c5   :  { %v1162_v18 = vadd.f32 %v1161_v16, %v2425_v53  ;;  %v1233_v36 = vadd.f32 %v1232_v63, %v2437_v56 }
 0x6c6   :  { %v1163_v48 = vpop.f32.mrf.mxu0  ;;  %v1856_v21 = vpop.f32.mrf.mxu1 }
 0x6c7   :  { %v1236_v43 = vadd.f32 %v1464_v0, %v1162_v18  ;;  %v1164_v60 = vadd.f32 %v1163_v48, %v2431_v58 }
 0x6c9   :  { %v1467_v24 = vmul.f32 -1.442695, %v1236_v43  ;;  %v1243_v49 = vadd.f32 %v1465_v27, %v1164_v60 }
 0x6cb   :  { %1954 = vpow2.f32 %v1467_v24  ;;  %v1468_v52 = vmul.f32 -1.442695, %v1243_v49 }
 0x6cd   :  { %1956 = vpow2.f32 %v1468_v52 }
 0x6d8   :  { %v1955_v30 = vpop.eup %1954 }
 0x6d9   :  { %v1240_v6 = vadd.f32 1.0, %v1955_v30 }
 0x6da   :  { %v1957_v33 = vpop.eup %1956 }
 0x6db   :  { %1958 = vrcp.f32 %v1240_v6  ;;  %v1247_v7 = vadd.f32 1.0, %v1957_v33 }
 0x6dd   :  { %1960 = vrcp.f32 %v1247_v7 }
 0x6e8   :  { %v1959_v8 = vpop.eup %1958 }
 0x6e9   :  { %v1250_v9 = vmul.f32 %v1959_v8, %v1233_v36 }
 0x6ea   :  { %v1961_v32 = vpop.eup %1960 }
 0x6eb   :  { %v1251_v42 = vadd.f32 %v1466_v39, %v1250_v9  ;;  %v1253_v51 = vsub.f32 1.0, %v1961_v32  ;;  %v1255_v3 = vmul.f32 %v1961_v32, %v3123_v12 }
 0x6ed   :  { %1962 = vtanh.f32 %v1251_v42 }
 0x6fa   :  { %v1963_v41 = vpop.eup %1962 }
 0x6fb   :  { %v1254_v47 = vmul.f32 %v1963_v41, %v1253_v51 }
 0x6fd   :  { %v1256_v55 = vadd.f32 %v1255_v3, %v1254_v47 }
 0x6ff   :  { %1469 = vst [vmem:[%s3230_s3 + $0x30] sm:$0xff] %v1256_v55  ;;  %1328 = vmatmul.mubr.f32.vlgmr.msra.gmra.mxu0 %v1256_v55  ;;  %1890 = vmatmul.mubr.f32.vlgmr.msra.gmra.mxu1 %v1256_v55 }
 0x7bf   :  { %v1329_v59 = vpop.f32.mrf.mxu0  ;;  %v1400_v62 = vpop.f32.mrf.mxu1 }
 0x7c0   :  { %v1330_v35 = vadd.f32 %v1329_v59, %v2425_v53  ;;  %v1401_v53 = vadd.f32 %v1400_v62, %v2437_v56 }
 0x7c1   :  { %v1331_v37 = vpop.f32.mrf.mxu0  ;;  %v1891_v38 = vpop.f32.mrf.mxu1 }
 0x7c2   :  { %v1404_v40 = vadd.f32 %v1470_v54, %v1330_v35  ;;  %v1332_v45 = vadd.f32 %v1331_v37, %v2431_v58  ;;  %v1472_v58 = vld [vmem:[%s3229_s0 + $0xb8] sm:$0xff] }
 0x7c4   :  { %v1473_v44 = vmul.f32 -1.442695, %v1404_v40  ;;  %v1411_v1 = vadd.f32 %v1471_v46, %v1332_v45 }
 0x7c6   :  { %1964 = vpow2.f32 %v1473_v44  ;;  %v1474_v2 = vmul.f32 -1.442695, %v1411_v1 }
 0x7c8   :  { %1966 = vpow2.f32 %v1474_v2 }
 0x7d3   :  { %v1965_v4 = vpop.eup %1964 }
 0x7d4   :  { %v1408_v5 = vadd.f32 1.0, %v1965_v4 }
 0x7d5   :  { %v1967_v10 = vpop.eup %1966 }
 0x7d6   :  { %1968 = vrcp.f32 %v1408_v5  ;;  %v1415_v11 = vadd.f32 1.0, %v1967_v10 }
 0x7d8   :  { %1970 = vrcp.f32 %v1415_v11 }
 0x7e3   :  { %v1969_v19 = vpop.eup %1968 }
 0x7e4   :  { %v1418_v29 = vmul.f32 %v1969_v19, %v1401_v53 }
 0x7e5   :  { %v1971_v17 = vpop.eup %1970 }
 0x7e6   :  { %v1419_v31 = vadd.f32 %v1472_v58, %v1418_v29  ;;  %v1421_v23 = vsub.f32 1.0, %v1971_v17  ;;  %v1423_v22 = vmul.f32 %v1971_v17, %v1256_v55 }
 0x7e8   :  { %1972 = vtanh.f32 %v1419_v31 }
 0x7f5   :  { %v1973_v15 = vpop.eup %1972 }
 0x7f6   :  { %v1422_v20 = vmul.f32 %v1973_v15, %v1421_v23 }
 0x7f8   :  { %v1424_v25 = vadd.f32 %v1423_v22, %v1422_v20 }
 0x7fa   :  { %1475 = vst [vmem:[%s3230_s3 + $0x38] sm:$0xff] %v1424_v25 }

</bundles_post_ra>
